<compile_context>
chip_gen: v7x
topology: tpu7x:2x2x1
jax: 0.10.0
libtpu: 0.0.40
codegen_flags: <defaults>
</compile_context>

<pallas_src>
import jax
import jax.numpy as jnp
from jax import lax
from jax.experimental import pallas as pl
from jax.experimental.pallas import tpu as pltpu

SEQ = 5
BATCH = 3
INPUT_SIZE = 10
HIDDEN = 20
NUM_LAYERS = 2
GATE_PAD = 128                       # lane stride per gate segment
GATES = ("i", "f", "c", "o")         # gate order along the padded 4*128 axis

_DOT_KW = dict(preferred_element_type=jnp.float32,
               precision=lax.Precision.HIGHEST)


def _lstm_kernel(x2_ref, h0_ref, c0_ref,
                 wx0_ref, wh0_ref, b0_ref,
                 wx1_ref, wh1_ref, b1_ref,
                 out_ref, hn_ref, cn_ref):
    H = HIDDEN
    G = GATE_PAD

    def sig(v):                      # sigmoid via a single EUP tanh
        return 0.5 * jnp.tanh(0.5 * v) + 0.5

    # ---- Prologue (off the recurrent critical path) ------------------------
    # Layer-0 input projection for ALL time steps in one matmul; layer-0 bias
    # folded in here.  (SEQ*BATCH, IN) @ (IN, 4G) -> (SEQ*BATCH, 4G)
    xz0 = jnp.dot(x2_ref[...], wx0_ref[...], **_DOT_KW) + b0_ref[...]

    # Layer-1 bias broadcast hoisted once (no per-iteration broadcast_in_dim).
    b1b = jnp.broadcast_to(b1_ref[...], (BATCH, 4 * G))

    # Register-carried state: h compact (BATCH, H), c padded (BATCH, G)
    # (padded lanes of c are exactly 0 and stay 0 through the recurrence).
    h = [h0_ref[l] for l in range(NUM_LAYERS)]
    c = [c0_ref[l] for l in range(NUM_LAYERS)]

    def gates_to_state(z, c_prev):
        # z: (BATCH, 4G); each gate occupies a vreg-aligned 128-lane segment,
        # so these slices are free static views (no lane rotates).
        i_t = sig(z[:, 0 * G:1 * G])
        f_t = sig(z[:, 1 * G:2 * G])
        g_t = jnp.tanh(z[:, 2 * G:3 * G])
        o_t = sig(z[:, 3 * G:4 * G])
        c_t = f_t * c_prev + i_t * g_t            # (BATCH, G)
        h_pad = o_t * jnp.tanh(c_t)               # (BATCH, G)
        return h_pad[:, :H], c_t                  # compact h, padded c

    # ---- Recurrence (statically unrolled; SEQ is tiny) ---------------------
    outs = []
    for t in range(SEQ):
        # layer 0: only the recurrent matmul remains on the critical path
        z0 = (xz0[t * BATCH:(t + 1) * BATCH, :]
              + jnp.dot(h[0], wh0_ref[...], **_DOT_KW))
        h[0], c[0] = gates_to_state(z0, c[0])

        # layer 1
        z1 = (jnp.dot(h[0], wx1_ref[...], **_DOT_KW)
              + jnp.dot(h[1], wh1_ref[...], **_DOT_KW)
              + b1b)
        h[1], c[1] = gates_to_state(z1, c[1])
        outs.append(h[1])

    # ---- Epilogue: all stores kept off the recurrent chain -----------------
    for t in range(SEQ):
        out_ref[t] = outs[t]
    for l in range(NUM_LAYERS):
        hn_ref[l] = h[l]
        cn_ref[l] = c[l][:, :H]


def fuse_and_pad_layer(p, in_dim):
    """Fuse the 12 per-gate torch params into lane-padded (wx, wh, b)."""
    wx = jnp.zeros((in_dim, 4 * GATE_PAD), jnp.float32)
    wh = jnp.zeros((HIDDEN, 4 * GATE_PAD), jnp.float32)
    b = jnp.zeros((1, 4 * GATE_PAD), jnp.float32)
    for g, name in enumerate(GATES):
        lo = g * GATE_PAD
        wx = wx.at[:, lo:lo + HIDDEN].set(p[f"W_{name}x_w"].T)
        wh = wh.at[:, lo:lo + HIDDEN].set(p[f"W_{name}h_w"].T)
        b = b.at[0, lo:lo + HIDDEN].set(
            p[f"W_{name}x_b"] + p[f"W_{name}h_b"] + p[f"b_{name}"])
    return wx, wh, b


def basic_lstm_pallas(input_data, h_0, c_0, params):
    seq, batch, in_dim = input_data.shape
    assert (seq, batch, in_dim) == (SEQ, BATCH, INPUT_SIZE)

    wx0, wh0, b0 = fuse_and_pad_layer(params[0], INPUT_SIZE)
    wx1, wh1, b1 = fuse_and_pad_layer(params[1], HIDDEN)

    # Collapse (seq, batch) so the layer-0 projection is one prologue matmul.
    x2 = input_data.reshape(seq * batch, in_dim)
    # c is carried lane-padded inside the kernel; pad once here with zeros.
    c0_pad = jnp.zeros((NUM_LAYERS, batch, GATE_PAD), jnp.float32)
    c0_pad = c0_pad.at[:, :, :HIDDEN].set(c_0)

    vmem = pl.BlockSpec(memory_space=pltpu.MemorySpace.VMEM)
    out_shapes = (
        jax.ShapeDtypeStruct((seq, batch, HIDDEN), jnp.float32),          # outputs
        jax.ShapeDtypeStruct((NUM_LAYERS, batch, HIDDEN), jnp.float32),   # h_n
        jax.ShapeDtypeStruct((NUM_LAYERS, batch, HIDDEN), jnp.float32),   # c_n
    )

    # Single invocation, no grid: the whole problem (a few hundred KB) sits in
    # VMEM on every TPU generation.
    return pl.pallas_call(
        _lstm_kernel,
        out_shape=out_shapes,
        in_specs=[vmem] * 9,
        out_specs=(vmem, vmem, vmem),
    )(x2, h_0, c0_pad, wx0, wh0, b0, wx1, wh1, b1)


def init_params(key):
    """Per-gate torch-style params: W_gx Linear(in,H), W_gh Linear(H,H), b_g."""
    params = []
    for layer in range(NUM_LAYERS):
        in_dim = INPUT_SIZE if layer == 0 else HIDDEN
        bx = float(in_dim) ** -0.5
        bh = float(HIDDEN) ** -0.5
        p = {}
        for name in GATES:
            kxw, kxb, khw, khb, key = jax.random.split(key, 5)
            p[f"W_{name}x_w"] = jax.random.uniform(
                kxw, (HIDDEN, in_dim), jnp.float32, -bx, bx)
            p[f"W_{name}x_b"] = jax.random.uniform(
                kxb, (HIDDEN,), jnp.float32, -bx, bx)
            p[f"W_{name}h_w"] = jax.random.uniform(
                khw, (HIDDEN, HIDDEN), jnp.float32, -bh, bh)
            p[f"W_{name}h_b"] = jax.random.uniform(
                khb, (HIDDEN,), jnp.float32, -bh, bh)
            p[f"b_{name}"] = jnp.zeros((HIDDEN,), jnp.float32)  # nn.Parameter zeros
        params.append(p)
    return params, key


def basic_lstm_ref(x, h_0, c_0, params):
    """Pure-JAX reference of the (intended) torch forward, unfused params."""
    def lin(w, b, v):
        return jnp.dot(v, w.T, **_DOT_KW) + b

    h = [h_0[l] for l in range(NUM_LAYERS)]
    c = [c_0[l] for l in range(NUM_LAYERS)]
    outs = []
    for t in range(x.shape[0]):
        inp = x[t]
        for l in range(NUM_LAYERS):
            p = params[l]
            i_t = jax.nn.sigmoid(lin(p["W_ix_w"], p["W_ix_b"], inp)
                                 + lin(p["W_ih_w"], p["W_ih_b"], h[l]) + p["b_i"])
            f_t = jax.nn.sigmoid(lin(p["W_fx_w"], p["W_fx_b"], inp)
                                 + lin(p["W_fh_w"], p["W_fh_b"], h[l]) + p["b_f"])
            g_t = jnp.tanh(lin(p["W_cx_w"], p["W_cx_b"], inp)
                           + lin(p["W_ch_w"], p["W_ch_b"], h[l]) + p["b_c"])
            o_t = jax.nn.sigmoid(lin(p["W_ox_w"], p["W_ox_b"], inp)
                                 + lin(p["W_oh_w"], p["W_oh_b"], h[l]) + p["b_o"])
            c[l] = f_t * c[l] + i_t * g_t
            h[l] = o_t * jnp.tanh(c[l])
            inp = h[l]
        outs.append(inp)
    return jnp.stack(outs), jnp.stack(h), jnp.stack(c)


if __name__ == "__main__":
    key = jax.random.PRNGKey(0)
    params, key = init_params(key)
    kx, key = jax.random.split(key)

    input_data = jax.random.normal(kx, (SEQ, BATCH, INPUT_SIZE), jnp.float32)
    h_0 = jnp.zeros((NUM_LAYERS, BATCH, HIDDEN), jnp.float32)
    c_0 = jnp.zeros((NUM_LAYERS, BATCH, HIDDEN), jnp.float32)

    run = jax.jit(basic_lstm_pallas)
    outputs, h_n, c_n = run(input_data, h_0, c_0, params)
    jax.block_until_ready((outputs, h_n, c_n))

    ref_out, ref_h, ref_c = basic_lstm_ref(input_data, h_0, c_0, params)
    assert jnp.allclose(outputs, ref_out, atol=1e-4, rtol=1e-4)
    assert jnp.allclose(h_n, ref_h, atol=1e-4, rtol=1e-4)
    assert jnp.allclose(c_n, ref_c, atol=1e-4, rtol=1e-4)

    print("KERNEL_OK")
</pallas_src>

<mosaic_0001>
module attributes {stable_mosaic.version = 11 : i64} {
  func.func @_lstm_kernel(%arg0: memref<15x10xf32, #tpu.memory_space<vmem>>, %arg1: memref<2x3x20xf32, #tpu.memory_space<vmem>>, %arg2: memref<2x3x128xf32, #tpu.memory_space<vmem>>, %arg3: memref<10x512xf32, #tpu.memory_space<vmem>>, %arg4: memref<20x512xf32, #tpu.memory_space<vmem>>, %arg5: memref<1x512xf32, #tpu.memory_space<vmem>>, %arg6: memref<20x512xf32, #tpu.memory_space<vmem>>, %arg7: memref<20x512xf32, #tpu.memory_space<vmem>>, %arg8: memref<1x512xf32, #tpu.memory_space<vmem>>, %arg9: memref<5x3x20xf32, #tpu.memory_space<vmem>>, %arg10: memref<2x3x20xf32, #tpu.memory_space<vmem>>, %arg11: memref<2x3x20xf32, #tpu.memory_space<vmem>>) attributes {dimension_semantics = [], scalar_prefetch = 0 : i64, scratch_operands = 0 : i64, tpu.core_type = #tpu.core_type<tc>} {
    %c0 = arith.constant 0 : index
    %c0_0 = arith.constant 0 : index
    %0 = vector.load %arg0[%c0, %c0_0] : memref<15x10xf32, #tpu.memory_space<vmem>>, vector<15x10xf32>
    %c0_1 = arith.constant 0 : index
    %c0_2 = arith.constant 0 : index
    %1 = vector.load %arg3[%c0_1, %c0_2] : memref<10x512xf32, #tpu.memory_space<vmem>>, vector<10x512xf32>
    %cst = arith.constant dense<0.000000e+00> : vector<15x512xf32>
    %2 = tpu.matmul %0, %1, %cst {dimension_numbers = #tpu.dot_dimension_numbers<[1], [0], [0], [1], [0, 0, 1, 1], [], []>, precision = #tpu.contract_precision<fp32>} : vector<15x10xf32>, vector<10x512xf32>, vector<15x512xf32> -> vector<15x512xf32>
    %c0_3 = arith.constant 0 : index
    %c0_4 = arith.constant 0 : index
    %3 = vector.load %arg5[%c0_3, %c0_4] : memref<1x512xf32, #tpu.memory_space<vmem>>, vector<1x512xf32>
    %4 = vector.broadcast %3 : vector<1x512xf32> to vector<15x512xf32>
    %5 = arith.addf %2, %4 : vector<15x512xf32>
    %c0_5 = arith.constant 0 : index
    %c0_6 = arith.constant 0 : index
    %6 = vector.load %arg8[%c0_5, %c0_6] : memref<1x512xf32, #tpu.memory_space<vmem>>, vector<1x512xf32>
    %7 = vector.shape_cast %6 : vector<1x512xf32> to vector<1x512xf32>
    %8 = vector.broadcast %7 : vector<1x512xf32> to vector<3x512xf32>
    %c0_7 = arith.constant 0 : index
    %c0_8 = arith.constant 0 : index
    %c0_9 = arith.constant 0 : index
    %9 = vector.load %arg1[%c0_7, %c0_8, %c0_9] : memref<2x3x20xf32, #tpu.memory_space<vmem>>, vector<1x3x20xf32>
    %10 = vector.shape_cast %9 : vector<1x3x20xf32> to vector<3x20xf32>
    %c1 = arith.constant 1 : index
    %c0_10 = arith.constant 0 : index
    %c0_11 = arith.constant 0 : index
    %11 = vector.load %arg1[%c1, %c0_10, %c0_11] : memref<2x3x20xf32, #tpu.memory_space<vmem>>, vector<1x3x20xf32>
    %12 = vector.shape_cast %11 : vector<1x3x20xf32> to vector<3x20xf32>
    %c0_12 = arith.constant 0 : index
    %c0_13 = arith.constant 0 : index
    %c0_14 = arith.constant 0 : index
    %13 = vector.load %arg2[%c0_12, %c0_13, %c0_14] : memref<2x3x128xf32, #tpu.memory_space<vmem>>, vector<1x3x128xf32>
    %14 = vector.shape_cast %13 : vector<1x3x128xf32> to vector<3x128xf32>
    %c1_15 = arith.constant 1 : index
    %c0_16 = arith.constant 0 : index
    %c0_17 = arith.constant 0 : index
    %15 = vector.load %arg2[%c1_15, %c0_16, %c0_17] : memref<2x3x128xf32, #tpu.memory_space<vmem>>, vector<1x3x128xf32>
    %16 = vector.shape_cast %15 : vector<1x3x128xf32> to vector<3x128xf32>
    %17 = vector.extract_strided_slice %5 {offsets = [0, 0], sizes = [3, 512], strides = [1, 1]} : vector<15x512xf32> to vector<3x512xf32>
    %c0_18 = arith.constant 0 : index
    %c0_19 = arith.constant 0 : index
    %18 = vector.load %arg4[%c0_18, %c0_19] : memref<20x512xf32, #tpu.memory_space<vmem>>, vector<20x512xf32>
    %cst_20 = arith.constant dense<0.000000e+00> : vector<3x512xf32>
    %19 = tpu.matmul %10, %18, %cst_20 {dimension_numbers = #tpu.dot_dimension_numbers<[1], [0], [0], [1], [0, 0, 1, 1], [], []>, precision = #tpu.contract_precision<fp32>} : vector<3x20xf32>, vector<20x512xf32>, vector<3x512xf32> -> vector<3x512xf32>
    %20 = arith.addf %17, %19 : vector<3x512xf32>
    %21 = vector.extract_strided_slice %20 {offsets = [0, 0], sizes = [3, 128], strides = [1, 1]} : vector<3x512xf32> to vector<3x128xf32>
    %cst_21 = arith.constant 5.000000e-01 : f32
    %22 = vector.broadcast %cst_21 : f32 to vector<3x128xf32>
    %23 = arith.mulf %22, %21 : vector<3x128xf32>
    %24 = math.tanh %23 : vector<3x128xf32>
    %cst_22 = arith.constant 5.000000e-01 : f32
    %25 = vector.broadcast %cst_22 : f32 to vector<3x128xf32>
    %26 = arith.mulf %25, %24 : vector<3x128xf32>
    %cst_23 = arith.constant 5.000000e-01 : f32
    %27 = vector.broadcast %cst_23 : f32 to vector<3x128xf32>
    %28 = arith.addf %26, %27 : vector<3x128xf32>
    %29 = vector.extract_strided_slice %20 {offsets = [0, 128], sizes = [3, 128], strides = [1, 1]} : vector<3x512xf32> to vector<3x128xf32>
    %cst_24 = arith.constant 5.000000e-01 : f32
    %30 = vector.broadcast %cst_24 : f32 to vector<3x128xf32>
    %31 = arith.mulf %30, %29 : vector<3x128xf32>
    %32 = math.tanh %31 : vector<3x128xf32>
    %cst_25 = arith.constant 5.000000e-01 : f32
    %33 = vector.broadcast %cst_25 : f32 to vector<3x128xf32>
    %34 = arith.mulf %33, %32 : vector<3x128xf32>
    %cst_26 = arith.constant 5.000000e-01 : f32
    %35 = vector.broadcast %cst_26 : f32 to vector<3x128xf32>
    %36 = arith.addf %34, %35 : vector<3x128xf32>
    %37 = vector.extract_strided_slice %20 {offsets = [0, 256], sizes = [3, 128], strides = [1, 1]} : vector<3x512xf32> to vector<3x128xf32>
    %38 = math.tanh %37 : vector<3x128xf32>
    %39 = vector.extract_strided_slice %20 {offsets = [0, 384], sizes = [3, 128], strides = [1, 1]} : vector<3x512xf32> to vector<3x128xf32>
    %cst_27 = arith.constant 5.000000e-01 : f32
    %40 = vector.broadcast %cst_27 : f32 to vector<3x128xf32>
    %41 = arith.mulf %40, %39 : vector<3x128xf32>
    %42 = math.tanh %41 : vector<3x128xf32>
    %cst_28 = arith.constant 5.000000e-01 : f32
    %43 = vector.broadcast %cst_28 : f32 to vector<3x128xf32>
    %44 = arith.mulf %43, %42 : vector<3x128xf32>
    %cst_29 = arith.constant 5.000000e-01 : f32
    %45 = vector.broadcast %cst_29 : f32 to vector<3x128xf32>
    %46 = arith.addf %44, %45 : vector<3x128xf32>
    %47 = arith.mulf %36, %14 : vector<3x128xf32>
    %48 = arith.mulf %28, %38 : vector<3x128xf32>
    %49 = arith.addf %47, %48 : vector<3x128xf32>
    %50 = math.tanh %49 : vector<3x128xf32>
    %51 = arith.mulf %46, %50 : vector<3x128xf32>
    %52 = vector.extract_strided_slice %51 {offsets = [0, 0], sizes = [3, 20], strides = [1, 1]} : vector<3x128xf32> to vector<3x20xf32>
    %c0_30 = arith.constant 0 : index
    %c0_31 = arith.constant 0 : index
    %53 = vector.load %arg6[%c0_30, %c0_31] : memref<20x512xf32, #tpu.memory_space<vmem>>, vector<20x512xf32>
    %cst_32 = arith.constant dense<0.000000e+00> : vector<3x512xf32>
    %54 = tpu.matmul %52, %53, %cst_32 {dimension_numbers = #tpu.dot_dimension_numbers<[1], [0], [0], [1], [0, 0, 1, 1], [], []>, precision = #tpu.contract_precision<fp32>} : vector<3x20xf32>, vector<20x512xf32>, vector<3x512xf32> -> vector<3x512xf32>
    %c0_33 = arith.constant 0 : index
    %c0_34 = arith.constant 0 : index
    %55 = vector.load %arg7[%c0_33, %c0_34] : memref<20x512xf32, #tpu.memory_space<vmem>>, vector<20x512xf32>
    %cst_35 = arith.constant dense<0.000000e+00> : vector<3x512xf32>
    %56 = tpu.matmul %12, %55, %cst_35 {dimension_numbers = #tpu.dot_dimension_numbers<[1], [0], [0], [1], [0, 0, 1, 1], [], []>, precision = #tpu.contract_precision<fp32>} : vector<3x20xf32>, vector<20x512xf32>, vector<3x512xf32> -> vector<3x512xf32>
    %57 = arith.addf %54, %56 : vector<3x512xf32>
    %58 = arith.addf %57, %8 : vector<3x512xf32>
    %59 = vector.extract_strided_slice %58 {offsets = [0, 0], sizes = [3, 128], strides = [1, 1]} : vector<3x512xf32> to vector<3x128xf32>
    %cst_36 = arith.constant 5.000000e-01 : f32
    %60 = vector.broadcast %cst_36 : f32 to vector<3x128xf32>
    %61 = arith.mulf %60, %59 : vector<3x128xf32>
    %62 = math.tanh %61 : vector<3x128xf32>
    %cst_37 = arith.constant 5.000000e-01 : f32
    %63 = vector.broadcast %cst_37 : f32 to vector<3x128xf32>
    %64 = arith.mulf %63, %62 : vector<3x128xf32>
    %cst_38 = arith.constant 5.000000e-01 : f32
    %65 = vector.broadcast %cst_38 : f32 to vector<3x128xf32>
    %66 = arith.addf %64, %65 : vector<3x128xf32>
    %67 = vector.extract_strided_slice %58 {offsets = [0, 128], sizes = [3, 128], strides = [1, 1]} : vector<3x512xf32> to vector<3x128xf32>
    %cst_39 = arith.constant 5.000000e-01 : f32
    %68 = vector.broadcast %cst_39 : f32 to vector<3x128xf32>
    %69 = arith.mulf %68, %67 : vector<3x128xf32>
    %70 = math.tanh %69 : vector<3x128xf32>
    %cst_40 = arith.constant 5.000000e-01 : f32
    %71 = vector.broadcast %cst_40 : f32 to vector<3x128xf32>
    %72 = arith.mulf %71, %70 : vector<3x128xf32>
    %cst_41 = arith.constant 5.000000e-01 : f32
    %73 = vector.broadcast %cst_41 : f32 to vector<3x128xf32>
    %74 = arith.addf %72, %73 : vector<3x128xf32>
    %75 = vector.extract_strided_slice %58 {offsets = [0, 256], sizes = [3, 128], strides = [1, 1]} : vector<3x512xf32> to vector<3x128xf32>
    %76 = math.tanh %75 : vector<3x128xf32>
    %77 = vector.extract_strided_slice %58 {offsets = [0, 384], sizes = [3, 128], strides = [1, 1]} : vector<3x512xf32> to vector<3x128xf32>
    %cst_42 = arith.constant 5.000000e-01 : f32
    %78 = vector.broadcast %cst_42 : f32 to vector<3x128xf32>
    %79 = arith.mulf %78, %77 : vector<3x128xf32>
    %80 = math.tanh %79 : vector<3x128xf32>
    %cst_43 = arith.constant 5.000000e-01 : f32
    %81 = vector.broadcast %cst_43 : f32 to vector<3x128xf32>
    %82 = arith.mulf %81, %80 : vector<3x128xf32>
    %cst_44 = arith.constant 5.000000e-01 : f32
    %83 = vector.broadcast %cst_44 : f32 to vector<3x128xf32>
    %84 = arith.addf %82, %83 : vector<3x128xf32>
    %85 = arith.mulf %74, %16 : vector<3x128xf32>
    %86 = arith.mulf %66, %76 : vector<3x128xf32>
    %87 = arith.addf %85, %86 : vector<3x128xf32>
    %88 = math.tanh %87 : vector<3x128xf32>
    %89 = arith.mulf %84, %88 : vector<3x128xf32>
    %90 = vector.extract_strided_slice %89 {offsets = [0, 0], sizes = [3, 20], strides = [1, 1]} : vector<3x128xf32> to vector<3x20xf32>
    %91 = vector.extract_strided_slice %5 {offsets = [3, 0], sizes = [3, 512], strides = [1, 1]} : vector<15x512xf32> to vector<3x512xf32>
    %c0_45 = arith.constant 0 : index
    %c0_46 = arith.constant 0 : index
    %92 = vector.load %arg4[%c0_45, %c0_46] : memref<20x512xf32, #tpu.memory_space<vmem>>, vector<20x512xf32>
    %cst_47 = arith.constant dense<0.000000e+00> : vector<3x512xf32>
    %93 = tpu.matmul %52, %92, %cst_47 {dimension_numbers = #tpu.dot_dimension_numbers<[1], [0], [0], [1], [0, 0, 1, 1], [], []>, precision = #tpu.contract_precision<fp32>} : vector<3x20xf32>, vector<20x512xf32>, vector<3x512xf32> -> vector<3x512xf32>
    %94 = arith.addf %91, %93 : vector<3x512xf32>
    %95 = vector.extract_strided_slice %94 {offsets = [0, 0], sizes = [3, 128], strides = [1, 1]} : vector<3x512xf32> to vector<3x128xf32>
    %cst_48 = arith.constant 5.000000e-01 : f32
    %96 = vector.broadcast %cst_48 : f32 to vector<3x128xf32>
    %97 = arith.mulf %96, %95 : vector<3x128xf32>
    %98 = math.tanh %97 : vector<3x128xf32>
    %cst_49 = arith.constant 5.000000e-01 : f32
    %99 = vector.broadcast %cst_49 : f32 to vector<3x128xf32>
    %100 = arith.mulf %99, %98 : vector<3x128xf32>
    %cst_50 = arith.constant 5.000000e-01 : f32
    %101 = vector.broadcast %cst_50 : f32 to vector<3x128xf32>
    %102 = arith.addf %100, %101 : vector<3x128xf32>
    %103 = vector.extract_strided_slice %94 {offsets = [0, 128], sizes = [3, 128], strides = [1, 1]} : vector<3x512xf32> to vector<3x128xf32>
    %cst_51 = arith.constant 5.000000e-01 : f32
    %104 = vector.broadcast %cst_51 : f32 to vector<3x128xf32>
    %105 = arith.mulf %104, %103 : vector<3x128xf32>
    %106 = math.tanh %105 : vector<3x128xf32>
    %cst_52 = arith.constant 5.000000e-01 : f32
    %107 = vector.broadcast %cst_52 : f32 to vector<3x128xf32>
    %108 = arith.mulf %107, %106 : vector<3x128xf32>
    %cst_53 = arith.constant 5.000000e-01 : f32
    %109 = vector.broadcast %cst_53 : f32 to vector<3x128xf32>
    %110 = arith.addf %108, %109 : vector<3x128xf32>
    %111 = vector.extract_strided_slice %94 {offsets = [0, 256], sizes = [3, 128], strides = [1, 1]} : vector<3x512xf32> to vector<3x128xf32>
    %112 = math.tanh %111 : vector<3x128xf32>
    %113 = vector.extract_strided_slice %94 {offsets = [0, 384], sizes = [3, 128], strides = [1, 1]} : vector<3x512xf32> to vector<3x128xf32>
    %cst_54 = arith.constant 5.000000e-01 : f32
    %114 = vector.broadcast %cst_54 : f32 to vector<3x128xf32>
    %115 = arith.mulf %114, %113 : vector<3x128xf32>
    %116 = math.tanh %115 : vector<3x128xf32>
    %cst_55 = arith.constant 5.000000e-01 : f32
    %117 = vector.broadcast %cst_55 : f32 to vector<3x128xf32>
    %118 = arith.mulf %117, %116 : vector<3x128xf32>
    %cst_56 = arith.constant 5.000000e-01 : f32
    %119 = vector.broadcast %cst_56 : f32 to vector<3x128xf32>
    %120 = arith.addf %118, %119 : vector<3x128xf32>
    %121 = arith.mulf %110, %49 : vector<3x128xf32>
    %122 = arith.mulf %102, %112 : vector<3x128xf32>
    %123 = arith.addf %121, %122 : vector<3x128xf32>
    %124 = math.tanh %123 : vector<3x128xf32>
    %125 = arith.mulf %120, %124 : vector<3x128xf32>
    %126 = vector.extract_strided_slice %125 {offsets = [0, 0], sizes = [3, 20], strides = [1, 1]} : vector<3x128xf32> to vector<3x20xf32>
    %c0_57 = arith.constant 0 : index
    %c0_58 = arith.constant 0 : index
    %127 = vector.load %arg6[%c0_57, %c0_58] : memref<20x512xf32, #tpu.memory_space<vmem>>, vector<20x512xf32>
    %cst_59 = arith.constant dense<0.000000e+00> : vector<3x512xf32>
    %128 = tpu.matmul %126, %127, %cst_59 {dimension_numbers = #tpu.dot_dimension_numbers<[1], [0], [0], [1], [0, 0, 1, 1], [], []>, precision = #tpu.contract_precision<fp32>} : vector<3x20xf32>, vector<20x512xf32>, vector<3x512xf32> -> vector<3x512xf32>
    %c0_60 = arith.constant 0 : index
    %c0_61 = arith.constant 0 : index
    %129 = vector.load %arg7[%c0_60, %c0_61] : memref<20x512xf32, #tpu.memory_space<vmem>>, vector<20x512xf32>
    %cst_62 = arith.constant dense<0.000000e+00> : vector<3x512xf32>
    %130 = tpu.matmul %90, %129, %cst_62 {dimension_numbers = #tpu.dot_dimension_numbers<[1], [0], [0], [1], [0, 0, 1, 1], [], []>, precision = #tpu.contract_precision<fp32>} : vector<3x20xf32>, vector<20x512xf32>, vector<3x512xf32> -> vector<3x512xf32>
    %131 = arith.addf %128, %130 : vector<3x512xf32>
    %132 = arith.addf %131, %8 : vector<3x512xf32>
    %133 = vector.extract_strided_slice %132 {offsets = [0, 0], sizes = [3, 128], strides = [1, 1]} : vector<3x512xf32> to vector<3x128xf32>
    %cst_63 = arith.constant 5.000000e-01 : f32
    %134 = vector.broadcast %cst_63 : f32 to vector<3x128xf32>
    %135 = arith.mulf %134, %133 : vector<3x128xf32>
    %136 = math.tanh %135 : vector<3x128xf32>
    %cst_64 = arith.constant 5.000000e-01 : f32
    %137 = vector.broadcast %cst_64 : f32 to vector<3x128xf32>
    %138 = arith.mulf %137, %136 : vector<3x128xf32>
    %cst_65 = arith.constant 5.000000e-01 : f32
    %139 = vector.broadcast %cst_65 : f32 to vector<3x128xf32>
    %140 = arith.addf %138, %139 : vector<3x128xf32>
    %141 = vector.extract_strided_slice %132 {offsets = [0, 128], sizes = [3, 128], strides = [1, 1]} : vector<3x512xf32> to vector<3x128xf32>
    %cst_66 = arith.constant 5.000000e-01 : f32
    %142 = vector.broadcast %cst_66 : f32 to vector<3x128xf32>
    %143 = arith.mulf %142, %141 : vector<3x128xf32>
    %144 = math.tanh %143 : vector<3x128xf32>
    %cst_67 = arith.constant 5.000000e-01 : f32
    %145 = vector.broadcast %cst_67 : f32 to vector<3x128xf32>
    %146 = arith.mulf %145, %144 : vector<3x128xf32>
    %cst_68 = arith.constant 5.000000e-01 : f32
    %147 = vector.broadcast %cst_68 : f32 to vector<3x128xf32>
    %148 = arith.addf %146, %147 : vector<3x128xf32>
    %149 = vector.extract_strided_slice %132 {offsets = [0, 256], sizes = [3, 128], strides = [1, 1]} : vector<3x512xf32> to vector<3x128xf32>
    %150 = math.tanh %149 : vector<3x128xf32>
    %151 = vector.extract_strided_slice %132 {offsets = [0, 384], sizes = [3, 128], strides = [1, 1]} : vector<3x512xf32> to vector<3x128xf32>
    %cst_69 = arith.constant 5.000000e-01 : f32
    %152 = vector.broadcast %cst_69 : f32 to vector<3x128xf32>
    %153 = arith.mulf %152, %151 : vector<3x128xf32>
    %154 = math.tanh %153 : vector<3x128xf32>
    %cst_70 = arith.constant 5.000000e-01 : f32
    %155 = vector.broadcast %cst_70 : f32 to vector<3x128xf32>
    %156 = arith.mulf %155, %154 : vector<3x128xf32>
    %cst_71 = arith.constant 5.000000e-01 : f32
    %157 = vector.broadcast %cst_71 : f32 to vector<3x128xf32>
    %158 = arith.addf %156, %157 : vector<3x128xf32>
    %159 = arith.mulf %148, %87 : vector<3x128xf32>
    %160 = arith.mulf %140, %150 : vector<3x128xf32>
    %161 = arith.addf %159, %160 : vector<3x128xf32>
    %162 = math.tanh %161 : vector<3x128xf32>
    %163 = arith.mulf %158, %162 : vector<3x128xf32>
    %164 = vector.extract_strided_slice %163 {offsets = [0, 0], sizes = [3, 20], strides = [1, 1]} : vector<3x128xf32> to vector<3x20xf32>
    %165 = vector.extract_strided_slice %5 {offsets = [6, 0], sizes = [3, 512], strides = [1, 1]} : vector<15x512xf32> to vector<3x512xf32>
    %c0_72 = arith.constant 0 : index
    %c0_73 = arith.constant 0 : index
    %166 = vector.load %arg4[%c0_72, %c0_73] : memref<20x512xf32, #tpu.memory_space<vmem>>, vector<20x512xf32>
    %cst_74 = arith.constant dense<0.000000e+00> : vector<3x512xf32>
    %167 = tpu.matmul %126, %166, %cst_74 {dimension_numbers = #tpu.dot_dimension_numbers<[1], [0], [0], [1], [0, 0, 1, 1], [], []>, precision = #tpu.contract_precision<fp32>} : vector<3x20xf32>, vector<20x512xf32>, vector<3x512xf32> -> vector<3x512xf32>
    %168 = arith.addf %165, %167 : vector<3x512xf32>
    %169 = vector.extract_strided_slice %168 {offsets = [0, 0], sizes = [3, 128], strides = [1, 1]} : vector<3x512xf32> to vector<3x128xf32>
    %cst_75 = arith.constant 5.000000e-01 : f32
    %170 = vector.broadcast %cst_75 : f32 to vector<3x128xf32>
    %171 = arith.mulf %170, %169 : vector<3x128xf32>
    %172 = math.tanh %171 : vector<3x128xf32>
    %cst_76 = arith.constant 5.000000e-01 : f32
    %173 = vector.broadcast %cst_76 : f32 to vector<3x128xf32>
    %174 = arith.mulf %173, %172 : vector<3x128xf32>
    %cst_77 = arith.constant 5.000000e-01 : f32
    %175 = vector.broadcast %cst_77 : f32 to vector<3x128xf32>
    %176 = arith.addf %174, %175 : vector<3x128xf32>
    %177 = vector.extract_strided_slice %168 {offsets = [0, 128], sizes = [3, 128], strides = [1, 1]} : vector<3x512xf32> to vector<3x128xf32>
    %cst_78 = arith.constant 5.000000e-01 : f32
    %178 = vector.broadcast %cst_78 : f32 to vector<3x128xf32>
    %179 = arith.mulf %178, %177 : vector<3x128xf32>
    %180 = math.tanh %179 : vector<3x128xf32>
    %cst_79 = arith.constant 5.000000e-01 : f32
    %181 = vector.broadcast %cst_79 : f32 to vector<3x128xf32>
    %182 = arith.mulf %181, %180 : vector<3x128xf32>
    %cst_80 = arith.constant 5.000000e-01 : f32
    %183 = vector.broadcast %cst_80 : f32 to vector<3x128xf32>
    %184 = arith.addf %182, %183 : vector<3x128xf32>
    %185 = vector.extract_strided_slice %168 {offsets = [0, 256], sizes = [3, 128], strides = [1, 1]} : vector<3x512xf32> to vector<3x128xf32>
    %186 = math.tanh %185 : vector<3x128xf32>
    %187 = vector.extract_strided_slice %168 {offsets = [0, 384], sizes = [3, 128], strides = [1, 1]} : vector<3x512xf32> to vector<3x128xf32>
    %cst_81 = arith.constant 5.000000e-01 : f32
    %188 = vector.broadcast %cst_81 : f32 to vector<3x128xf32>
    %189 = arith.mulf %188, %187 : vector<3x128xf32>
    %190 = math.tanh %189 : vector<3x128xf32>
    %cst_82 = arith.constant 5.000000e-01 : f32
    %191 = vector.broadcast %cst_82 : f32 to vector<3x128xf32>
    %192 = arith.mulf %191, %190 : vector<3x128xf32>
    %cst_83 = arith.constant 5.000000e-01 : f32
    %193 = vector.broadcast %cst_83 : f32 to vector<3x128xf32>
    %194 = arith.addf %192, %193 : vector<3x128xf32>
    %195 = arith.mulf %184, %123 : vector<3x128xf32>
    %196 = arith.mulf %176, %186 : vector<3x128xf32>
    %197 = arith.addf %195, %196 : vector<3x128xf32>
    %198 = math.tanh %197 : vector<3x128xf32>
    %199 = arith.mulf %194, %198 : vector<3x128xf32>
    %200 = vector.extract_strided_slice %199 {offsets = [0, 0], sizes = [3, 20], strides = [1, 1]} : vector<3x128xf32> to vector<3x20xf32>
    %c0_84 = arith.constant 0 : index
    %c0_85 = arith.constant 0 : index
    %201 = vector.load %arg6[%c0_84, %c0_85] : memref<20x512xf32, #tpu.memory_space<vmem>>, vector<20x512xf32>
    %cst_86 = arith.constant dense<0.000000e+00> : vector<3x512xf32>
    %202 = tpu.matmul %200, %201, %cst_86 {dimension_numbers = #tpu.dot_dimension_numbers<[1], [0], [0], [1], [0, 0, 1, 1], [], []>, precision = #tpu.contract_precision<fp32>} : vector<3x20xf32>, vector<20x512xf32>, vector<3x512xf32> -> vector<3x512xf32>
    %c0_87 = arith.constant 0 : index
    %c0_88 = arith.constant 0 : index
    %203 = vector.load %arg7[%c0_87, %c0_88] : memref<20x512xf32, #tpu.memory_space<vmem>>, vector<20x512xf32>
    %cst_89 = arith.constant dense<0.000000e+00> : vector<3x512xf32>
    %204 = tpu.matmul %164, %203, %cst_89 {dimension_numbers = #tpu.dot_dimension_numbers<[1], [0], [0], [1], [0, 0, 1, 1], [], []>, precision = #tpu.contract_precision<fp32>} : vector<3x20xf32>, vector<20x512xf32>, vector<3x512xf32> -> vector<3x512xf32>
    %205 = arith.addf %202, %204 : vector<3x512xf32>
    %206 = arith.addf %205, %8 : vector<3x512xf32>
    %207 = vector.extract_strided_slice %206 {offsets = [0, 0], sizes = [3, 128], strides = [1, 1]} : vector<3x512xf32> to vector<3x128xf32>
    %cst_90 = arith.constant 5.000000e-01 : f32
    %208 = vector.broadcast %cst_90 : f32 to vector<3x128xf32>
    %209 = arith.mulf %208, %207 : vector<3x128xf32>
    %210 = math.tanh %209 : vector<3x128xf32>
    %cst_91 = arith.constant 5.000000e-01 : f32
    %211 = vector.broadcast %cst_91 : f32 to vector<3x128xf32>
    %212 = arith.mulf %211, %210 : vector<3x128xf32>
    %cst_92 = arith.constant 5.000000e-01 : f32
    %213 = vector.broadcast %cst_92 : f32 to vector<3x128xf32>
    %214 = arith.addf %212, %213 : vector<3x128xf32>
    %215 = vector.extract_strided_slice %206 {offsets = [0, 128], sizes = [3, 128], strides = [1, 1]} : vector<3x512xf32> to vector<3x128xf32>
    %cst_93 = arith.constant 5.000000e-01 : f32
    %216 = vector.broadcast %cst_93 : f32 to vector<3x128xf32>
    %217 = arith.mulf %216, %215 : vector<3x128xf32>
    %218 = math.tanh %217 : vector<3x128xf32>
    %cst_94 = arith.constant 5.000000e-01 : f32
    %219 = vector.broadcast %cst_94 : f32 to vector<3x128xf32>
    %220 = arith.mulf %219, %218 : vector<3x128xf32>
    %cst_95 = arith.constant 5.000000e-01 : f32
    %221 = vector.broadcast %cst_95 : f32 to vector<3x128xf32>
    %222 = arith.addf %220, %221 : vector<3x128xf32>
    %223 = vector.extract_strided_slice %206 {offsets = [0, 256], sizes = [3, 128], strides = [1, 1]} : vector<3x512xf32> to vector<3x128xf32>
    %224 = math.tanh %223 : vector<3x128xf32>
    %225 = vector.extract_strided_slice %206 {offsets = [0, 384], sizes = [3, 128], strides = [1, 1]} : vector<3x512xf32> to vector<3x128xf32>
    %cst_96 = arith.constant 5.000000e-01 : f32
    %226 = vector.broadcast %cst_96 : f32 to vector<3x128xf32>
    %227 = arith.mulf %226, %225 : vector<3x128xf32>
    %228 = math.tanh %227 : vector<3x128xf32>
    %cst_97 = arith.constant 5.000000e-01 : f32
    %229 = vector.broadcast %cst_97 : f32 to vector<3x128xf32>
    %230 = arith.mulf %229, %228 : vector<3x128xf32>
    %cst_98 = arith.constant 5.000000e-01 : f32
    %231 = vector.broadcast %cst_98 : f32 to vector<3x128xf32>
    %232 = arith.addf %230, %231 : vector<3x128xf32>
    %233 = arith.mulf %222, %161 : vector<3x128xf32>
    %234 = arith.mulf %214, %224 : vector<3x128xf32>
    %235 = arith.addf %233, %234 : vector<3x128xf32>
    %236 = math.tanh %235 : vector<3x128xf32>
    %237 = arith.mulf %232, %236 : vector<3x128xf32>
    %238 = vector.extract_strided_slice %237 {offsets = [0, 0], sizes = [3, 20], strides = [1, 1]} : vector<3x128xf32> to vector<3x20xf32>
    %239 = vector.extract_strided_slice %5 {offsets = [9, 0], sizes = [3, 512], strides = [1, 1]} : vector<15x512xf32> to vector<3x512xf32>
    %c0_99 = arith.constant 0 : index
    %c0_100 = arith.constant 0 : index
    %240 = vector.load %arg4[%c0_99, %c0_100] : memref<20x512xf32, #tpu.memory_space<vmem>>, vector<20x512xf32>
    %cst_101 = arith.constant dense<0.000000e+00> : vector<3x512xf32>
    %241 = tpu.matmul %200, %240, %cst_101 {dimension_numbers = #tpu.dot_dimension_numbers<[1], [0], [0], [1], [0, 0, 1, 1], [], []>, precision = #tpu.contract_precision<fp32>} : vector<3x20xf32>, vector<20x512xf32>, vector<3x512xf32> -> vector<3x512xf32>
    %242 = arith.addf %239, %241 : vector<3x512xf32>
    %243 = vector.extract_strided_slice %242 {offsets = [0, 0], sizes = [3, 128], strides = [1, 1]} : vector<3x512xf32> to vector<3x128xf32>
    %cst_102 = arith.constant 5.000000e-01 : f32
    %244 = vector.broadcast %cst_102 : f32 to vector<3x128xf32>
    %245 = arith.mulf %244, %243 : vector<3x128xf32>
    %246 = math.tanh %245 : vector<3x128xf32>
    %cst_103 = arith.constant 5.000000e-01 : f32
    %247 = vector.broadcast %cst_103 : f32 to vector<3x128xf32>
    %248 = arith.mulf %247, %246 : vector<3x128xf32>
    %cst_104 = arith.constant 5.000000e-01 : f32
    %249 = vector.broadcast %cst_104 : f32 to vector<3x128xf32>
    %250 = arith.addf %248, %249 : vector<3x128xf32>
    %251 = vector.extract_strided_slice %242 {offsets = [0, 128], sizes = [3, 128], strides = [1, 1]} : vector<3x512xf32> to vector<3x128xf32>
    %cst_105 = arith.constant 5.000000e-01 : f32
    %252 = vector.broadcast %cst_105 : f32 to vector<3x128xf32>
    %253 = arith.mulf %252, %251 : vector<3x128xf32>
    %254 = math.tanh %253 : vector<3x128xf32>
    %cst_106 = arith.constant 5.000000e-01 : f32
    %255 = vector.broadcast %cst_106 : f32 to vector<3x128xf32>
    %256 = arith.mulf %255, %254 : vector<3x128xf32>
    %cst_107 = arith.constant 5.000000e-01 : f32
    %257 = vector.broadcast %cst_107 : f32 to vector<3x128xf32>
    %258 = arith.addf %256, %257 : vector<3x128xf32>
    %259 = vector.extract_strided_slice %242 {offsets = [0, 256], sizes = [3, 128], strides = [1, 1]} : vector<3x512xf32> to vector<3x128xf32>
    %260 = math.tanh %259 : vector<3x128xf32>
    %261 = vector.extract_strided_slice %242 {offsets = [0, 384], sizes = [3, 128], strides = [1, 1]} : vector<3x512xf32> to vector<3x128xf32>
    %cst_108 = arith.constant 5.000000e-01 : f32
    %262 = vector.broadcast %cst_108 : f32 to vector<3x128xf32>
    %263 = arith.mulf %262, %261 : vector<3x128xf32>
    %264 = math.tanh %263 : vector<3x128xf32>
    %cst_109 = arith.constant 5.000000e-01 : f32
    %265 = vector.broadcast %cst_109 : f32 to vector<3x128xf32>
    %266 = arith.mulf %265, %264 : vector<3x128xf32>
    %cst_110 = arith.constant 5.000000e-01 : f32
    %267 = vector.broadcast %cst_110 : f32 to vector<3x128xf32>
    %268 = arith.addf %266, %267 : vector<3x128xf32>
    %269 = arith.mulf %258, %197 : vector<3x128xf32>
    %270 = arith.mulf %250, %260 : vector<3x128xf32>
    %271 = arith.addf %269, %270 : vector<3x128xf32>
    %272 = math.tanh %271 : vector<3x128xf32>
    %273 = arith.mulf %268, %272 : vector<3x128xf32>
    %274 = vector.extract_strided_slice %273 {offsets = [0, 0], sizes = [3, 20], strides = [1, 1]} : vector<3x128xf32> to vector<3x20xf32>
    %c0_111 = arith.constant 0 : index
    %c0_112 = arith.constant 0 : index
    %275 = vector.load %arg6[%c0_111, %c0_112] : memref<20x512xf32, #tpu.memory_space<vmem>>, vector<20x512xf32>
    %cst_113 = arith.constant dense<0.000000e+00> : vector<3x512xf32>
    %276 = tpu.matmul %274, %275, %cst_113 {dimension_numbers = #tpu.dot_dimension_numbers<[1], [0], [0], [1], [0, 0, 1, 1], [], []>, precision = #tpu.contract_precision<fp32>} : vector<3x20xf32>, vector<20x512xf32>, vector<3x512xf32> -> vector<3x512xf32>
    %c0_114 = arith.constant 0 : index
    %c0_115 = arith.constant 0 : index
    %277 = vector.load %arg7[%c0_114, %c0_115] : memref<20x512xf32, #tpu.memory_space<vmem>>, vector<20x512xf32>
    %cst_116 = arith.constant dense<0.000000e+00> : vector<3x512xf32>
    %278 = tpu.matmul %238, %277, %cst_116 {dimension_numbers = #tpu.dot_dimension_numbers<[1], [0], [0], [1], [0, 0, 1, 1], [], []>, precision = #tpu.contract_precision<fp32>} : vector<3x20xf32>, vector<20x512xf32>, vector<3x512xf32> -> vector<3x512xf32>
    %279 = arith.addf %276, %278 : vector<3x512xf32>
    %280 = arith.addf %279, %8 : vector<3x512xf32>
    %281 = vector.extract_strided_slice %280 {offsets = [0, 0], sizes = [3, 128], strides = [1, 1]} : vector<3x512xf32> to vector<3x128xf32>
    %cst_117 = arith.constant 5.000000e-01 : f32
    %282 = vector.broadcast %cst_117 : f32 to vector<3x128xf32>
    %283 = arith.mulf %282, %281 : vector<3x128xf32>
    %284 = math.tanh %283 : vector<3x128xf32>
    %cst_118 = arith.constant 5.000000e-01 : f32
    %285 = vector.broadcast %cst_118 : f32 to vector<3x128xf32>
    %286 = arith.mulf %285, %284 : vector<3x128xf32>
    %cst_119 = arith.constant 5.000000e-01 : f32
    %287 = vector.broadcast %cst_119 : f32 to vector<3x128xf32>
    %288 = arith.addf %286, %287 : vector<3x128xf32>
    %289 = vector.extract_strided_slice %280 {offsets = [0, 128], sizes = [3, 128], strides = [1, 1]} : vector<3x512xf32> to vector<3x128xf32>
    %cst_120 = arith.constant 5.000000e-01 : f32
    %290 = vector.broadcast %cst_120 : f32 to vector<3x128xf32>
    %291 = arith.mulf %290, %289 : vector<3x128xf32>
    %292 = math.tanh %291 : vector<3x128xf32>
    %cst_121 = arith.constant 5.000000e-01 : f32
    %293 = vector.broadcast %cst_121 : f32 to vector<3x128xf32>
    %294 = arith.mulf %293, %292 : vector<3x128xf32>
    %cst_122 = arith.constant 5.000000e-01 : f32
    %295 = vector.broadcast %cst_122 : f32 to vector<3x128xf32>
    %296 = arith.addf %294, %295 : vector<3x128xf32>
    %297 = vector.extract_strided_slice %280 {offsets = [0, 256], sizes = [3, 128], strides = [1, 1]} : vector<3x512xf32> to vector<3x128xf32>
    %298 = math.tanh %297 : vector<3x128xf32>
    %299 = vector.extract_strided_slice %280 {offsets = [0, 384], sizes = [3, 128], strides = [1, 1]} : vector<3x512xf32> to vector<3x128xf32>
    %cst_123 = arith.constant 5.000000e-01 : f32
    %300 = vector.broadcast %cst_123 : f32 to vector<3x128xf32>
    %301 = arith.mulf %300, %299 : vector<3x128xf32>
    %302 = math.tanh %301 : vector<3x128xf32>
    %cst_124 = arith.constant 5.000000e-01 : f32
    %303 = vector.broadcast %cst_124 : f32 to vector<3x128xf32>
    %304 = arith.mulf %303, %302 : vector<3x128xf32>
    %cst_125 = arith.constant 5.000000e-01 : f32
    %305 = vector.broadcast %cst_125 : f32 to vector<3x128xf32>
    %306 = arith.addf %304, %305 : vector<3x128xf32>
    %307 = arith.mulf %296, %235 : vector<3x128xf32>
    %308 = arith.mulf %288, %298 : vector<3x128xf32>
    %309 = arith.addf %307, %308 : vector<3x128xf32>
    %310 = math.tanh %309 : vector<3x128xf32>
    %311 = arith.mulf %306, %310 : vector<3x128xf32>
    %312 = vector.extract_strided_slice %311 {offsets = [0, 0], sizes = [3, 20], strides = [1, 1]} : vector<3x128xf32> to vector<3x20xf32>
    %313 = vector.extract_strided_slice %5 {offsets = [12, 0], sizes = [3, 512], strides = [1, 1]} : vector<15x512xf32> to vector<3x512xf32>
    %c0_126 = arith.constant 0 : index
    %c0_127 = arith.constant 0 : index
    %314 = vector.load %arg4[%c0_126, %c0_127] : memref<20x512xf32, #tpu.memory_space<vmem>>, vector<20x512xf32>
    %cst_128 = arith.constant dense<0.000000e+00> : vector<3x512xf32>
    %315 = tpu.matmul %274, %314, %cst_128 {dimension_numbers = #tpu.dot_dimension_numbers<[1], [0], [0], [1], [0, 0, 1, 1], [], []>, precision = #tpu.contract_precision<fp32>} : vector<3x20xf32>, vector<20x512xf32>, vector<3x512xf32> -> vector<3x512xf32>
    %316 = arith.addf %313, %315 : vector<3x512xf32>
    %317 = vector.extract_strided_slice %316 {offsets = [0, 0], sizes = [3, 128], strides = [1, 1]} : vector<3x512xf32> to vector<3x128xf32>
    %cst_129 = arith.constant 5.000000e-01 : f32
    %318 = vector.broadcast %cst_129 : f32 to vector<3x128xf32>
    %319 = arith.mulf %318, %317 : vector<3x128xf32>
    %320 = math.tanh %319 : vector<3x128xf32>
    %cst_130 = arith.constant 5.000000e-01 : f32
    %321 = vector.broadcast %cst_130 : f32 to vector<3x128xf32>
    %322 = arith.mulf %321, %320 : vector<3x128xf32>
    %cst_131 = arith.constant 5.000000e-01 : f32
    %323 = vector.broadcast %cst_131 : f32 to vector<3x128xf32>
    %324 = arith.addf %322, %323 : vector<3x128xf32>
    %325 = vector.extract_strided_slice %316 {offsets = [0, 128], sizes = [3, 128], strides = [1, 1]} : vector<3x512xf32> to vector<3x128xf32>
    %cst_132 = arith.constant 5.000000e-01 : f32
    %326 = vector.broadcast %cst_132 : f32 to vector<3x128xf32>
    %327 = arith.mulf %326, %325 : vector<3x128xf32>
    %328 = math.tanh %327 : vector<3x128xf32>
    %cst_133 = arith.constant 5.000000e-01 : f32
    %329 = vector.broadcast %cst_133 : f32 to vector<3x128xf32>
    %330 = arith.mulf %329, %328 : vector<3x128xf32>
    %cst_134 = arith.constant 5.000000e-01 : f32
    %331 = vector.broadcast %cst_134 : f32 to vector<3x128xf32>
    %332 = arith.addf %330, %331 : vector<3x128xf32>
    %333 = vector.extract_strided_slice %316 {offsets = [0, 256], sizes = [3, 128], strides = [1, 1]} : vector<3x512xf32> to vector<3x128xf32>
    %334 = math.tanh %333 : vector<3x128xf32>
    %335 = vector.extract_strided_slice %316 {offsets = [0, 384], sizes = [3, 128], strides = [1, 1]} : vector<3x512xf32> to vector<3x128xf32>
    %cst_135 = arith.constant 5.000000e-01 : f32
    %336 = vector.broadcast %cst_135 : f32 to vector<3x128xf32>
    %337 = arith.mulf %336, %335 : vector<3x128xf32>
    %338 = math.tanh %337 : vector<3x128xf32>
    %cst_136 = arith.constant 5.000000e-01 : f32
    %339 = vector.broadcast %cst_136 : f32 to vector<3x128xf32>
    %340 = arith.mulf %339, %338 : vector<3x128xf32>
    %cst_137 = arith.constant 5.000000e-01 : f32
    %341 = vector.broadcast %cst_137 : f32 to vector<3x128xf32>
    %342 = arith.addf %340, %341 : vector<3x128xf32>
    %343 = arith.mulf %332, %271 : vector<3x128xf32>
    %344 = arith.mulf %324, %334 : vector<3x128xf32>
    %345 = arith.addf %343, %344 : vector<3x128xf32>
    %346 = math.tanh %345 : vector<3x128xf32>
    %347 = arith.mulf %342, %346 : vector<3x128xf32>
    %348 = vector.extract_strided_slice %347 {offsets = [0, 0], sizes = [3, 20], strides = [1, 1]} : vector<3x128xf32> to vector<3x20xf32>
    %c0_138 = arith.constant 0 : index
    %c0_139 = arith.constant 0 : index
    %349 = vector.load %arg6[%c0_138, %c0_139] : memref<20x512xf32, #tpu.memory_space<vmem>>, vector<20x512xf32>
    %cst_140 = arith.constant dense<0.000000e+00> : vector<3x512xf32>
    %350 = tpu.matmul %348, %349, %cst_140 {dimension_numbers = #tpu.dot_dimension_numbers<[1], [0], [0], [1], [0, 0, 1, 1], [], []>, precision = #tpu.contract_precision<fp32>} : vector<3x20xf32>, vector<20x512xf32>, vector<3x512xf32> -> vector<3x512xf32>
    %c0_141 = arith.constant 0 : index
    %c0_142 = arith.constant 0 : index
    %351 = vector.load %arg7[%c0_141, %c0_142] : memref<20x512xf32, #tpu.memory_space<vmem>>, vector<20x512xf32>
    %cst_143 = arith.constant dense<0.000000e+00> : vector<3x512xf32>
    %352 = tpu.matmul %312, %351, %cst_143 {dimension_numbers = #tpu.dot_dimension_numbers<[1], [0], [0], [1], [0, 0, 1, 1], [], []>, precision = #tpu.contract_precision<fp32>} : vector<3x20xf32>, vector<20x512xf32>, vector<3x512xf32> -> vector<3x512xf32>
    %353 = arith.addf %350, %352 : vector<3x512xf32>
    %354 = arith.addf %353, %8 : vector<3x512xf32>
    %355 = vector.extract_strided_slice %354 {offsets = [0, 0], sizes = [3, 128], strides = [1, 1]} : vector<3x512xf32> to vector<3x128xf32>
    %cst_144 = arith.constant 5.000000e-01 : f32
    %356 = vector.broadcast %cst_144 : f32 to vector<3x128xf32>
    %357 = arith.mulf %356, %355 : vector<3x128xf32>
    %358 = math.tanh %357 : vector<3x128xf32>
    %cst_145 = arith.constant 5.000000e-01 : f32
    %359 = vector.broadcast %cst_145 : f32 to vector<3x128xf32>
    %360 = arith.mulf %359, %358 : vector<3x128xf32>
    %cst_146 = arith.constant 5.000000e-01 : f32
    %361 = vector.broadcast %cst_146 : f32 to vector<3x128xf32>
    %362 = arith.addf %360, %361 : vector<3x128xf32>
    %363 = vector.extract_strided_slice %354 {offsets = [0, 128], sizes = [3, 128], strides = [1, 1]} : vector<3x512xf32> to vector<3x128xf32>
    %cst_147 = arith.constant 5.000000e-01 : f32
    %364 = vector.broadcast %cst_147 : f32 to vector<3x128xf32>
    %365 = arith.mulf %364, %363 : vector<3x128xf32>
    %366 = math.tanh %365 : vector<3x128xf32>
    %cst_148 = arith.constant 5.000000e-01 : f32
    %367 = vector.broadcast %cst_148 : f32 to vector<3x128xf32>
    %368 = arith.mulf %367, %366 : vector<3x128xf32>
    %cst_149 = arith.constant 5.000000e-01 : f32
    %369 = vector.broadcast %cst_149 : f32 to vector<3x128xf32>
    %370 = arith.addf %368, %369 : vector<3x128xf32>
    %371 = vector.extract_strided_slice %354 {offsets = [0, 256], sizes = [3, 128], strides = [1, 1]} : vector<3x512xf32> to vector<3x128xf32>
    %372 = math.tanh %371 : vector<3x128xf32>
    %373 = vector.extract_strided_slice %354 {offsets = [0, 384], sizes = [3, 128], strides = [1, 1]} : vector<3x512xf32> to vector<3x128xf32>
    %cst_150 = arith.constant 5.000000e-01 : f32
    %374 = vector.broadcast %cst_150 : f32 to vector<3x128xf32>
    %375 = arith.mulf %374, %373 : vector<3x128xf32>
    %376 = math.tanh %375 : vector<3x128xf32>
    %cst_151 = arith.constant 5.000000e-01 : f32
    %377 = vector.broadcast %cst_151 : f32 to vector<3x128xf32>
    %378 = arith.mulf %377, %376 : vector<3x128xf32>
    %cst_152 = arith.constant 5.000000e-01 : f32
    %379 = vector.broadcast %cst_152 : f32 to vector<3x128xf32>
    %380 = arith.addf %378, %379 : vector<3x128xf32>
    %381 = arith.mulf %370, %309 : vector<3x128xf32>
    %382 = arith.mulf %362, %372 : vector<3x128xf32>
    %383 = arith.addf %381, %382 : vector<3x128xf32>
    %384 = math.tanh %383 : vector<3x128xf32>
    %385 = arith.mulf %380, %384 : vector<3x128xf32>
    %386 = vector.extract_strided_slice %385 {offsets = [0, 0], sizes = [3, 20], strides = [1, 1]} : vector<3x128xf32> to vector<3x20xf32>
    %c0_153 = arith.constant 0 : index
    %c0_154 = arith.constant 0 : index
    %c0_155 = arith.constant 0 : index
    %387 = vector.load %arg9[%c0_153, %c0_154, %c0_155] : memref<5x3x20xf32, #tpu.memory_space<vmem>>, vector<1x3x20xf32>
    %388 = vector.shape_cast %387 : vector<1x3x20xf32> to vector<3x20xf32>
    %389 = vector.shape_cast %90 : vector<3x20xf32> to vector<1x3x20xf32>
    tpu.vector_store %arg9[%c0_153, %c0_154, %c0_155], %389 {strides = array<i32>} : memref<5x3x20xf32, #tpu.memory_space<vmem>>, vector<1x3x20xf32>,
    %c1_156 = arith.constant 1 : index
    %c0_157 = arith.constant 0 : index
    %c0_158 = arith.constant 0 : index
    %390 = vector.load %arg9[%c1_156, %c0_157, %c0_158] : memref<5x3x20xf32, #tpu.memory_space<vmem>>, vector<1x3x20xf32>
    %391 = vector.shape_cast %390 : vector<1x3x20xf32> to vector<3x20xf32>
    %392 = vector.shape_cast %164 : vector<3x20xf32> to vector<1x3x20xf32>
    tpu.vector_store %arg9[%c1_156, %c0_157, %c0_158], %392 {strides = array<i32>} : memref<5x3x20xf32, #tpu.memory_space<vmem>>, vector<1x3x20xf32>,
    %c2 = arith.constant 2 : index
    %c0_159 = arith.constant 0 : index
    %c0_160 = arith.constant 0 : index
    %393 = vector.load %arg9[%c2, %c0_159, %c0_160] : memref<5x3x20xf32, #tpu.memory_space<vmem>>, vector<1x3x20xf32>
    %394 = vector.shape_cast %393 : vector<1x3x20xf32> to vector<3x20xf32>
    %395 = vector.shape_cast %238 : vector<3x20xf32> to vector<1x3x20xf32>
    tpu.vector_store %arg9[%c2, %c0_159, %c0_160], %395 {strides = array<i32>} : memref<5x3x20xf32, #tpu.memory_space<vmem>>, vector<1x3x20xf32>,
    %c3 = arith.constant 3 : index
    %c0_161 = arith.constant 0 : index
    %c0_162 = arith.constant 0 : index
    %396 = vector.load %arg9[%c3, %c0_161, %c0_162] : memref<5x3x20xf32, #tpu.memory_space<vmem>>, vector<1x3x20xf32>
    %397 = vector.shape_cast %396 : vector<1x3x20xf32> to vector<3x20xf32>
    %398 = vector.shape_cast %312 : vector<3x20xf32> to vector<1x3x20xf32>
    tpu.vector_store %arg9[%c3, %c0_161, %c0_162], %398 {strides = array<i32>} : memref<5x3x20xf32, #tpu.memory_space<vmem>>, vector<1x3x20xf32>,
    %c4 = arith.constant 4 : index
    %c0_163 = arith.constant 0 : index
    %c0_164 = arith.constant 0 : index
    %399 = vector.load %arg9[%c4, %c0_163, %c0_164] : memref<5x3x20xf32, #tpu.memory_space<vmem>>, vector<1x3x20xf32>
    %400 = vector.shape_cast %399 : vector<1x3x20xf32> to vector<3x20xf32>
    %401 = vector.shape_cast %386 : vector<3x20xf32> to vector<1x3x20xf32>
    tpu.vector_store %arg9[%c4, %c0_163, %c0_164], %401 {strides = array<i32>} : memref<5x3x20xf32, #tpu.memory_space<vmem>>, vector<1x3x20xf32>,
    %c0_165 = arith.constant 0 : index
    %c0_166 = arith.constant 0 : index
    %c0_167 = arith.constant 0 : index
    %402 = vector.load %arg10[%c0_165, %c0_166, %c0_167] : memref<2x3x20xf32, #tpu.memory_space<vmem>>, vector<1x3x20xf32>
    %403 = vector.shape_cast %402 : vector<1x3x20xf32> to vector<3x20xf32>
    %404 = vector.shape_cast %348 : vector<3x20xf32> to vector<1x3x20xf32>
    tpu.vector_store %arg10[%c0_165, %c0_166, %c0_167], %404 {strides = array<i32>} : memref<2x3x20xf32, #tpu.memory_space<vmem>>, vector<1x3x20xf32>,
    %405 = vector.extract_strided_slice %345 {offsets = [0, 0], sizes = [3, 20], strides = [1, 1]} : vector<3x128xf32> to vector<3x20xf32>
    %c0_168 = arith.constant 0 : index
    %c0_169 = arith.constant 0 : index
    %c0_170 = arith.constant 0 : index
    %406 = vector.load %arg11[%c0_168, %c0_169, %c0_170] : memref<2x3x20xf32, #tpu.memory_space<vmem>>, vector<1x3x20xf32>
    %407 = vector.shape_cast %406 : vector<1x3x20xf32> to vector<3x20xf32>
    %408 = vector.shape_cast %405 : vector<3x20xf32> to vector<1x3x20xf32>
    tpu.vector_store %arg11[%c0_168, %c0_169, %c0_170], %408 {strides = array<i32>} : memref<2x3x20xf32, #tpu.memory_space<vmem>>, vector<1x3x20xf32>,
    %c1_171 = arith.constant 1 : index
    %c0_172 = arith.constant 0 : index
    %c0_173 = arith.constant 0 : index
    %409 = vector.load %arg10[%c1_171, %c0_172, %c0_173] : memref<2x3x20xf32, #tpu.memory_space<vmem>>, vector<1x3x20xf32>
    %410 = vector.shape_cast %409 : vector<1x3x20xf32> to vector<3x20xf32>
    %411 = vector.shape_cast %386 : vector<3x20xf32> to vector<1x3x20xf32>
    tpu.vector_store %arg10[%c1_171, %c0_172, %c0_173], %411 {strides = array<i32>} : memref<2x3x20xf32, #tpu.memory_space<vmem>>, vector<1x3x20xf32>,
    %412 = vector.extract_strided_slice %383 {offsets = [0, 0], sizes = [3, 20], strides = [1, 1]} : vector<3x128xf32> to vector<3x20xf32>
    %c1_174 = arith.constant 1 : index
    %c0_175 = arith.constant 0 : index
    %c0_176 = arith.constant 0 : index
    %413 = vector.load %arg11[%c1_174, %c0_175, %c0_176] : memref<2x3x20xf32, #tpu.memory_space<vmem>>, vector<1x3x20xf32>
    %414 = vector.shape_cast %413 : vector<1x3x20xf32> to vector<3x20xf32>
    %415 = vector.shape_cast %412 : vector<3x20xf32> to vector<1x3x20xf32>
    tpu.vector_store %arg11[%c1_174, %c0_175, %c0_176], %415 {strides = array<i32>} : memref<2x3x20xf32, #tpu.memory_space<vmem>>, vector<1x3x20xf32>,
    return
  }
}

</mosaic_0001>

<bundles_post_ra>
// kernel: basic_lstm_pallas.1
= control target key start
LH: loop header
LB: loop body
LE: loop exit
PB: predicated region body
PF: predicated region fallthrough
CT: control target
= control target key end

     0   :  { %vm75_vm0 = vcmask 1041408   ;;  %v20593_v8 = vmov 0.0   ;;  %vm68_vm1 = vcmask 80896   ;;  %s20581_s0 = inlined_call_operand.vmem [shape: f32[15,10], index: 0, kind: input, shape index: {}]   ;;  %s20582_s1 = inlined_call_operand.vmem [shape: f32[2,3,20], index: 1, kind: input, shape index: {}]   ;;  %s20583_s2 = inlined_call_operand.vmem [shape: f32[2,3,128], index: 2, kind: input, shape index: {}]   ;;  %s20584_s3 = inlined_call_operand.vmem [shape: f32[10,512], index: 3, kind: input, shape index: {}]   ;;  %s20585_s4 = inlined_call_operand.vmem [shape: f32[20,512], index: 4, kind: input, shape index: {}]   ;;  %s20586_s5 = inlined_call_operand.vmem [shape: f32[1,512], index: 5, kind: input, shape index: {}]   ;;  %s20587_s6 = inlined_call_operand.vmem [shape: f32[20,512], index: 6, kind: input, shape index: {}]   ;;  %s20588_s7 = inlined_call_operand.vmem [shape: f32[20,512], index: 7, kind: input, shape index: {}]   ;;  %s20589_s8 = inlined_call_operand.vmem [shape: f32[1,512], index: 8, kind: input, shape index: {}]   ;;  %s20590_s9 = inlined_call_operand.hbm [shape: f32[5,3,20], index: 9, kind: output, shape index: {0}]   ;;  %s20591_s10 = inlined_call_operand.vmem [shape: f32[2,3,20], index: 10, kind: output, shape index: {1}]   ;;  %s20592_s11 = inlined_call_operand.vmem [shape: f32[2,3,20], index: 11, kind: output, shape index: {2}]  }
   0x1   :  { %v39_v0 = vld [vmem:[%s20584_s3 + $0x8] sm:$0xff]  ;;  %v41_v2 = vld [vmem:[%s20584_s3 + $0x18] sm:$0xff]  ;;  %v38_v7 = vld [vmem:[%s20584_s3] sm:$0xff]  ;;  %156 = vmatprep.mubr.f32.mxu0 %v20593_v8  ;;  %696 = vmatprep.mubr.f32.mxu1 %v20593_v8 }
   0x2   :  { %v43_v1 = vld [vmem:[%s20584_s3 + $0x28] sm:$0x3]  ;;  %v88_v4 = vand.u32 4294901760, %v39_v0  ;;  %v45_v5 = vld [vmem:[%s20584_s3 + $0x38] sm:$0x3]  ;;  %v628_v6 = vand.u32 4294901760, %v41_v2 }
   0x3   :  { %v80_v3 = vsel %vm75_vm0, %v43_v1, 0  ;;  %v86_v10 = vsel %vm75_vm0, %v45_v5, 0  ;;  %v42_v11 = vld [vmem:[%s20584_s3 + $0x20] sm:$0x3]  ;;  %v90_v12 = vand.u32 4294901760, %v38_v7  ;;  %v40_v13 = vld [vmem:[%s20584_s3 + $0x10] sm:$0xff] }
   0x4   :  { %v92_v9 = vand.u32 4294901760, %v80_v3  ;;  %v18534_v14 = vsub.f32 %v39_v0, %v88_v4  ;;  %v632_v15 = vand.u32 4294901760, %v86_v10  ;;  %v18536_v16 = vsub.f32 %v41_v2, %v628_v6  ;;  %v44_v18 = vld [vmem:[%s20584_s3 + $0x30] sm:$0x3]  ;;  %v36_v23 = vld [vmem:[%s20581_s0] sm:$0xff] }
   0x5   :  { %v77_v17 = vsel %vm75_vm0, %v42_v11, 0  ;;  %v18546_v22 = vsub.f32 %v38_v7, %v90_v12  ;;  %v83_v26 = vsel %vm75_vm0, %v44_v18, 0  ;;  %v630_v27 = vand.u32 4294901760, %v40_v13  ;;  %v37_v31 = vld [vmem:[%s20581_s0 + $0x8] sm:$0x7f] }
   0x6   :  { %v18542_v19 = vpack.c.bf16 %v92_v9, %v88_v4  ;;  %v18544_v20 = vsub.f32 %v80_v3, %v92_v9  ;;  %v94_v21 = vand.u32 4294901760, %v77_v17  ;;  %v18551_v24 = vpack.c.bf16 %v632_v15, %v628_v6 }
   0x7   :  { %v18553_v25 = vsub.f32 %v86_v10, %v632_v15  ;;  %v634_v30 = vand.u32 4294901760, %v83_v26  ;;  %v18565_v32 = vsub.f32 %v40_v13, %v630_v27  ;;  %v70_v33 = vsel %vm68_vm1, %v36_v23, 0 }
   0x8   :  { %17172 = vmatprep.subr.bf16.mxu0 %v18542_v19  ;;  %v18557_v28 = vpack.c.bf16 %v94_v21, %v90_v12  ;;  %v18559_v29 = vsub.f32 %v77_v17, %v94_v21  ;;  %17196 = vmatprep.subr.bf16.mxu1 %v18551_v24  ;;  %v181_v34 = vand.u32 4294901760, %v18534_v14  ;;  %v193_v35 = vand.u32 4294901760, %v18544_v20 }
   0x9   :  { %v18570_v36 = vpack.c.bf16 %v634_v30, %v630_v27  ;;  %v18572_v37 = vsub.f32 %v83_v26, %v634_v30  ;;  %v18574_v38 = vand.u32 4294901760, %v70_v33  ;;  %v187_v39 = vand.u32 4294901760, %v18546_v22 }
   0xa   :  { %17174 = vmatpush1.bf16.msra.mxu0 %v18557_v28  ;;  %v182_v40 = vsub.f32 %v18534_v14, %v181_v34  ;;  %v194_v41 = vsub.f32 %v18544_v20, %v193_v35  ;;  %v199_v42 = vand.u32 4294901760, %v18559_v29  ;;  %v73_v43 = vsel %vm68_vm1, %v37_v31, 0 }
   0xb   :  { %17198 = vmatpush1.bf16.msra.mxu1 %v18570_v36  ;;  %v18586_v44 = vsub.f32 %v70_v33, %v18574_v38  ;;  %v188_v45 = vsub.f32 %v18546_v22, %v187_v39  ;;  %v18591_v46 = vand.u32 4294901760, %v73_v43  ;;  %v721_v47 = vand.u32 4294901760, %v18536_v16 }
   0xc   :  { %17 = vsyncpa [#allocation3], 0  ;;  %v183_v48 = vand.u32 4294901760, %v182_v40  ;;  %v195_v49 = vand.u32 4294901760, %v194_v41  ;;  %v200_v50 = vsub.f32 %v18559_v29, %v199_v42  ;;  %v733_v51 = vand.u32 4294901760, %v18553_v25  ;;  %v1199_v21 = vld [vmem:[%s20585_s4 + $0x18] sm:$0xff] }
   0xd   :  { %v18599_v52 = vand.u32 4294901760, %v18586_v44  ;;  %v189_v53 = vand.u32 4294901760, %v188_v45  ;;  %v169_v54 = vsub.f32 %v73_v43, %v18591_v46  ;;  %v722_v55 = vsub.f32 %v18536_v16, %v721_v47  ;;  %v1203_v23 = vld [vmem:[%s20585_s4 + $0x38] sm:$0xff]  ;;  %v18670_v26 = vld [vmem:[%s20585_s4] sm:$0xff]  ;;  %v18680_v30 = vld [vmem:[%s20585_s4 + $0x10] sm:$0xff]  ;;  %s18446_s13 = smov [#allocation2]  }
   0xe   :  { %v17175_v56 = vpack.c.bf16 %v195_v49, %v183_v48  ;;  %v201_v57 = vand.u32 4294901760, %v200_v50  ;;  %v734_v58 = vsub.f32 %v18553_v25, %v733_v51  ;;  %v727_v59 = vand.u32 4294901760, %v18565_v32  ;;  %v18675_v27 = vld [vmem:[%s20585_s4 + $0x20] sm:$0xff]  ;;  %v18689_v31 = vld [vmem:[%s20585_s4 + $0x30] sm:$0xff]  ;;  %s17148_s14 = sshll.u32 %s18446_s13, 4  ;;  %s17149_s14 = int_to_ptr.vmem [resolvable:$true] %s17148_s14 }
   0xf   :  { %v160_v60 = vsub.f32 %v18586_v44, %v18599_v52  ;;  %v18607_v61 = vand.u32 4294901760, %v169_v54  ;;  %v723_v62 = vand.u32 4294901760, %v722_v55  ;;  %v739_v63 = vand.u32 4294901760, %v18572_v37  ;;  %v1190_v33 = vld [vmem:[%s20582_s1] sm:$0x7]  ;;  %s18421_s16 = scalar_lea.vmem %s17149_s14, 320  ;;  %p18426_p1 = scmp.lt.s32.totalorder %s17149_s14, %s17149_s14 }
  0x10   :  { %17176 = vmatprep.subr.bf16.mxu0 %v17175_v56  ;;  %v17177_v0 = vpack.c.bf16 %v201_v57, %v189_v53  ;;  %v735_v1 = vand.u32 4294901760, %v734_v58  ;;  %v728_v2 = vsub.f32 %v18565_v32, %v727_v59  ;;  %v17179_v9 = vpack.c.bf16 %v18544_v20, %v18534_v14  ;;  %v1197_v14 = vld [vmem:[%s20585_s4 + $0x8] sm:$0xff]  ;;  %v1204_v49 = vld [vmem:[%s20585_s4 + $0x40] sm:$0xf]  ;;  %v1206_v50 = vld [vmem:[%s20585_s4 + $0x50] sm:$0xf]  ;;  %p18422_p0 = scmp.ne.s32.totalorder %s17149_s14, %s18421_s16  ;;  %p18427_p2 = scmp.lt.s32.totalorder %s18421_s16, %s18421_s16 }
  0x11   :  { %v161_v3 = vand.u32 4294901760, %v160_v60  ;;  %v171_v4 = vsub.f32 %v169_v54, %v18607_v61  ;;  %v740_v5 = vsub.f32 %v18572_v37, %v739_v63  ;;  %v17203_v13 = vpack.c.bf16 %v18553_v25, %v18536_v16  ;;  %v1201_v20 = vld [vmem:[%s20585_s4 + $0x28] sm:$0xff] }
  0x12   :  { %v17199_v6 = vpack.c.bf16 %v735_v1, %v723_v62  ;;  %v729_v7 = vand.u32 4294901760, %v728_v2  ;;  %v17181_v15 = vpack.c.bf16 %v18559_v29, %v18546_v22  ;;  %v17205_v17 = vpack.c.bf16 %v18572_v37, %v18565_v32  ;;  %v1205_v32 = vld [vmem:[%s20585_s4 + $0x48] sm:$0xf]  ;;  %p18428_p3 = por %p18427_p2, %p18426_p1 }
  0x13   :  { %162 = vmatmul.mubr.f32.vlgmr.msra.gmra.mrb[0].mxu0 %v161_v3  ;;  %702 = vmatmul.mubr.f32.vlgmr.msra.gmra.mrb[0].mxu1 %v161_v3  ;;  %v172_v10 = vand.u32 4294901760, %v171_v4  ;;  %v741_v11 = vand.u32 4294901760, %v740_v5  ;;  %v17187_v16 = vpack.c.bf16 %v193_v35, %v181_v34  ;;  %v17211_v18 = vpack.c.bf16 %v733_v51, %v721_v47 }
  0x14   :  { %167 = vmatprep.mubr.f32.mxu0 %v20593_v8  ;;  %17178 = vmatpush1.bf16.msra.mxu0 %v17177_v0  ;;  %v17189_v25 = vpack.c.bf16 %v199_v42, %v187_v39  ;;  %v17213_v22 = vpack.c.bf16 %v739_v63, %v727_v59  ;;  %v1225_v29 = vand.u32 4294901760, %v1197_v14  ;;  %vm1208_vm2 = vcmask 162816   ;;  %v1207_v42 = vld [vmem:[%s20585_s4 + $0x58] sm:$0xf]  ;;  %p18429_p4 = pnand %p18428_p3, %p18422_p0 }
  0x15   :  { %707 = vmatprep.mubr.f32.mxu1 %v20593_v8  ;;  %17200 = vmatprep.subr.bf16.mxu1 %v17199_v6  ;;  %v17201_v12 = vpack.c.bf16 %v741_v11, %v729_v7  ;;  %v1229_v34 = vand.u32 4294901760, %v1201_v20  ;;  %v1742_v35 = vand.u32 4294901760, %v1199_v21  ;;  %v1746_v39 = vand.u32 4294901760, %v1203_v23 }
  0x16   :  { %17180 = vmatprep.subr.bf16.mxu0 %v17179_v9  ;;  %vm1212_vm3 = vcmask 1043456   ;;  %v1227_v37 = vand.u32 4294901760, %v18670_v26  ;;  %v1231_v40 = vand.u32 4294901760, %v18675_v27  ;;  %v1744_v41 = vand.u32 4294901760, %v18680_v30 }
  0x17   :  { %173 = vmatmul.mubr.f32.gmra.mrb[2].mxu0 %v172_v10  ;;  %713 = vmatmul.mubr.f32.gmra.mrb[2].mxu1 %v172_v10  ;;  %v1748_v43 = vand.u32 4294901760, %v18689_v31  ;;  %v1217_v45 = vsel %vm1212_vm3, %v1205_v32, 0  ;;  %v18710_v47 = vsub.f32 %v1197_v14, %v1225_v29  ;;  %v1223_v48 = vsel %vm1212_vm3, %v1207_v42, 0 }
  0x18   :  { %17202 = vmatpush1.bf16.msra.mxu1 %v17201_v12  ;;  %263 = vmatprep.mubr.f32.mxu0 %v20593_v8  ;;  %v18721_v51 = vsub.f32 %v1201_v20, %v1229_v34  ;;  %v18725_v53 = vsub.f32 %v1203_v23, %v1746_v39  ;;  %v18744_v55 = vsub.f32 %v18680_v30, %v1744_v41  ;;  %v18750_v57 = vand.u32 4294901760, %v1217_v45 }
  0x19   :  { %803 = vmatprep.mubr.f32.mxu1 %v20593_v8  ;;  %17204 = vmatprep.subr.bf16.mxu1 %v17203_v13  ;;  %v18748_v56 = vpack.c.bf16 %v1229_v34, %v1225_v29  ;;  %v18755_v58 = vsub.f32 %v18689_v31, %v1748_v43  ;;  %v18757_v59 = vand.u32 4294901760, %v1223_v48  ;;  %v1214_v60 = vsel %vm1212_vm3, %v1204_v49, 0 }
  0x1a   :  { %20818 = vst [vmem:[#allocation6_spill] sm:$0xff] %v18750_v57  ;;  %v1309_v62 = vand.u32 4294901760, %v18710_v47  ;;  %v18762_v63 = vpack.c.bf16 %v1746_v39, %v1742_v35  ;;  %v1321_v0 = vand.u32 4294901760, %v18721_v51  ;;  %v1838_v2 = vand.u32 4294901760, %v18725_v53 }
  0x1b   :  { %265 = vmatmul.mubr.f32.vlgmr.msra.gmra.mrb[0].mxu0 %v18574_v38  ;;  %805 = vmatmul.mubr.f32.vlgmr.msra.gmra.mrb[0].mxu1 %v18574_v38  ;;  %20817 = vst [vmem:[#allocation5_spill] sm:$0xff] %v18748_v56  ;;  %20819 = vst [vmem:[#allocation7_spill] sm:$0xff] %v18757_v59  ;;  %v1832_v6 = vand.u32 4294901760, %v18744_v55  ;;  %v18777_v7 = vand.u32 4294901760, %v1214_v60  ;;  %v1844_v10 = vand.u32 4294901760, %v18755_v58  ;;  %v18788_v12 = vsub.f32 %v1217_v45, %v18750_v57 }
  0x1c   :  { %270 = vmatprep.mubr.f32.mxu0 %v20593_v8  ;;  %17182 = vmatpush1.bf16.msra.mxu0 %v17181_v15  ;;  %20820 = vst [vmem:[#allocation8_spill] sm:$0xff] %v18762_v63  ;;  %v1310_v11 = vsub.f32 %v18710_v47, %v1309_v62  ;;  %v18791_v13 = vsub.f32 %v1223_v48, %v18757_v59  ;;  %vm17126_vm4 = vcmask 157696   ;;  %vm11851_vm5 = vcmask 1042432  }
  0x1d   :  { %810 = vmatprep.mubr.f32.mxu1 %v20593_v8  ;;  %17206 = vmatpush1.bf16.msra.mxu1 %v17205_v17  ;;  %20821 = vst [vmem:[#allocation9_spill] sm:$0xff] %v18777_v7  ;;  %20823 = vst [vmem:[#allocation11_spill] sm:$0xff] %v18788_v12  ;;  %v1839_v15 = vsub.f32 %v18725_v53, %v1838_v2  ;;  %v1833_v14 = vsub.f32 %v18744_v55, %v1832_v6  ;;  %v18842_v29 = vand.u32 4294901760, %v18788_v12  ;;  %vm17136_vm6 = vcmask 161796  }
  0x1e   :  { %17184 = vmatprep.subr.bf16.mxu0 %v18542_v19  ;;  %17208 = vmatprep.subr.bf16.mxu1 %v18551_v24  ;;  %20824 = vst [vmem:[#allocation12_spill] sm:$0xff] %v18791_v13  ;;  %v1845_v20 = vsub.f32 %v18755_v58, %v1844_v10  ;;  %v1311_v34 = vand.u32 4294901760, %v1310_v11 }
  0x1f   :  { %272 = vmatmul.mubr.f32.gmra.mrb[2].mxu0 %v18591_v46  ;;  %812 = vmatmul.mubr.f32.gmra.mrb[2].mxu1 %v18591_v46  ;;  %20829 = vst [vmem:[#allocation17_spill] sm:$0xff] %v18842_v29  ;;  %v1834_v32 = vand.u32 4294901760, %v1833_v14  ;;  %v18943_v14 = vpack.c.bf16 %v1321_v0, %v1309_v62  ;;  %v2293_v62 = vld [vmem:[%s20588_s7] sm:$0xff] }
  0x20   :  { %350 = vmatprep.mubr.f32.mxu0 %v20593_v8  ;;  %890 = vmatprep.mubr.f32.mxu1 %v20593_v8 }
  0x21   :  { %20845 = vst [vmem:[#allocation33_spill] sm:$0xff] %v18943_v14 }
  0x23   :  { %353 = vmatmul.mubr.f32.vlgmr.msra.gmra.mrb[0].mxu0 %v18586_v44  ;;  %893 = vmatmul.mubr.f32.vlgmr.msra.gmra.mrb[0].mxu1 %v18586_v44  ;;  %v1210_v44 = vsel %vm1208_vm2, %v1190_v33, 0  ;;  %v18845_v33 = vand.u32 4294901760, %v18791_v13 }
  0x24   :  { %358 = vmatprep.mubr.f32.mxu0 %v20593_v8  ;;  %17186 = vmatpush1.bf16.msra.mxu0 %v18557_v28 }
  0x25   :  { %898 = vmatprep.mubr.f32.mxu1 %v20593_v8  ;;  %17210 = vmatpush1.bf16.msra.mxu1 %v18570_v36  ;;  %20830 = vst [vmem:[#allocation18_spill] sm:$0xff] %v18845_v33  ;;  %v1851_v42 = vsub.f32 %v18791_v13, %v18845_v33 }
  0x26   :  { %17188 = vmatprep.subr.bf16.mxu0 %v17187_v16  ;;  %17212 = vmatprep.subr.bf16.mxu1 %v17211_v18 }
  0x27   :  { %361 = vmatmul.mubr.f32.gmra.mrb[2].mxu0 %v169_v54  ;;  %901 = vmatmul.mubr.f32.gmra.mrb[2].mxu1 %v169_v54  ;;  %v18739_v54 = vsub.f32 %v18675_v27, %v1231_v40 }
  0x28   :  { %435 = vmatprep.mubr.f32.mxu0 %v20593_v8  ;;  %975 = vmatprep.mubr.f32.mxu1 %v20593_v8 }
  0x29   :  { %v1327_v5 = vand.u32 4294901760, %v18739_v54 }
  0x2b   :  { %439 = vmatmul.mubr.f32.vlgmr.msra.gmra.mrb[0].mxu0 %v18599_v52  ;;  %979 = vmatmul.mubr.f32.vlgmr.msra.gmra.mrb[0].mxu1 %v18599_v52  ;;  %v18723_v52 = vsub.f32 %v1199_v21, %v1742_v35  ;;  %v1328_v18 = vsub.f32 %v18739_v54, %v1327_v5  ;;  %v18824_v21 = vsub.f32 %v1214_v60, %v18777_v7 }
  0x2c   :  { %444 = vmatprep.mubr.f32.mxu0 %v20593_v8  ;;  %17190 = vmatpush1.bf16.msra.mxu0 %v17189_v25  ;;  %v18833_v25 = vpack.c.bf16 %v1231_v40, %v1227_v37 }
  0x2d   :  { %984 = vmatprep.mubr.f32.mxu1 %v20593_v8  ;;  %17214 = vmatpush1.bf16.msra.mxu1 %v17213_v22  ;;  %v1826_v1 = vand.u32 4294901760, %v18723_v52  ;;  %20825 = vst [vmem:[#allocation13_spill] sm:$0xff] %v18824_v21  ;;  %v18839_v22 = vpack.c.bf16 %v1748_v43, %v1744_v41  ;;  %v1329_v31 = vand.u32 4294901760, %v1328_v18  ;;  %v18854_v40 = vand.u32 4294901760, %v18824_v21 }
  0x2e   :  { %17192 = vmatprep.subr.bf16.mxu0 %v18542_v19  ;;  %17216 = vmatprep.subr.bf16.mxu1 %v18551_v24  ;;  %v18729_v19 = vand.u32 4294901760, %v1210_v44  ;;  %v18734_v24 = vsub.f32 %v18670_v26, %v1227_v37  ;;  %20827 = vst [vmem:[#allocation15_spill] sm:$0xff] %v18833_v25  ;;  %v1840_v26 = vand.u32 4294901760, %v1839_v15  ;;  %v1846_v37 = vand.u32 4294901760, %v1845_v20 }
  0x2f   :  { %448 = vmatmul.mubr.f32.gmra.mrb[2].mxu0 %v18607_v61  ;;  %988 = vmatmul.mubr.f32.gmra.mrb[2].mxu1 %v18607_v61  ;;  %v1220_v61 = vsel %vm1212_vm3, %v1206_v50, 0  ;;  %20828 = vst [vmem:[#allocation16_spill] sm:$0xff] %v18839_v22  ;;  %20831 = vst [vmem:[#allocation19_spill] sm:$0xff] %v18854_v40  ;;  %v1340_v50 = vsub.f32 %v18824_v21, %v18854_v40  ;;  %v18905_v15 = vpack.c.bf16 %v18725_v53, %v18723_v52  ;;  %v2298_v53 = vld [vmem:[%s20588_s7 + $0x28] sm:$0xff] }
  0x30   :  { %530 = vmatprep.mubr.f32.mxu0 %v20593_v8  ;;  %1070 = vmatprep.mubr.f32.mxu1 %v20593_v8  ;;  %v18770_v3 = vsub.f32 %v1210_v44, %v18729_v19  ;;  %v1315_v4 = vand.u32 4294901760, %v18734_v24  ;;  %v18779_v9 = vand.u32 4294901760, %v1220_v61  ;;  %v18877_v49 = vpack.c.bf16 %v1846_v37, %v1834_v32 }
  0x31   :  { %v18893_v11 = vand.u32 4294901760, %v1340_v50  ;;  %20842 = vst [vmem:[#allocation30_spill] sm:$0xff] %v18905_v15  ;;  %v18917_v18 = vpack.c.bf16 %v18755_v58, %v18744_v55  ;;  %v18949_v20 = vpack.c.bf16 %v1838_v2, %v1826_v1  ;;  %v2324_v55 = vand.u32 4294901760, %v2298_v53 }
  0x32   :  { %20822 = vst [vmem:[#allocation10_spill] sm:$0xff] %v18779_v9  ;;  %v18807_v17 = vand.u32 4294901760, %v18770_v3  ;;  %v1316_v16 = vsub.f32 %v18734_v24, %v1315_v4  ;;  %v18827_v23 = vsub.f32 %v1220_v61, %v18779_v9  ;;  %20836 = vst [vmem:[#allocation24_spill] sm:$0xff] %v18877_v49  ;;  %v18887_v61 = vand.u32 4294901760, %v1851_v42 }
  0x33   :  { %532 = vmatmul.mubr.f32.vlgmr.msra.gmra.mrb[0].mxu0 %v18574_v38  ;;  %1072 = vmatmul.mubr.f32.vlgmr.msra.gmra.mrb[0].mxu1 %v18574_v38  ;;  %20839 = vst [vmem:[#allocation27_spill] sm:$0xff] %v18893_v11  ;;  %20844 = vst [vmem:[#allocation32_spill] sm:$0xff] %v18917_v18  ;;  %v2322_v2 = vand.u32 4294901760, %v2293_v62 }
  0x34   :  { %537 = vmatprep.mubr.f32.mxu0 %v20593_v8  ;;  %17194 = vmatpush1.bf16.msra.mxu0 %v18557_v28  ;;  %v1322_v28 = vsub.f32 %v18721_v51, %v1321_v0  ;;  %20826 = vst [vmem:[#allocation14_spill] sm:$0xff] %v18827_v23  ;;  %v1299_v27 = vsub.f32 %v18770_v3, %v18807_v17  ;;  %v1317_v30 = vand.u32 4294901760, %v1316_v16  ;;  %v18857_v41 = vand.u32 4294901760, %v18827_v23  ;;  %v2297_v0 = vld [vmem:[%s20588_s7 + $0x20] sm:$0xff] }
  0x35   :  { %1077 = vmatprep.mubr.f32.mxu1 %v20593_v8  ;;  %17218 = vmatpush1.bf16.msra.mxu1 %v18570_v36  ;;  %v1827_v36 = vsub.f32 %v18723_v52, %v1826_v1  ;;  %20838 = vst [vmem:[#allocation26_spill] sm:$0xff] %v18887_v61  ;;  %v18913_v16 = vpack.c.bf16 %v18739_v54, %v18734_v24  ;;  %20846 = vst [vmem:[#allocation34_spill] sm:$0xff] %v18949_v20  ;;  %v2294_v52 = vld [vmem:[%s20588_s7 + $0x8] sm:$0xff]  ;;  %v2296_v24 = vld [vmem:[%s20588_s7 + $0x18] sm:$0xff] }
  0x36   :  { %17220 = vmatprep.subr.bf16.mxu0 %v18748_v56  ;;  %17244 = vmatprep.subr.bf16.mxu1 %v18762_v63  ;;  %v1323_v35 = vand.u32 4294901760, %v1322_v28  ;;  %20832 = vst [vmem:[#allocation20_spill] sm:$0xff] %v18857_v41  ;;  %v1300_v45 = vand.u32 4294901760, %v1299_v27  ;;  %v18873_v48 = vpack.c.bf16 %v1329_v31, %v1317_v30  ;;  %v1857_v60 = vsub.f32 %v18827_v23, %v18857_v41 }
  0x37   :  { %539 = vmatmul.mubr.f32.gmra.mrb[2].mxu0 %v18591_v46  ;;  %1079 = vmatmul.mubr.f32.gmra.mrb[2].mxu1 %v18591_v46  ;;  %v1828_v39 = vand.u32 4294901760, %v1827_v36  ;;  %v18901_v36 = vpack.c.bf16 %v18721_v51, %v18710_v47  ;;  %20843 = vst [vmem:[#allocation31_spill] sm:$0xff] %v18913_v16  ;;  %v18959_v47 = vpack.c.bf16 %v1327_v5, %v1315_v4  ;;  %v2320_v54 = vand.u32 4294901760, %v2294_v52  ;;  %v2295_v4 = vld [vmem:[%s20588_s7 + $0x10] sm:$0xff] }
  0x38   :  { %613 = vmatprep.mubr.f32.mxu0 %v20593_v8  ;;  %1153 = vmatprep.mubr.f32.mxu1 %v20593_v8  ;;  %v18867_v43 = vpack.c.bf16 %v1323_v35, %v1311_v34  ;;  %20835 = vst [vmem:[#allocation23_spill] sm:$0xff] %v18873_v48  ;;  %v18895_v28 = vand.u32 4294901760, %v1857_v60  ;;  %v18965_v51 = vpack.c.bf16 %v1844_v10, %v1832_v6  ;;  %v2837_v58 = vand.u32 4294901760, %v2296_v24  ;;  %v2299_v5 = vld [vmem:[%s20588_s7 + $0x30] sm:$0xff]  ;;  %v2302_v34 = vld [vmem:[%s20588_s7 + $0x48] sm:$0xf] }
  0x39   :  { %v18869_v44 = vpack.c.bf16 %v1840_v26, %v1828_v39  ;;  %20841 = vst [vmem:[#allocation29_spill] sm:$0xff] %v18901_v36  ;;  %20847 = vst [vmem:[#allocation35_spill] sm:$0xff] %v18959_v47  ;;  %v19019_v6 = vpack.c.bf16 %v2324_v55, %v2320_v54  ;;  %v2839_v10 = vand.u32 4294901760, %v2295_v4  ;;  %v2304_v35 = vld [vmem:[%s20588_s7 + $0x58] sm:$0xf]  ;;  %v2312_v27 = vsel %vm1212_vm3, %v2302_v34, 0 }
  0x3a   :  { %20833 = vst [vmem:[#allocation21_spill] sm:$0xff] %v18867_v43  ;;  %20840 = vst [vmem:[#allocation28_spill] sm:$0xff] %v18895_v28  ;;  %v2318_v30 = vsel %vm1212_vm3, %v2304_v35, 0  ;;  %v19036_v32 = vand.u32 4294901760, %v2312_v27  ;;  %v19054_v60 = vsub.f32 %v2294_v52, %v2320_v54  ;;  %v19056_v34 = vsub.f32 %v2298_v53, %v2324_v55 }
  0x3b   :  { %615 = vmatmul.mubr.f32.vlgmr.msra.gmra.mrb[0].mxu0 %v18574_v38  ;;  %1155 = vmatmul.mubr.f32.vlgmr.msra.gmra.mrb[0].mxu1 %v18574_v38  ;;  %v1334_v38 = vsub.f32 %v18788_v12, %v18842_v29  ;;  %20834 = vst [vmem:[#allocation22_spill] sm:$0xff] %v18869_v44  ;;  %20848 = vst [vmem:[#allocation36_spill] sm:$0xff] %v18965_v51  ;;  %v19038_v37 = vand.u32 4294901760, %v2318_v30  ;;  %v19058_v35 = vsub.f32 %v2296_v24, %v2837_v58 }
  0x3c   :  { %620 = vmatprep.mubr.f32.mxu0 %v20593_v8  ;;  %1160 = vmatprep.mubr.f32.mxu1 %v20593_v8  ;;  %20849 = vst [vmem:[#allocation37_spill] sm:$0xff] %v19019_v6  ;;  %20853 = vst [vmem:[#allocation41_spill] sm:$0xff] %v19036_v32  ;;  %v20599_v53 = vand.u32 4294901760, %v19054_v60  ;;  %v19076_v24 = vsub.f32 %v2295_v4, %v2839_v10 }
  0x3d   :  { %17222 = vmatpush1.bf16.msra.mxu0 %v18833_v25  ;;  %17246 = vmatpush1.bf16.msra.mxu1 %v18839_v22  ;;  %20854 = vst [vmem:[#allocation42_spill] sm:$0xff] %v19038_v37 }
  0x3e   :  { %1234 = vmatprep.subr.mxu0 %v18750_v57  ;;  %1751 = vmatprep.subr.mxu1 %v18757_v59 }
  0x3f   :  { %622 = vmatmul.mubr.f32.gmra.mrb[2].mxu0 %v18591_v46  ;;  %1162 = vmatmul.mubr.f32.gmra.mrb[2].mxu1 %v18591_v46  ;;  %v18885_v46 = vand.u32 4294901760, %v1334_v38  ;;  %v17167_v38 = vld [vmem:[%s20582_s1 + $0x4] sm:$0x7] }
  0x40   :  { %1295 = vmatprep.mubr.f32.mxu0 %v20593_v8  ;;  %1812 = vmatprep.mubr.f32.mxu1 %v20593_v8  ;;  %v2306_v42 = vsel %vm1208_vm2, %v17167_v38, 0  ;;  %v2301_v38 = vld [vmem:[%s20588_s7 + $0x40] sm:$0xf] }
  0x41   :  { %1236 = vmatpush1.msra.mxu0 %v18777_v7  ;;  %1753 = vmatpush1.msra.mxu1 %v18779_v9  ;;  %20837 = vst [vmem:[#allocation25_spill] sm:$0xff] %v18885_v46  ;;  %v2309_v55 = vsel %vm1212_vm3, %v2301_v38, 0 }
  0x42   :  { %17224 = vmatprep.subr.bf16.mxu0 %v18867_v43  ;;  %17248 = vmatprep.subr.bf16.mxu1 %v18869_v44 }
  0x43   :  { %1301 = vmatmul.mubr.f32.vlgmr.msra.gmra.mrb[4].mxu0 %v1300_v45  ;;  %1818 = vmatmul.mubr.f32.vlgmr.msra.gmra.mrb[4].mxu1 %v1300_v45  ;;  %v19049_v45 = vand.u32 4294901760, %v2306_v42 }
  0x44   :  { %17226 = vmatpush1.bf16.msra.mxu0 %v18873_v48  ;;  %17250 = vmatpush1.bf16.msra.mxu1 %v18877_v49 }
  0x45   :  { %1336 = vmatprep.subr.mxu0 %v18885_v46  ;;  %1853 = vmatprep.subr.mxu1 %v18887_v61  ;;  %v19052_v50 = vsub.f32 %v2306_v42, %v19049_v45  ;;  %v2303_v42 = vld [vmem:[%s20588_s7 + $0x50] sm:$0xf] }
  0x46   :  { %1401 = vmatprep.mubr.f32.mxu0 %v20593_v8  ;;  %1918 = vmatprep.mubr.f32.mxu1 %v20593_v8 }
  0x47   :  { %v19073_v52 = vand.u32 4294901760, %v19052_v50 }
  0x48   :  { %1342 = vmatpush1.msra.mxu0 %v18893_v11  ;;  %1859 = vmatpush1.msra.mxu1 %v18895_v28 }
  0x49   :  { %17228 = vmatprep.subr.bf16.mxu0 %v18901_v36  ;;  %17252 = vmatprep.subr.bf16.mxu1 %v18905_v15 }
  0x4b   :  { %1403 = vmatmul.mubr.f32.vlgmr.msra.gmra.mrb[4].mxu0 %v18729_v19  ;;  %1920 = vmatmul.mubr.f32.vlgmr.msra.gmra.mrb[4].mxu1 %v18729_v19 }
  0x4c   :  { %17230 = vmatpush1.bf16.msra.mxu0 %v18913_v16  ;;  %17254 = vmatpush1.bf16.msra.mxu1 %v18917_v18 }
  0x4d   :  { %1423 = vmatprep.subr.mxu0 %v18788_v12  ;;  %1940 = vmatprep.subr.mxu1 %v18791_v13 }
  0x4e   :  { %1485 = vmatprep.mubr.f32.mxu0 %v20593_v8  ;;  %2002 = vmatprep.mubr.f32.mxu1 %v20593_v8 }
  0x50   :  { %1426 = vmatpush1.msra.mxu0 %v18824_v21  ;;  %1943 = vmatpush1.msra.mxu1 %v18827_v23 }
  0x51   :  { %17232 = vmatprep.subr.bf16.mxu0 %v18748_v56  ;;  %17256 = vmatprep.subr.bf16.mxu1 %v18762_v63 }
  0x53   :  { %1488 = vmatmul.mubr.f32.vlgmr.msra.gmra.mrb[4].mxu0 %v18770_v3  ;;  %2005 = vmatmul.mubr.f32.vlgmr.msra.gmra.mrb[4].mxu1 %v18770_v3  ;;  %v2326_v3 = vand.u32 4294901760, %v2297_v0 }
  0x54   :  { %17234 = vmatpush1.bf16.msra.mxu0 %v18833_v25  ;;  %17258 = vmatpush1.bf16.msra.mxu1 %v18839_v22 }
  0x55   :  { %1503 = vmatprep.subr.mxu0 %v18750_v57  ;;  %2020 = vmatprep.subr.mxu1 %v18757_v59  ;;  %v19029_v26 = vpack.c.bf16 %v2326_v3, %v2322_v2 }
  0x56   :  { %1564 = vmatprep.mubr.f32.mxu0 %v20593_v8  ;;  %2081 = vmatprep.mubr.f32.mxu1 %v20593_v8 }
  0x57   :  { %20851 = vst [vmem:[#allocation39_spill] sm:$0xff] %v19029_v26 }
  0x58   :  { %1505 = vmatpush1.msra.mxu0 %v18777_v7  ;;  %2022 = vmatpush1.msra.mxu1 %v18779_v9 }
  0x59   :  { %17236 = vmatprep.subr.bf16.mxu0 %v18943_v14  ;;  %17260 = vmatprep.subr.bf16.mxu1 %v18949_v20 }
  0x5b   :  { %1568 = vmatmul.mubr.f32.vlgmr.msra.gmra.mrb[4].mxu0 %v18807_v17  ;;  %2085 = vmatmul.mubr.f32.vlgmr.msra.gmra.mrb[4].mxu1 %v18807_v17  ;;  %v2843_v17 = vand.u32 4294901760, %v2299_v5 }
  0x5c   :  { %17238 = vmatpush1.bf16.msra.mxu0 %v18959_v47  ;;  %17262 = vmatpush1.bf16.msra.mxu1 %v18965_v51 }
  0x5d   :  { %1593 = vmatprep.subr.mxu0 %v18842_v29  ;;  %2110 = vmatprep.subr.mxu1 %v18845_v33  ;;  %v19034_v31 = vpack.c.bf16 %v2843_v17, %v2839_v10  ;;  %v19078_v54 = vsub.f32 %v2299_v5, %v2843_v17  ;;  %v20617_v33 = vand.u32 4294901760, %v19076_v24 }
  0x5e   :  { %1656 = vmatprep.mubr.f32.mxu0 %v20593_v8  ;;  %2173 = vmatprep.mubr.f32.mxu1 %v20593_v8 }
  0x5f   :  { %20852 = vst [vmem:[#allocation40_spill] sm:$0xff] %v19034_v31 }
  0x60   :  { %1597 = vmatpush1.msra.mxu0 %v18854_v40  ;;  %2114 = vmatpush1.msra.mxu1 %v18857_v41  ;;  %v19062_v41 = vsub.f32 %v2293_v62, %v2322_v2  ;;  %v19064_v40 = vsub.f32 %v2297_v0, %v2326_v3  ;;  %v20605_v62 = vand.u32 4294901760, %v19058_v35  ;;  %v19084_v0 = vand.u32 4294901760, %v2309_v55 }
  0x61   :  { %17240 = vmatprep.subr.bf16.mxu0 %v18748_v56  ;;  %17264 = vmatprep.subr.bf16.mxu1 %v18762_v63  ;;  %v2394_v2 = vsub.f32 %v19052_v50, %v19073_v52  ;;  %v2405_v3 = vsub.f32 %v19054_v60, %v20599_v53 }
  0x62   :  { %20855 = vst [vmem:[#allocation43_spill] sm:$0xff] %v19084_v0  ;;  %v2922_v5 = vsub.f32 %v19058_v35, %v20605_v62  ;;  %v20613_v17 = vand.u32 4294901760, %v19062_v41  ;;  %v20614_v53 = vand.u32 4294901760, %v19064_v40 }
  0x63   :  { %1658 = vmatmul.mubr.f32.vlgmr.msra.gmra.mrb[4].mxu0 %v18729_v19  ;;  %2175 = vmatmul.mubr.f32.vlgmr.msra.gmra.mrb[4].mxu1 %v18729_v19  ;;  %v2395_v38 = vand.u32 4294901760, %v2394_v2 }
  0x64   :  { %17242 = vmatpush1.bf16.msra.mxu0 %v18833_v25  ;;  %17266 = vmatpush1.bf16.msra.mxu1 %v18839_v22  ;;  %v2411_v51 = vsub.f32 %v19062_v41, %v20613_v17  ;;  %v2423_v2 = vsub.f32 %v19064_v40, %v20614_v53  ;;  %v19124_v17 = vsub.f32 %v2318_v30, %v19038_v37 }
  0x65   :  { %1673 = vmatprep.subr.mxu0 %v18750_v57  ;;  %2190 = vmatprep.subr.mxu1 %v18757_v59  ;;  %v19141_v30 = vsub.f32 %v2309_v55, %v19084_v0 }
  0x66   :  { %1734 = vmatprep.mubr.f32.mxu0 %v20593_v8  ;;  %2251 = vmatprep.mubr.f32.mxu1 %v20593_v8  ;;  %v2412_v20 = vand.u32 4294901760, %v2411_v51  ;;  %20859 = vst [vmem:[#allocation47_spill] sm:$0xff] %v19124_v17  ;;  %v2424_v53 = vand.u32 4294901760, %v2423_v2  ;;  %v19138_v51 = vand.u32 4294901760, %v19124_v17 }
  0x67   :  { %20864 = vst [vmem:[#allocation51_spill] sm:$0xff] %v19141_v30 }
  0x68   :  { %1675 = vmatpush1.msra.mxu0 %v18777_v7  ;;  %2192 = vmatpush1.msra.mxu1 %v18779_v9  ;;  %20863 = vst [vmem:[#allocation50_spill] sm:$0xff] %v19138_v51 }
  0x69   :  { %17268 = vmatprep.subr.bf16.mxu0 %v19019_v6 }
  0x6b   :  { %1736 = vmatmul.mubr.f32.vlgmr.msra.gmra.mrb[4].mxu0 %v18729_v19  ;;  %2253 = vmatmul.mubr.f32.vlgmr.msra.gmra.mrb[4].mxu1 %v18729_v19  ;;  %v2300_v19 = vld [vmem:[%s20588_s7 + $0x38] sm:$0xff] }
  0x6c   :  { %2390 = vmatprep.mubr.f32.mxu0 %v20593_v8  ;;  %2907 = vmatprep.mubr.f32.mxu1 %v20593_v8  ;;  %v2841_v1 = vand.u32 4294901760, %v2300_v19 }
  0x6d   :  { %17270 = vmatpush1.bf16.msra.mxu0 %v19029_v26 }
  0x6e   :  { %v19027_v39 = vpack.c.bf16 %v2841_v1, %v2837_v58  ;;  %2329 = vmatprep.subr.mxu0 %v19036_v32  ;;  %v19060_v8 = vsub.f32 %v2300_v19, %v2841_v1  ;;  %v2315_v19 = vsel %vm1212_vm3, %v2303_v42, 0  ;;  %v20604_v58 = vand.u32 4294901760, %v19056_v34 }
  0x6f   :  { %v19086_v1 = vand.u32 4294901760, %v2315_v19  ;;  %v2406_v42 = vand.u32 4294901760, %v2405_v3  ;;  %v2928_v3 = vsub.f32 %v19076_v24, %v20617_v33 }
  0x70   :  { %20850 = vst [vmem:[#allocation38_spill] sm:$0xff] %v19027_v39  ;;  %17292 = vmatprep.subr.bf16.mxu1 %v19027_v39  ;;  %v2417_v4 = vsub.f32 %v19056_v34, %v20604_v58  ;;  %v20608_v10 = vand.u32 4294901760, %v19060_v8  ;;  %v2923_v58 = vand.u32 4294901760, %v2922_v5  ;;  %v19119_v5 = vsub.f32 %v2312_v27, %v19036_v32 }
  0x71   :  { %17294 = vmatpush1.bf16.msra.mxu1 %v19034_v31  ;;  %20856 = vst [vmem:[#allocation44_spill] sm:$0xff] %v19086_v1  ;;  %2331 = vmatpush1.msra.mxu0 %v19084_v0  ;;  %v2929_v14 = vand.u32 4294901760, %v2928_v3 }
  0x72   :  { %2846 = vmatprep.subr.mxu1 %v19038_v37  ;;  %v2418_v29 = vand.u32 4294901760, %v2417_v4  ;;  %v2934_v62 = vsub.f32 %v19060_v8, %v20608_v10  ;;  %2396 = vmatmul.mubr.f32.vlgmr.msra.gmra.mrb[6].mxu0 %v2395_v38  ;;  %v20618_v4 = vand.u32 4294901760, %v19078_v54  ;;  %20857 = vst [vmem:[#allocation45_spill] sm:$0xff] %v19119_v5  ;;  %v19132_v27 = vand.u32 4294901760, %v19119_v5 }
  0x74   :  { %v19121_v10 = vpack.c.bf16 %v2418_v29, %v2406_v42  ;;  %v2935_v47 = vand.u32 4294901760, %v2934_v62  ;;  %v2940_v33 = vsub.f32 %v19078_v54, %v20618_v4  ;;  %20861 = vst [vmem:[#allocation48_spill] sm:$0xff] %v19132_v27  ;;  %v19144_v62 = vsub.f32 %v2315_v19, %v19086_v1 }
  0x75   :  { %2848 = vmatpush1.msra.mxu1 %v19086_v1  ;;  %v19146_v42 = vpack.c.bf16 %v2424_v53, %v2412_v20  ;;  %v2429_v3 = vsub.f32 %v19119_v5, %v19132_v27 }
  0x76   :  { %2913 = vmatmul.mubr.f32.vlgmr.msra.gmra.mrb[6].mxu1 %v2395_v38  ;;  %20858 = vst [vmem:[#allocation46_spill] sm:$0xff] %v19121_v10  ;;  %v20860_v38 = vmov 0.0   ;;  %17272 = vmatprep.subr.bf16.mxu0 %v19121_v10  ;;  %v19135_v29 = vpack.c.bf16 %v2935_v47, %v2923_v58  ;;  %20865 = vst [vmem:[#allocation52_spill] sm:$0xff] %v19144_v62  ;;  %v2941_v2 = vand.u32 4294901760, %v2940_v33  ;;  %v2946_v47 = vsub.f32 %v19124_v17, %v19138_v51 }
  0x77   :  { %2496 = vmatprep.mubr.f32.mxu0 %v20860_v38  ;;  %3013 = vmatprep.mubr.f32.mxu1 %v20860_v38  ;;  %20866 = vst [vmem:[#allocation53_spill] sm:$0xff] %v19146_v42  ;;  %v19154_v58 = vand.u32 4294901760, %v19141_v30  ;;  %v19157_v55 = vand.u32 4294901760, %v19144_v62  ;;  %v19162_v20 = vand.u32 4294901760, %v2429_v3  ;;  %v19183_v3 = vpack.c.bf16 %v19060_v8, %v19058_v35 }
  0x78   :  { %20862 = vst [vmem:[#allocation49_spill] sm:$0xff] %v19135_v29  ;;  %17296 = vmatprep.subr.bf16.mxu1 %v19135_v29  ;;  %17274 = vmatpush1.bf16.msra.mxu0 %v19146_v42  ;;  %v19160_v19 = vpack.c.bf16 %v2941_v2, %v2929_v14  ;;  %v19164_v33 = vand.u32 4294901760, %v2946_v47  ;;  %v19179_v2 = vpack.c.bf16 %v19056_v34, %v19054_v60 }
  0x79   :  { %20867 = vst [vmem:[#allocation54_spill] sm:$0xff] %v19154_v58  ;;  %20868 = vst [vmem:[#allocation55_spill] sm:$0xff] %v19157_v55  ;;  %v2435_v53 = vsub.f32 %v19141_v30, %v19154_v58  ;;  %v2952_v4 = vsub.f32 %v19144_v62, %v19157_v55  ;;  %2431 = vmatprep.subr.mxu0 %v19162_v20  ;;  %v19187_v47 = vpack.c.bf16 %v19064_v40, %v19062_v41 }
  0x7a   :  { %20869 = vst [vmem:[#allocation56_spill] sm:$0xff] %v19160_v19  ;;  %20870 = vst [vmem:[#allocation57_spill] sm:$0xff] %v19162_v20  ;;  %17298 = vmatpush1.bf16.msra.mxu1 %v19160_v19 }
  0x7b   :  { %20871 = vst [vmem:[#allocation58_spill] sm:$0xff] %v19164_v33  ;;  %2948 = vmatprep.subr.mxu1 %v19164_v33  ;;  %v19173_v29 = vand.u32 4294901760, %v2435_v53  ;;  %v19175_v14 = vand.u32 4294901760, %v2952_v4  ;;  %20874 = vst [vmem:[#allocation61_spill] sm:$0xff] %v19179_v2  ;;  %v19192_v53 = vpack.c.bf16 %v19078_v54, %v19076_v24  ;;  %v20878_v4 = vand.u32 4294901760, %v19054_v60 }
  0x7c   :  { %20875 = vst [vmem:[#allocation62_spill] sm:$0xff] %v19183_v3  ;;  %20876 = vst [vmem:[#allocation63_spill] sm:$0xff] %v19187_v47  ;;  %v20887_v60 = vand.u32 4294901760, %v19076_v24 }
  0x7d   :  { %20872 = vst [vmem:[#allocation59_spill] sm:$0xff] %v19173_v29  ;;  %20873 = vst [vmem:[#allocation60_spill] sm:$0xff] %v19175_v14  ;;  %2437 = vmatpush1.msra.mxu0 %v19173_v29  ;;  %v2289_v29 = vld [vmem:[%s20587_s6 + $0x40] sm:$0xf] }
  0x7e   :  { %20877 = vst [vmem:[#allocation64_spill] sm:$0xff] %v19192_v53  ;;  %2954 = vmatpush1.msra.mxu1 %v19175_v14  ;;  %2498 = vmatmul.mubr.f32.vlgmr.msra.gmra.mrb[6].mxu0 %v19049_v45  ;;  %v19327_v33 = vsel %vm1212_vm3, %v2289_v29, 0 }
  0x7f   :  { %3015 = vmatmul.mubr.f32.vlgmr.msra.gmra.mrb[6].mxu1 %v19049_v45  ;;  %17276 = vmatprep.subr.bf16.mxu0 %v19179_v2  ;;  %v19331_v20 = vand.u32 4294901760, %v19327_v33 }
  0x80   :  { %17300 = vmatprep.subr.bf16.mxu1 %v19183_v3  ;;  %17278 = vmatpush1.bf16.msra.mxu0 %v19187_v47  ;;  %v20885_v47 = vand.u32 4294901760, %v19064_v40  ;;  %v2286_v40 = vld [vmem:[%s20587_s6 + $0x28] sm:$0xff] }
  0x81   :  { %17302 = vmatpush1.bf16.msra.mxu1 %v19192_v53  ;;  %2518 = vmatprep.subr.mxu0 %v19119_v5  ;;  %v20884_v53 = vand.u32 4294901760, %v19062_v41  ;;  %v2284_v41 = vld [vmem:[%s20587_s6 + $0x18] sm:$0xff]  ;;  %v3373_v24 = vand.u32 4294901760, %v2286_v40  ;;  %20891 = vst [vmem:[#allocation70_spill] sm:$0xff] %v19331_v20 }
  0x82   :  { %3035 = vmatprep.subr.mxu1 %v19124_v17  ;;  %2580 = vmatprep.mubr.f32.mxu0 %v20860_v38  ;;  %v20882_v17 = vand.u32 4294901760, %v19060_v8  ;;  %v2282_v8 = vld [vmem:[%s20587_s6 + $0x8] sm:$0xff] }
  0x83   :  { %3097 = vmatprep.mubr.f32.mxu1 %v20860_v38  ;;  %v19234_v3 = vpack.c.bf16 %v20885_v47, %v20884_v53  ;;  %v2285_v47 = vld [vmem:[%s20587_s6 + $0x20] sm:$0xff]  ;;  %v3464_v10 = vsub.f32 %v2286_v40, %v3373_v24 }
  0x84   :  { %2521 = vmatpush1.msra.mxu0 %v19141_v30 }
  0x85   :  { %3038 = vmatpush1.msra.mxu1 %v19144_v62  ;;  %17280 = vmatprep.subr.bf16.mxu0 %v19019_v6  ;;  %v20879_v62 = vand.u32 4294901760, %v19056_v34  ;;  %20886 = vst [vmem:[#allocation67_spill] sm:$0xff] %v19234_v3  ;;  %v20888_v34 = vand.u32 4294901760, %v19078_v54  ;;  %v2288_v54 = vld [vmem:[%s20587_s6 + $0x38] sm:$0xff] }
  0x86   :  { %2583 = vmatmul.mubr.f32.vlgmr.msra.gmra.mrb[6].mxu0 %v19052_v50  ;;  %17304 = vmatprep.subr.bf16.mxu1 %v19027_v39  ;;  %v3890_v53 = vand.u32 4294901760, %v2288_v54 }
  0x87   :  { %3100 = vmatmul.mubr.f32.vlgmr.msra.gmra.mrb[6].mxu1 %v19052_v50  ;;  %17282 = vmatpush1.bf16.msra.mxu0 %v19029_v26  ;;  %v19221_v30 = vpack.c.bf16 %v20879_v62, %v20878_v4  ;;  %v20881_v50 = vand.u32 4294901760, %v19058_v35  ;;  %v19242_v35 = vpack.c.bf16 %v20888_v34, %v20887_v60  ;;  %v2281_v62 = vld [vmem:[%s20587_s6] sm:$0xff]  ;;  %v2283_v60 = vld [vmem:[%s20587_s6 + $0x10] sm:$0xff] }
  0x88   :  { %17306 = vmatpush1.bf16.msra.mxu1 %v19034_v31  ;;  %2598 = vmatprep.subr.mxu0 %v19036_v32  ;;  %v3371_v4 = vand.u32 4294901760, %v2281_v62  ;;  %v2287_v34 = vld [vmem:[%s20587_s6 + $0x30] sm:$0xff] }
  0x89   :  { %3115 = vmatprep.subr.mxu1 %v19038_v37  ;;  %2659 = vmatprep.mubr.f32.mxu0 %v20860_v38  ;;  %20880 = vst [vmem:[#allocation65_spill] sm:$0xff] %v19221_v30  ;;  %v19227_v5 = vpack.c.bf16 %v20882_v17, %v20881_v50  ;;  %20889 = vst [vmem:[#allocation68_spill] sm:$0xff] %v19242_v35  ;;  %v3886_v17 = vand.u32 4294901760, %v2284_v41  ;;  %v3375_v50 = vand.u32 4294901760, %v2285_v47 }
  0x8a   :  { %3176 = vmatprep.mubr.f32.mxu1 %v20860_v38  ;;  %v3458_v29 = vsub.f32 %v2281_v62, %v3371_v4 }
  0x8b   :  { %20883 = vst [vmem:[#allocation66_spill] sm:$0xff] %v19227_v5  ;;  %2600 = vmatpush1.msra.mxu0 %v19084_v0 }
  0x8c   :  { %3117 = vmatpush1.msra.mxu1 %v19086_v1  ;;  %17284 = vmatprep.subr.bf16.mxu0 %v19221_v30  ;;  %v19302_v30 = vpack.c.bf16 %v3375_v50, %v3371_v4 }
  0x8d   :  { %17308 = vmatprep.subr.bf16.mxu1 %v19227_v5  ;;  %v19300_v5 = vpack.c.bf16 %v3890_v53, %v3886_v17 }
  0x8e   :  { %2663 = vmatmul.mubr.f32.vlgmr.msra.gmra.mrb[6].mxu0 %v19073_v52 }
  0x8f   :  { %3180 = vmatmul.mubr.f32.vlgmr.msra.gmra.mrb[6].mxu1 %v19073_v52  ;;  %17286 = vmatpush1.bf16.msra.mxu0 %v19234_v3  ;;  %v3369_v52 = vand.u32 4294901760, %v2282_v8 }
  0x90   :  { %17310 = vmatpush1.bf16.msra.mxu1 %v19242_v35  ;;  %2688 = vmatprep.subr.mxu0 %v19132_v27  ;;  %v2290_v27 = vld [vmem:[%s20587_s6 + $0x48] sm:$0xf]  ;;  %v2292_v35 = vld [vmem:[%s20587_s6 + $0x58] sm:$0xf] }
  0x91   :  { %3205 = vmatprep.subr.mxu1 %v19138_v51  ;;  %2751 = vmatprep.mubr.f32.mxu0 %v20860_v38  ;;  %v3892_v51 = vand.u32 4294901760, %v2287_v34  ;;  %v19297_v3 = vsub.f32 %v2282_v8, %v3369_v52  ;;  %v19305_v2 = vsel %vm1212_vm3, %v2290_v27, 0  ;;  %v19308_v14 = vsel %vm1212_vm3, %v2292_v35, 0  ;;  %v2291_v8 = vld [vmem:[%s20587_s6 + $0x50] sm:$0xf] }
  0x92   :  { %3268 = vmatprep.mubr.f32.mxu1 %v20860_v38  ;;  %v19321_v27 = vand.u32 4294901760, %v19305_v2  ;;  %v19324_v35 = vand.u32 4294901760, %v19308_v14  ;;  %v19334_v19 = vsel %vm1212_vm3, %v2291_v8, 0  ;;  %v3470_v8 = vsub.f32 %v2285_v47, %v3375_v50 }
  0x93   :  { %2692 = vmatpush1.msra.mxu0 %v19154_v58  ;;  %v3888_v58 = vand.u32 4294901760, %v2283_v60  ;;  %v3453_v42 = vand.u32 4294901760, %v19297_v3 }
  0x94   :  { %3209 = vmatpush1.msra.mxu1 %v19157_v55  ;;  %17288 = vmatprep.subr.bf16.mxu0 %v19019_v6  ;;  %v19289_v55 = vpack.c.bf16 %v3373_v24, %v3369_v52  ;;  %20890 = vst [vmem:[#allocation69_spill] sm:$0xff] %v19324_v35  ;;  %v3987_v6 = vsub.f32 %v2287_v34, %v3892_v51 }
  0x95   :  { %17312 = vmatprep.subr.bf16.mxu1 %v19027_v39  ;;  %v19318_v52 = vpack.c.bf16 %v3892_v51, %v3888_v58  ;;  %v3459_v39 = vand.u32 4294901760, %v3458_v29 }
  0x96   :  { %2753 = vmatmul.mubr.f32.vlgmr.msra.gmra.mrb[6].mxu0 %v19049_v45 }
  0x97   :  { %3270 = vmatmul.mubr.f32.vlgmr.msra.gmra.mrb[6].mxu1 %v19049_v45  ;;  %17290 = vmatpush1.bf16.msra.mxu0 %v19029_v26  ;;  %v3975_v26 = vsub.f32 %v2283_v60, %v3888_v58  ;;  %v3460_v47 = vsub.f32 %v3458_v29, %v3459_v39 }
  0x98   :  { %17314 = vmatpush1.bf16.msra.mxu1 %v19034_v31  ;;  %2768 = vmatprep.subr.mxu0 %v19036_v32  ;;  %v3454_v32 = vsub.f32 %v19297_v3, %v3453_v42  ;;  %v3465_v31 = vand.u32 4294901760, %v3464_v10 }
  0x99   :  { %3285 = vmatprep.subr.mxu1 %v19038_v37  ;;  %2829 = vmatprep.mubr.f32.mxu0 %v20860_v38  ;;  %v3981_v37 = vsub.f32 %v2288_v54, %v3890_v53  ;;  %v3471_v54 = vand.u32 4294901760, %v3470_v8  ;;  %v3988_v53 = vand.u32 4294901760, %v3987_v6  ;;  %v3461_v23 = vand.u32 4294901760, %v3460_v47 }
  0x9a   :  { %3346 = vmatprep.mubr.f32.mxu1 %v20860_v38  ;;  %v19368_v47 = vpack.c.bf16 %v3987_v6, %v3975_v26 }
  0x9b   :  { %2770 = vmatpush1.msra.mxu0 %v19084_v0  ;;  %v3969_v0 = vsub.f32 %v2284_v41, %v3886_v17  ;;  %v3982_v24 = vand.u32 4294901760, %v3981_v37  ;;  %v3466_v41 = vsub.f32 %v3464_v10, %v3465_v31  ;;  %v3976_v17 = vand.u32 4294901760, %v3975_v26 }
  0x9c   :  { %3287 = vmatpush1.msra.mxu1 %v19086_v1  ;;  %17316 = vmatprep.subr.bf16.mxu0 %v19289_v55  ;;  %v19339_v1 = vand.u32 4294901760, %v19334_v19  ;;  %v3472_v50 = vsub.f32 %v3470_v8, %v3471_v54  ;;  %20900 = vst [vmem:[#allocation79_spill] sm:$0xff] %v19368_v47 }
  0x9d   :  { %17340 = vmatprep.subr.bf16.mxu1 %v19300_v5  ;;  %v3970_v40 = vand.u32 4294901760, %v3969_v0  ;;  %v3983_v58 = vsub.f32 %v3981_v37, %v3982_v24  ;;  %v3467_v4 = vand.u32 4294901760, %v3466_v41  ;;  %v3977_v60 = vsub.f32 %v3975_v26, %v3976_v17 }
  0x9e   :  { %2831 = vmatmul.mubr.f32.vlgmr.msra.gmra.mrb[6].mxu0 %v19049_v45  ;;  %20892 = vst [vmem:[#allocation71_spill] sm:$0xff] %v19339_v1  ;;  %v3473_v13 = vand.u32 4294901760, %v3472_v50  ;;  %v19370_v50 = vpack.c.bf16 %v3465_v31, %v3453_v42 }
  0x9f   :  { %3348 = vmatmul.mubr.f32.vlgmr.msra.gmra.mrb[6].mxu1 %v19049_v45  ;;  %17318 = vmatpush1.bf16.msra.mxu0 %v19302_v30  ;;  %v3455_v45 = vand.u32 4294901760, %v3454_v32  ;;  %v3971_v62 = vsub.f32 %v3969_v0, %v3970_v40  ;;  %v3984_v34 = vand.u32 4294901760, %v3983_v58  ;;  %v3989_v32 = vsub.f32 %v3987_v6, %v3988_v53  ;;  %v46_v6 = vld [vmem:[%s20586_s5] sm:$0xf] }
  0xa0   :  { %17342 = vmatpush1.bf16.msra.mxu1 %v19318_v52  ;;  %3378 = vmatprep.subr.mxu0 %v19321_v27  ;;  %v3978_v12 = vand.u32 4294901760, %v3977_v60  ;;  %v19356_v15 = vpack.c.bf16 %v3473_v13, %v3461_v23  ;;  %v19364_v58 = vpack.c.bf16 %v3981_v37, %v3969_v0  ;;  %20901 = vst [vmem:[#allocation80_spill] sm:$0xff] %v19370_v50 }
  0xa1   :  { %3895 = vmatprep.subr.mxu1 %v19324_v35  ;;  %3439 = vmatprep.mubr.f32.mxu0 %v20860_v38  ;;  %v3972_v51 = vand.u32 4294901760, %v3971_v62  ;;  %v19351_v21 = vpack.c.bf16 %v3467_v4, %v3455_v45  ;;  %v3990_v16 = vand.u32 4294901760, %v3989_v32  ;;  %v19362_v62 = vpack.c.bf16 %v3464_v10, %v19297_v3 }
  0xa2   :  { %3956 = vmatprep.mubr.f32.mxu1 %v20860_v38  ;;  %20895 = vst [vmem:[#allocation74_spill] sm:$0xff] %v19356_v15  ;;  %20898 = vst [vmem:[#allocation77_spill] sm:$0xff] %v19364_v58  ;;  %v19366_v45 = vpack.c.bf16 %v3470_v8, %v3458_v29  ;;  %v48_v4 = vlaneseq  ;;  %v19372_v60 = vpack.c.bf16 %v3982_v24, %v3970_v40  ;;  %v19374_v13 = vpack.c.bf16 %v3471_v54, %v3459_v39 }
  0xa3   :  { %3380 = vmatpush1.msra.mxu0 %v19331_v20  ;;  %20893 = vst [vmem:[#allocation72_spill] sm:$0xff] %v19351_v21  ;;  %v19353_v18 = vpack.c.bf16 %v3984_v34, %v3972_v51  ;;  %v19359_v41 = vpack.c.bf16 %v3990_v16, %v3978_v12  ;;  %20897 = vst [vmem:[#allocation76_spill] sm:$0xff] %v19362_v62  ;;  %v19376_v23 = vpack.c.bf16 %v3988_v53, %v3976_v17 }
  0xa4   :  { %3897 = vmatpush1.msra.mxu1 %v19339_v1  ;;  %17320 = vmatprep.subr.bf16.mxu0 %v19351_v21  ;;  %20899 = vst [vmem:[#allocation78_spill] sm:$0xff] %v19366_v45  ;;  %20902 = vst [vmem:[#allocation81_spill] sm:$0xff] %v19372_v60  ;;  %v19378_v12 = vshrl.u32 %v48_v4, 7 }
  0xa5   :  { %20894 = vst [vmem:[#allocation73_spill] sm:$0xff] %v19353_v18  ;;  %17344 = vmatprep.subr.bf16.mxu1 %v19353_v18  ;;  %20896 = vst [vmem:[#allocation75_spill] sm:$0xff] %v19359_v41 }
  0xa6   :  { %20903 = vst [vmem:[#allocation82_spill] sm:$0xff] %v19374_v13  ;;  %20904 = vst [vmem:[#allocation83_spill] sm:$0xff] %v19376_v23  ;;  %v20697_v16 = vsub.s32 0, %v19378_v12  ;;  %v20698_v37 = vsub.s32 2, %v19378_v12  ;;  %v20699_v31 = vsub.s32 1, %v19378_v12  ;;  %v20702_v10 = vsub.s32 3, %v19378_v12 }
  0xa8   :  { %v51_v3 = vrot.slane %v46_v6, %v20697_v16  ;;  %v59_v29 = vrot.slane %v46_v6, %v20698_v37  ;;  %v55_v8 = vrot.slane %v46_v6, %v20699_v31  ;;  %v63_v40 = vrot.slane %v46_v6, %v20702_v10 }
 0x10e   :  { %v616_v26 = vpop.f32.mrb[0].mxu0  ;;  %v1156_v0 = vpop.f32.mrb[0].mxu1 }
 0x10f   :  { %v618_v39 = vpop.f32.mrb[1].mxu0  ;;  %v1158_v42 = vpop.f32.mrb[1].mxu1  ;;  %v19403_v16 = vadd.f32 %v616_v26, %v51_v3 }
 0x110   :  { %v19405_v37 = vadd.f32 %v618_v39, %v55_v8  ;;  %v19412_v26 = vadd.f32 %v1158_v42, %v63_v40 }
 0x112   :  { %v623_v24 = vpop.f32.mrb[2].mxu0  ;;  %v1163_v54 = vpop.f32.mrb[2].mxu1  ;;  %20909 = vst [vmem:[#allocation88_spill] sm:$0xff] %v19412_v26 }
 0x113   :  { %v19395_v17 = vadd.f32 %v623_v24, %v51_v3  ;;  %v19397_v53 = vadd.f32 %v1163_v54, %v59_v29  ;;  %v625_v51 = vpop.f32.mrb[3].mxu0  ;;  %v1165_v34 = vpop.f32.mrb[3].mxu1  ;;  %v19409_v54 = vadd.f32 %v1156_v0, %v59_v29  ;;  %v1193_v0 = vld [vmem:[%s20583_s2] sm:$0x7] }
 0x114   :  { %v19399_v32 = vadd.f32 %v625_v51, %v55_v8  ;;  %v19401_v4 = vadd.f32 %v1165_v34, %v63_v40 }
 0x115   :  { %20905 = vst [vmem:[#allocation84_spill] sm:$0xff] %v19395_v17  ;;  %20906 = vst [vmem:[#allocation85_spill] sm:$0xff] %v19397_v53 }
 0x116   :  { %20907 = vst [vmem:[#allocation86_spill] sm:$0xff] %v19399_v32  ;;  %20908 = vst [vmem:[#allocation87_spill] sm:$0xff] %v19401_v4  ;;  %v20928_v32 = vld [vmem:[#allocation14_spill] sm:$0xff] }
 0x13e   :  { %v1737_v31 = vpop.f32.mrb[4].mxu0  ;;  %v2254_v18 = vpop.f32.mrb[4].mxu1 }
 0x13f   :  { %v2259_v6 = vadd.f32 %v19403_v16, %v1737_v31  ;;  %v1739_v10 = vpop.f32.mrb[5].mxu0  ;;  %v2256_v21 = vpop.f32.mrb[5].mxu1  ;;  %v2261_v51 = vadd.f32 %v19409_v54, %v2254_v18 }
 0x140   :  { %v2260_v24 = vadd.f32 %v19405_v37, %v1739_v10  ;;  %v2262_v39 = vadd.f32 %v19412_v26, %v2256_v21 }
 0x141   :  { %v2263_v53 = vmul.f32 0.5, %v2259_v6 }
 0x142   :  { %v2267_v17 = vmul.f32 0.5, %v2260_v24  ;;  %v2272_v3 = vmul.f32 0.5, %v2262_v39  ;;  %v19427_v39 = vsub.f32 %v19308_v14, %v19324_v35 }
 0x143   :  { %18311 = vtanh.f32 %v2263_v53 }
 0x144   :  { %18313 = vtanh.f32 %v2267_v17  ;;  %20911 = vst [vmem:[#allocation90_spill] sm:$0xff] %v19427_v39 }
 0x145   :  { %18315 = vtanh.f32 %v2261_v51  ;;  %v19423_v51 = vsub.f32 %v19305_v2, %v19321_v27 }
 0x146   :  { %18317 = vtanh.f32 %v2272_v3 }
 0x147   :  { %20910 = vst [vmem:[#allocation89_spill] sm:$0xff] %v19423_v51  ;;  %v19441_v2 = vand.u32 4294901760, %v19423_v51 }
 0x149   :  { %20914 = vst [vmem:[#allocation93_spill] sm:$0xff] %v19441_v2 }
 0x14d   :  { %v18312_v8 = vpop.eup %18311 }
 0x14e   :  { %v18314_v31 = vpop.eup %18313  ;;  %v2265_v34 = vmul.f32 0.5, %v18312_v8  ;;  %v19432_v8 = vsub.f32 %v19327_v33, %v19331_v20 }
 0x14f   :  { %v2269_v4 = vmul.f32 0.5, %v18314_v31  ;;  %v18316_v29 = vpop.eup %18315  ;;  %v19436_v31 = vsub.f32 %v19334_v19, %v19339_v1 }
 0x150   :  { %v2266_v10 = vadd.f32 0.5, %v2265_v34  ;;  %v18318_v21 = vpop.eup %18317  ;;  %20912 = vst [vmem:[#allocation91_spill] sm:$0xff] %v19432_v8 }
 0x151   :  { %v2270_v53 = vadd.f32 0.5, %v2269_v4  ;;  %v2274_v40 = vmul.f32 0.5, %v18318_v21  ;;  %20913 = vst [vmem:[#allocation92_spill] sm:$0xff] %v19436_v31  ;;  %v19453_v33 = vand.u32 4294901760, %v19436_v31 }
 0x152   :  { %v2277_v18 = vmul.f32 %v18316_v29, %v2266_v10  ;;  %v19444_v10 = vand.u32 4294901760, %v19427_v39  ;;  %v3478_v29 = vsub.f32 %v19423_v51, %v19441_v2 }
 0x153   :  { %v2276_v17 = vmul.f32 %v2270_v53, %v1193_v0  ;;  %v2275_v6 = vadd.f32 0.5, %v2274_v40  ;;  %v19450_v0 = vand.u32 4294901760, %v19432_v8  ;;  %20917 = vst [vmem:[#allocation96_spill] sm:$0xff] %v19453_v33  ;;  %v4001_v21 = vsub.f32 %v19436_v31, %v19453_v33 }
 0x154   :  { %20915 = vst [vmem:[#allocation94_spill] sm:$0xff] %v19444_v10  ;;  %v3995_v53 = vsub.f32 %v19427_v39, %v19444_v10 }
 0x155   :  { %v19418_v42 = vadd.f32 %v2277_v18, %v2276_v17  ;;  %20916 = vst [vmem:[#allocation95_spill] sm:$0xff] %v19450_v0  ;;  %v3484_v17 = vsub.f32 %v19432_v8, %v19450_v0 }
 0x157   :  { %18319 = vtanh.f32 %v19418_v42 }
 0x161   :  { %v18320_v24 = vpop.eup %18319 }
 0x162   :  { %v2280_v3 = vmul.f32 %v18320_v24, %v2275_v6  ;;  %v19470_v6 = vand.u32 4294901760, %v3478_v29  ;;  %v19472_v24 = vand.u32 4294901760, %v3995_v53  ;;  %v20922_v29 = vld [vmem:[#allocation30_spill] sm:$0xff]  ;;  %v20923_v53 = vld [vmem:[#allocation31_spill] sm:$0xff] }
 0x164   :  { %v3355_v4 = vsel %vm1208_vm2, %v2280_v3, 0  ;;  %20918 = vst [vmem:[#allocation97_spill] sm:$0xff] %v19470_v6  ;;  %20919 = vst [vmem:[#allocation98_spill] sm:$0xff] %v19472_v24  ;;  %v19478_v3 = vand.u32 4294901760, %v3484_v17  ;;  %v20925_v17 = vld [vmem:[#allocation11_spill] sm:$0xff] }
 0x165   :  { %v19438_v34 = vand.u32 4294901760, %v3355_v4 }
 0x166   :  { %20920 = vst [vmem:[#allocation99_spill] sm:$0xff] %v19478_v3 }
 0x167   :  { %v19447_v14 = vsub.f32 %v3355_v4, %v19438_v34  ;;  %v19480_v4 = vand.u32 4294901760, %v4001_v21  ;;  %v20926_v21 = vld [vmem:[#allocation12_spill] sm:$0xff] }
 0x169   :  { %v19456_v19 = vand.u32 4294901760, %v19447_v14  ;;  %20921 = vst [vmem:[#allocation100_spill] sm:$0xff] %v19480_v4 }
 0x16b   :  { %v3443_v18 = vsub.f32 %v19447_v14, %v19456_v19 }
 0x16d   :  { %v19468_v40 = vand.u32 4294901760, %v3443_v18  ;;  %v20924_v18 = vld [vmem:[#allocation32_spill] sm:$0xff] }
 0x16f   :  { %3445 = vmatmul.mubr.f32.vlgmr.msra.gmra.mrb[6].mxu0 %v19468_v40  ;;  %3962 = vmatmul.mubr.f32.vlgmr.msra.gmra.mrb[6].mxu1 %v19468_v40 }
 0x170   :  { %17322 = vmatpush1.bf16.msra.mxu0 %v19356_v15  ;;  %17346 = vmatpush1.bf16.msra.mxu1 %v19359_v41 }
 0x171   :  { %3480 = vmatprep.subr.mxu0 %v19470_v6  ;;  %3997 = vmatprep.subr.mxu1 %v19472_v24 }
 0x172   :  { %3545 = vmatprep.mubr.f32.mxu0 %v20860_v38  ;;  %4062 = vmatprep.mubr.f32.mxu1 %v20860_v38 }
 0x174   :  { %3486 = vmatpush1.msra.mxu0 %v19478_v3  ;;  %4003 = vmatpush1.msra.mxu1 %v19480_v4 }
 0x175   :  { %17324 = vmatprep.subr.bf16.mxu0 %v19362_v62  ;;  %17348 = vmatprep.subr.bf16.mxu1 %v19364_v58 }
 0x177   :  { %3547 = vmatmul.mubr.f32.vlgmr.msra.gmra.mrb[6].mxu0 %v19438_v34  ;;  %4064 = vmatmul.mubr.f32.vlgmr.msra.gmra.mrb[6].mxu1 %v19438_v34 }
 0x178   :  { %17326 = vmatpush1.bf16.msra.mxu0 %v19366_v45  ;;  %17350 = vmatpush1.bf16.msra.mxu1 %v19368_v47 }
 0x179   :  { %3567 = vmatprep.subr.mxu0 %v19423_v51  ;;  %4084 = vmatprep.subr.mxu1 %v19427_v39 }
 0x17a   :  { %3629 = vmatprep.mubr.f32.mxu0 %v20860_v38  ;;  %4146 = vmatprep.mubr.f32.mxu1 %v20860_v38 }
 0x17c   :  { %3570 = vmatpush1.msra.mxu0 %v19432_v8  ;;  %4087 = vmatpush1.msra.mxu1 %v19436_v31 }
 0x17d   :  { %17328 = vmatprep.subr.bf16.mxu0 %v19289_v55  ;;  %17352 = vmatprep.subr.bf16.mxu1 %v19300_v5 }
 0x17f   :  { %3632 = vmatmul.mubr.f32.vlgmr.msra.gmra.mrb[6].mxu0 %v19447_v14  ;;  %4149 = vmatmul.mubr.f32.vlgmr.msra.gmra.mrb[6].mxu1 %v19447_v14 }
 0x180   :  { %17330 = vmatpush1.bf16.msra.mxu0 %v19302_v30  ;;  %17354 = vmatpush1.bf16.msra.mxu1 %v19318_v52 }
 0x181   :  { %3647 = vmatprep.subr.mxu0 %v19321_v27  ;;  %4164 = vmatprep.subr.mxu1 %v19324_v35 }
 0x182   :  { %3708 = vmatprep.mubr.f32.mxu0 %v20860_v38  ;;  %4225 = vmatprep.mubr.f32.mxu1 %v20860_v38 }
 0x184   :  { %3649 = vmatpush1.msra.mxu0 %v19331_v20  ;;  %4166 = vmatpush1.msra.mxu1 %v19339_v1 }
 0x185   :  { %17332 = vmatprep.subr.bf16.mxu0 %v19370_v50  ;;  %17356 = vmatprep.subr.bf16.mxu1 %v19372_v60 }
 0x187   :  { %3712 = vmatmul.mubr.f32.vlgmr.msra.gmra.mrb[6].mxu0 %v19456_v19  ;;  %4229 = vmatmul.mubr.f32.vlgmr.msra.gmra.mrb[6].mxu1 %v19456_v19 }
 0x188   :  { %17334 = vmatpush1.bf16.msra.mxu0 %v19374_v13  ;;  %17358 = vmatpush1.bf16.msra.mxu1 %v19376_v23 }
 0x189   :  { %3737 = vmatprep.subr.mxu0 %v19441_v2  ;;  %4254 = vmatprep.subr.mxu1 %v19444_v10 }
 0x18a   :  { %3800 = vmatprep.mubr.f32.mxu0 %v20860_v38  ;;  %4317 = vmatprep.mubr.f32.mxu1 %v20860_v38 }
 0x18c   :  { %3741 = vmatpush1.msra.mxu0 %v19450_v0  ;;  %4258 = vmatpush1.msra.mxu1 %v19453_v33 }
 0x18d   :  { %17336 = vmatprep.subr.bf16.mxu0 %v19289_v55  ;;  %17360 = vmatprep.subr.bf16.mxu1 %v19300_v5 }
 0x18f   :  { %3802 = vmatmul.mubr.f32.vlgmr.msra.gmra.mrb[6].mxu0 %v19438_v34  ;;  %4319 = vmatmul.mubr.f32.vlgmr.msra.gmra.mrb[6].mxu1 %v19438_v34 }
 0x190   :  { %17338 = vmatpush1.bf16.msra.mxu0 %v19302_v30  ;;  %17362 = vmatpush1.bf16.msra.mxu1 %v19318_v52 }
 0x191   :  { %3817 = vmatprep.subr.mxu0 %v19321_v27  ;;  %4334 = vmatprep.subr.mxu1 %v19324_v35 }
 0x192   :  { %3878 = vmatprep.mubr.f32.mxu0 %v20860_v38  ;;  %4395 = vmatprep.mubr.f32.mxu1 %v20860_v38 }
 0x194   :  { %3819 = vmatpush1.msra.mxu0 %v19331_v20  ;;  %4336 = vmatpush1.msra.mxu1 %v19339_v1 }
 0x195   :  { %17364 = vmatprep.subr.bf16.mxu0 %v18748_v56  ;;  %17388 = vmatprep.subr.bf16.mxu1 %v18762_v63 }
 0x197   :  { %3880 = vmatmul.mubr.f32.vlgmr.msra.gmra.mrb[6].mxu0 %v19438_v34  ;;  %4397 = vmatmul.mubr.f32.vlgmr.msra.gmra.mrb[6].mxu1 %v19438_v34 }
 0x198   :  { %17366 = vmatpush1.bf16.msra.mxu0 %v18833_v25  ;;  %17390 = vmatpush1.bf16.msra.mxu1 %v18839_v22 }
 0x199   :  { %4434 = vmatprep.subr.mxu0 %v18750_v57  ;;  %4951 = vmatprep.subr.mxu1 %v18757_v59 }
 0x19a   :  { %4495 = vmatprep.mubr.f32.mxu0 %v20860_v38  ;;  %5012 = vmatprep.mubr.f32.mxu1 %v20860_v38 }
 0x19c   :  { %4436 = vmatpush1.msra.mxu0 %v18777_v7  ;;  %4953 = vmatpush1.msra.mxu1 %v18779_v9 }
 0x19d   :  { %4501 = vmatmul.mubr.f32.vlgmr.msra.gmra.mrb[8].mxu0 %v19468_v40  ;;  %5018 = vmatmul.mubr.f32.vlgmr.msra.gmra.mrb[8].mxu1 %v19468_v40  ;;  %v20927_v40 = vld [vmem:[#allocation13_spill] sm:$0xff] }
 0x19e   :  { %17368 = vmatprep.subr.bf16.mxu0 %v18867_v43  ;;  %17392 = vmatprep.subr.bf16.mxu1 %v18869_v44  ;;  %v20950_v44 = vsub.s32 2, %v19378_v12 }
 0x19f   :  { %17370 = vmatpush1.bf16.msra.mxu0 %v18873_v48  ;;  %17394 = vmatpush1.bf16.msra.mxu1 %v18877_v49 }
 0x1a0   :  { %4536 = vmatprep.subr.mxu0 %v18885_v46  ;;  %5053 = vmatprep.subr.mxu1 %v18887_v61  ;;  %v20949_v61 = vsub.s32 1, %v19378_v12 }
 0x1a1   :  { %4601 = vmatprep.mubr.f32.mxu0 %v20860_v38  ;;  %5118 = vmatprep.mubr.f32.mxu1 %v20860_v38 }
 0x1a3   :  { %4542 = vmatpush1.msra.mxu0 %v18893_v11  ;;  %5059 = vmatpush1.msra.mxu1 %v18895_v28  ;;  %v20947_v28 = vsub.s32 0, %v19378_v12 }
 0x1a4   :  { %17372 = vmatprep.subr.bf16.mxu0 %v18901_v36  ;;  %17396 = vmatprep.subr.bf16.mxu1 %v20922_v29  ;;  %v20945_v29 = vld [vmem:[#allocation46_spill] sm:$0xff]  ;;  %v20946_v36 = vld [vmem:[#allocation49_spill] sm:$0xff] }
 0x1a5   :  { %4603 = vmatmul.mubr.f32.vlgmr.msra.gmra.mrb[8].mxu0 %v19438_v34  ;;  %5120 = vmatmul.mubr.f32.vlgmr.msra.gmra.mrb[8].mxu1 %v19438_v34 }
 0x1a6   :  { %17374 = vmatpush1.bf16.msra.mxu0 %v20923_v53  ;;  %17398 = vmatpush1.bf16.msra.mxu1 %v20924_v18  ;;  %v20934_v18 = vld [vmem:[#allocation18_spill] sm:$0xff]  ;;  %v20935_v53 = vld [vmem:[#allocation19_spill] sm:$0xff] }
 0x1a7   :  { %4623 = vmatprep.subr.mxu0 %v20925_v17  ;;  %5140 = vmatprep.subr.mxu1 %v20926_v21  ;;  %v20932_v21 = vld [vmem:[#allocation36_spill] sm:$0xff]  ;;  %v20933_v17 = vld [vmem:[#allocation17_spill] sm:$0xff] }
 0x1a8   :  { %4685 = vmatprep.mubr.f32.mxu0 %v20860_v38  ;;  %5202 = vmatprep.mubr.f32.mxu1 %v20860_v38 }
 0x1aa   :  { %4626 = vmatpush1.msra.mxu0 %v20927_v40  ;;  %5143 = vmatpush1.msra.mxu1 %v20928_v32  ;;  %v20929_v32 = vld [vmem:[#allocation33_spill] sm:$0xff]  ;;  %v20930_v40 = vld [vmem:[#allocation34_spill] sm:$0xff] }
 0x1ab   :  { %17376 = vmatprep.subr.bf16.mxu0 %v18748_v56  ;;  %17400 = vmatprep.subr.bf16.mxu1 %v18762_v63 }
 0x1ad   :  { %4688 = vmatmul.mubr.f32.vlgmr.msra.gmra.mrb[8].mxu0 %v19447_v14  ;;  %5205 = vmatmul.mubr.f32.vlgmr.msra.gmra.mrb[8].mxu1 %v19447_v14  ;;  %v20931_v14 = vld [vmem:[#allocation35_spill] sm:$0xff] }
 0x1ae   :  { %17378 = vmatpush1.bf16.msra.mxu0 %v18833_v25  ;;  %17402 = vmatpush1.bf16.msra.mxu1 %v18839_v22 }
 0x1af   :  { %4703 = vmatprep.subr.mxu0 %v18750_v57  ;;  %5220 = vmatprep.subr.mxu1 %v18757_v59 }
 0x1b0   :  { %4764 = vmatprep.mubr.f32.mxu0 %v20860_v38  ;;  %5281 = vmatprep.mubr.f32.mxu1 %v20860_v38 }
 0x1b2   :  { %4705 = vmatpush1.msra.mxu0 %v18777_v7  ;;  %5222 = vmatpush1.msra.mxu1 %v18779_v9 }
 0x1b3   :  { %17380 = vmatprep.subr.bf16.mxu0 %v20929_v32  ;;  %17404 = vmatprep.subr.bf16.mxu1 %v20930_v40  ;;  %v20936_v32 = vld [vmem:[#allocation20_spill] sm:$0xff] }
 0x1b4   :  { %v20944_v40 = vld [vmem:[#allocation44_spill] sm:$0xff] }
 0x1b5   :  { %4768 = vmatmul.mubr.f32.vlgmr.msra.gmra.mrb[8].mxu0 %v19456_v19  ;;  %5285 = vmatmul.mubr.f32.vlgmr.msra.gmra.mrb[8].mxu1 %v19456_v19  ;;  %v20937_v19 = vld [vmem:[#allocation37_spill] sm:$0xff] }
 0x1b6   :  { %17382 = vmatpush1.bf16.msra.mxu0 %v20931_v14  ;;  %17406 = vmatpush1.bf16.msra.mxu1 %v20932_v21  ;;  %v20942_v21 = vld [vmem:[#allocation42_spill] sm:$0xff]  ;;  %v20943_v14 = vld [vmem:[#allocation43_spill] sm:$0xff] }
 0x1b7   :  { %4793 = vmatprep.subr.mxu0 %v20933_v17  ;;  %5310 = vmatprep.subr.mxu1 %v20934_v18  ;;  %v20940_v18 = vld [vmem:[#allocation40_spill] sm:$0xff]  ;;  %v20941_v17 = vld [vmem:[#allocation41_spill] sm:$0xff] }
 0x1b8   :  { %4856 = vmatprep.mubr.f32.mxu0 %v20860_v38  ;;  %5373 = vmatprep.mubr.f32.mxu1 %v20860_v38 }
 0x1ba   :  { %4797 = vmatpush1.msra.mxu0 %v20935_v53  ;;  %5314 = vmatpush1.msra.mxu1 %v20936_v32  ;;  %v20938_v32 = vld [vmem:[#allocation38_spill] sm:$0xff]  ;;  %v20939_v53 = vld [vmem:[#allocation39_spill] sm:$0xff] }
 0x1bb   :  { %17384 = vmatprep.subr.bf16.mxu0 %v18748_v56  ;;  %17408 = vmatprep.subr.bf16.mxu1 %v18762_v63 }
 0x1bd   :  { %4858 = vmatmul.mubr.f32.vlgmr.msra.gmra.mrb[8].mxu0 %v19438_v34  ;;  %5375 = vmatmul.mubr.f32.vlgmr.msra.gmra.mrb[8].mxu1 %v19438_v34 }
 0x1be   :  { %17386 = vmatpush1.bf16.msra.mxu0 %v18833_v25  ;;  %17410 = vmatpush1.bf16.msra.mxu1 %v18839_v22 }
 0x1bf   :  { %4873 = vmatprep.subr.mxu0 %v18750_v57  ;;  %5390 = vmatprep.subr.mxu1 %v18757_v59 }
 0x1c0   :  { %4934 = vmatprep.mubr.f32.mxu0 %v20860_v38  ;;  %5451 = vmatprep.mubr.f32.mxu1 %v20860_v38 }
 0x1c2   :  { %4875 = vmatpush1.msra.mxu0 %v18777_v7  ;;  %5392 = vmatpush1.msra.mxu1 %v18779_v9 }
 0x1c3   :  { %17412 = vmatprep.subr.bf16.mxu0 %v20937_v19  ;;  %17436 = vmatprep.subr.bf16.mxu1 %v20938_v32 }
 0x1c5   :  { %4936 = vmatmul.mubr.f32.vlgmr.msra.gmra.mrb[8].mxu0 %v19438_v34  ;;  %5453 = vmatmul.mubr.f32.vlgmr.msra.gmra.mrb[8].mxu1 %v19438_v34  ;;  %v1168_v34 = vld [vmem:[%s20589_s8] sm:$0xf] }
 0x1c6   :  { %17414 = vmatpush1.bf16.msra.mxu0 %v20939_v53  ;;  %17438 = vmatpush1.bf16.msra.mxu1 %v20940_v18  ;;  %v19627_v11 = vrot.slane %v1168_v34, %v20947_v28  ;;  %v19631_v46 = vrot.slane %v1168_v34, %v20949_v61  ;;  %v19635_v43 = vrot.slane %v1168_v34, %v20950_v44  ;;  %v20952_v28 = vsub.s32 3, %v19378_v12 }
 0x1c7   :  { %5508 = vmatprep.subr.mxu0 %v20941_v17  ;;  %6025 = vmatprep.subr.mxu1 %v20942_v21 }
 0x1c8   :  { %5569 = vmatprep.mubr.f32.mxu0 %v20860_v38  ;;  %6086 = vmatprep.mubr.f32.mxu1 %v20860_v38  ;;  %20948 = vst [vmem:[#allocation37_spill] sm:$0xff] %v19627_v11  ;;  %20951 = vst [vmem:[#allocation38_spill] sm:$0xff] %v19635_v43  ;;  %v19641_v22 = vrot.slane %v1168_v34, %v20952_v28 }
 0x1ca   :  { %5510 = vmatpush1.msra.mxu0 %v20943_v14  ;;  %6027 = vmatpush1.msra.mxu1 %v20944_v40  ;;  %20953 = vst [vmem:[#allocation39_spill] sm:$0xff] %v19641_v22 }
 0x1cb   :  { %17416 = vmatprep.subr.bf16.mxu0 %v20945_v29  ;;  %17440 = vmatprep.subr.bf16.mxu1 %v20946_v36 }
 0x26a   :  { %v3881_v49 = vpop.f32.mrb[6].mxu0  ;;  %v4398_v48 = vpop.f32.mrb[6].mxu1 }
 0x26b   :  { %v4403_v36 = vadd.f32 %v3881_v49, %v19627_v11  ;;  %v3883_v29 = vpop.f32.mrb[7].mxu0  ;;  %v4400_v9 = vpop.f32.mrb[7].mxu1  ;;  %v4405_v61 = vadd.f32 %v4398_v48, %v19635_v43  ;;  %v20958_v43 = vld [vmem:[#allocation58_spill] sm:$0xff] }
 0x26c   :  { %v4404_v7 = vadd.f32 %v3883_v29, %v19631_v46  ;;  %v4406_v44 = vadd.f32 %v4400_v9, %v19641_v22  ;;  %v20957_v22 = vld [vmem:[#allocation57_spill] sm:$0xff] }
 0x26d   :  { %v4407_v59 = vmul.f32 0.5, %v4403_v36 }
 0x26e   :  { %v4411_v57 = vmul.f32 0.5, %v4404_v7  ;;  %v4416_v25 = vmul.f32 0.5, %v4406_v44  ;;  %v17168_v7 = vld [vmem:[%s20583_s2 + $0x4] sm:$0x7] }
 0x26f   :  { %18321 = vtanh.f32 %v4407_v59 }
 0x270   :  { %18323 = vtanh.f32 %v4411_v57 }
 0x271   :  { %18325 = vtanh.f32 %v4405_v61 }
 0x272   :  { %18327 = vtanh.f32 %v4416_v25 }
 0x279   :  { %v18322_v63 = vpop.eup %18321 }
 0x27a   :  { %v18324_v49 = vpop.eup %18323  ;;  %v4409_v11 = vmul.f32 0.5, %v18322_v63 }
 0x27b   :  { %v4413_v56 = vmul.f32 0.5, %v18324_v49  ;;  %v18326_v36 = vpop.eup %18325 }
 0x27c   :  { %v4410_v29 = vadd.f32 0.5, %v4409_v11  ;;  %v18328_v57 = vpop.eup %18327 }
 0x27d   :  { %v4414_v12 = vadd.f32 0.5, %v4413_v56  ;;  %v4418_v9 = vmul.f32 0.5, %v18328_v57 }
 0x27e   :  { %v4421_v59 = vmul.f32 %v18326_v36, %v4410_v29 }
 0x27f   :  { %v4420_v34 = vmul.f32 %v17168_v7, %v4414_v12  ;;  %v4419_v28 = vadd.f32 0.5, %v4418_v9 }
 0x281   :  { %v19648_v48 = vadd.f32 %v4421_v59, %v4420_v34 }
 0x283   :  { %20954 = vst [vmem:[#allocation40_spill] sm:$0xff] %v19648_v48  ;;  %18329 = vtanh.f32 %v19648_v48 }
 0x28d   :  { %v18330_v61 = vpop.eup %18329 }
 0x28e   :  { %v4424_v63 = vmul.f32 %v18330_v61, %v4419_v28 }
 0x290   :  { %v5497_v25 = vsel %vm1208_vm2, %v4424_v63, 0  ;;  %17127 = vst.msk [vmem:[#allocation2] sm:$0x7] %vm17126_vm4, %v4424_v63  ;;  %v20955_v63 = vld [vmem:[#allocation53_spill] sm:$0xff] }
 0x291   :  { %v19653_v11 = vand.u32 4294901760, %v5497_v25 }
 0x293   :  { %v5571_v56 = vsub.f32 %v5497_v25, %v19653_v11  ;;  %v20956_v25 = vld [vmem:[#allocation56_spill] sm:$0xff] }
 0x295   :  { %v19656_v44 = vand.u32 4294901760, %v5571_v56 }
 0x297   :  { %v5573_v49 = vsub.f32 %v5571_v56, %v19656_v44 }
 0x298   :  { %v4937_v29 = vpop.f32.mrb[8].mxu0  ;;  %v5454_v7 = vpop.f32.mrb[8].mxu1 }
 0x299   :  { %v5463_v36 = vrot.slane %v4937_v29, 5  ;;  %v4939_v12 = vpop.f32.mrb[9].mxu0  ;;  %v5456_v59 = vpop.f32.mrb[9].mxu1  ;;  %v5574_v34 = vand.u32 4294901760, %v5573_v49  ;;  %v5465_v28 = vrot.slane %v5454_v7, 5 }
 0x29a   :  { %v5464_v57 = vrot.slane %v4939_v12, 5  ;;  %v5466_v7 = vrot.slane %v5456_v59, 5  ;;  %v20960_v12 = vld [vmem:[#allocation60_spill] sm:$0xff]  ;;  %v20965_v59 = vld [vmem:[#allocation45_spill] sm:$0xff] }
 0x29b   :  { %v5471_v9 = vadd.f32 %v19403_v16, %v5463_v36  ;;  %5575 = vmatmul.mubr.f32.vlgmr.msra.gmra.mrb[10].mxu0 %v5574_v34  ;;  %6092 = vmatmul.mubr.f32.vlgmr.msra.gmra.mrb[10].mxu1 %v5574_v34  ;;  %v5473_v49 = vadd.f32 %v19409_v54, %v5465_v28  ;;  %v20959_v36 = vld [vmem:[#allocation59_spill] sm:$0xff]  ;;  %v20961_v34 = vld [vmem:[#allocation61_spill] sm:$0xff]  ;;  %v20964_v28 = vld [vmem:[#allocation64_spill] sm:$0xff] }
 0x29c   :  { %v5472_v61 = vadd.f32 %v19405_v37, %v5464_v57  ;;  %17418 = vmatpush1.bf16.msra.mxu0 %v20955_v63  ;;  %17442 = vmatpush1.bf16.msra.mxu1 %v20956_v25  ;;  %v20962_v57 = vld [vmem:[#allocation62_spill] sm:$0xff] }
 0x29d   :  { %v5475_v48 = vmul.f32 0.5, %v5471_v9  ;;  %5610 = vmatprep.subr.mxu0 %v20957_v22  ;;  %6127 = vmatprep.subr.mxu1 %v20958_v43  ;;  %v5474_v9 = vadd.f32 %v19412_v26, %v5466_v7  ;;  %v20968_v7 = vld [vmem:[#allocation52_spill] sm:$0xff] }
 0x29e   :  { %v5479_v29 = vmul.f32 0.5, %v5472_v61  ;;  %5675 = vmatprep.mubr.f32.mxu0 %v20860_v38  ;;  %6192 = vmatprep.mubr.f32.mxu1 %v20860_v38  ;;  %v20966_v61 = vld [vmem:[#allocation47_spill] sm:$0xff] }
 0x29f   :  { %18331 = vtanh.f32 %v5475_v48  ;;  %v20963_v48 = vld [vmem:[#allocation63_spill] sm:$0xff] }
 0x2a0   :  { %18333 = vtanh.f32 %v5479_v29  ;;  %5616 = vmatpush1.msra.mxu0 %v20959_v36  ;;  %6133 = vmatpush1.msra.mxu1 %v20960_v12  ;;  %v5484_v29 = vmul.f32 0.5, %v5474_v9 }
 0x2a1   :  { %17420 = vmatprep.subr.bf16.mxu0 %v20961_v34  ;;  %17444 = vmatprep.subr.bf16.mxu1 %v20962_v57  ;;  %18335 = vtanh.f32 %v5473_v49  ;;  %v20967_v49 = vld [vmem:[#allocation51_spill] sm:$0xff] }
 0x2a2   :  { %18337 = vtanh.f32 %v5484_v29  ;;  %v20973_v29 = vld [vmem:[#allocation48_spill] sm:$0xff] }
 0x2a3   :  { %5677 = vmatmul.mubr.f32.vlgmr.msra.gmra.mrb[10].mxu0 %v19653_v11  ;;  %6194 = vmatmul.mubr.f32.vlgmr.msra.gmra.mrb[10].mxu1 %v19653_v11 }
 0x2a4   :  { %17422 = vmatpush1.bf16.msra.mxu0 %v20963_v48  ;;  %17446 = vmatpush1.bf16.msra.mxu1 %v20964_v28 }
 0x2a5   :  { %5697 = vmatprep.subr.mxu0 %v20965_v59  ;;  %6214 = vmatprep.subr.mxu1 %v20966_v61 }
 0x2a6   :  { %5759 = vmatprep.mubr.f32.mxu0 %v20860_v38  ;;  %6276 = vmatprep.mubr.f32.mxu1 %v20860_v38 }
 0x2a8   :  { %5700 = vmatpush1.msra.mxu0 %v20967_v49  ;;  %6217 = vmatpush1.msra.mxu1 %v20968_v7  ;;  %v5489_v7 = vrot.slane %v19418_v42, 5  ;;  %v20971_v42 = vld [vmem:[#allocation67_spill] sm:$0xff] }
 0x2a9   :  { %v18332_v26 = vpop.eup %18331  ;;  %17424 = vmatprep.subr.bf16.mxu0 %v20937_v19  ;;  %17448 = vmatprep.subr.bf16.mxu1 %v20938_v32 }
 0x2aa   :  { %v18334_v48 = vpop.eup %18333  ;;  %v5477_v28 = vmul.f32 0.5, %v18332_v26 }
 0x2ab   :  { %v5481_v57 = vmul.f32 0.5, %v18334_v48  ;;  %5762 = vmatmul.mubr.f32.vlgmr.msra.gmra.mrb[10].mxu0 %v5571_v56  ;;  %6279 = vmatmul.mubr.f32.vlgmr.msra.gmra.mrb[10].mxu1 %v5571_v56  ;;  %v18336_v9 = vpop.eup %18335  ;;  %v20969_v48 = vld [vmem:[#allocation65_spill] sm:$0xff] }
 0x2ac   :  { %v5478_v61 = vadd.f32 0.5, %v5477_v28  ;;  %17426 = vmatpush1.bf16.msra.mxu0 %v20939_v53  ;;  %17450 = vmatpush1.bf16.msra.mxu1 %v20940_v18  ;;  %v20972_v28 = vld [vmem:[#allocation68_spill] sm:$0xff] }
 0x2ad   :  { %v5482_v49 = vadd.f32 0.5, %v5481_v57  ;;  %5777 = vmatprep.subr.mxu0 %v20941_v17  ;;  %6294 = vmatprep.subr.mxu1 %v20942_v21  ;;  %v20970_v57 = vld [vmem:[#allocation66_spill] sm:$0xff] }
 0x2ae   :  { %v5492_v59 = vmul.f32 %v18336_v9, %v5478_v61  ;;  %5838 = vmatprep.mubr.f32.mxu0 %v20860_v38  ;;  %6355 = vmatprep.mubr.f32.mxu1 %v20860_v38  ;;  %v18338_v61 = vpop.eup %18337  ;;  %v20976_v9 = vld [vmem:[#allocation55_spill] sm:$0xff] }
 0x2af   :  { %v5491_v26 = vmul.f32 %v5489_v7, %v5482_v49  ;;  %v20974_v49 = vld [vmem:[#allocation50_spill] sm:$0xff] }
 0x2b0   :  { %5779 = vmatpush1.msra.mxu0 %v20943_v14  ;;  %6296 = vmatpush1.msra.mxu1 %v20944_v40  ;;  %v20975_v7 = vld [vmem:[#allocation54_spill] sm:$0xff] }
 0x2b1   :  { %v19694_v56 = vadd.f32 %v5492_v59, %v5491_v26  ;;  %17428 = vmatprep.subr.bf16.mxu0 %v20969_v48  ;;  %17452 = vmatprep.subr.bf16.mxu1 %v20970_v57  ;;  %v5486_v59 = vmul.f32 0.5, %v18338_v61 }
 0x2b3   :  { %18339 = vtanh.f32 %v19694_v56  ;;  %5842 = vmatmul.mubr.f32.vlgmr.msra.gmra.mrb[10].mxu0 %v19656_v44  ;;  %6359 = vmatmul.mubr.f32.vlgmr.msra.gmra.mrb[10].mxu1 %v19656_v44  ;;  %v5487_v44 = vadd.f32 0.5, %v5486_v59 }
 0x2b4   :  { %17430 = vmatpush1.bf16.msra.mxu0 %v20971_v42  ;;  %17454 = vmatpush1.bf16.msra.mxu1 %v20972_v28 }
 0x2b5   :  { %5867 = vmatprep.subr.mxu0 %v20973_v29  ;;  %6384 = vmatprep.subr.mxu1 %v20974_v49 }
 0x2b6   :  { %5930 = vmatprep.mubr.f32.mxu0 %v20860_v38  ;;  %6447 = vmatprep.mubr.f32.mxu1 %v20860_v38 }
 0x2b8   :  { %5871 = vmatpush1.msra.mxu0 %v20975_v7  ;;  %6388 = vmatpush1.msra.mxu1 %v20976_v9 }
 0x2b9   :  { %17432 = vmatprep.subr.bf16.mxu0 %v20937_v19  ;;  %17456 = vmatprep.subr.bf16.mxu1 %v20938_v32 }
 0x2bb   :  { %5932 = vmatmul.mubr.f32.vlgmr.msra.gmra.mrb[10].mxu0 %v19653_v11  ;;  %6449 = vmatmul.mubr.f32.vlgmr.msra.gmra.mrb[10].mxu1 %v19653_v11 }
 0x2bc   :  { %17434 = vmatpush1.bf16.msra.mxu0 %v20939_v53  ;;  %17458 = vmatpush1.bf16.msra.mxu1 %v20940_v18 }
 0x2bd   :  { %v18340_v26 = vpop.eup %18339  ;;  %5947 = vmatprep.subr.mxu0 %v20941_v17  ;;  %6464 = vmatprep.subr.mxu1 %v20942_v21 }
 0x2be   :  { %v5495_v61 = vmul.f32 %v18340_v26, %v5487_v44  ;;  %6008 = vmatprep.mubr.f32.mxu0 %v20860_v38  ;;  %6525 = vmatprep.mubr.f32.mxu1 %v20860_v38  ;;  %v20977_v26 = vld [vmem:[#allocation72_spill] sm:$0xff] }
 0x2c0   :  { %v6534_v9 = vrot.slane %v5495_v61, 3  ;;  %5949 = vmatpush1.msra.mxu0 %v20943_v14  ;;  %6466 = vmatpush1.msra.mxu1 %v20944_v40  ;;  %v20978_v61 = vld [vmem:[#allocation73_spill] sm:$0xff] }
 0x2c1   :  { %17460 = vmatprep.subr.bf16.mxu0 %v19289_v55  ;;  %17484 = vmatprep.subr.bf16.mxu1 %v19300_v5 }
 0x2c2   :  { %v6535_v59 = vsel %vm1208_vm2, %v6534_v9, 0 }
 0x2c3   :  { %v19724_v7 = vand.u32 4294901760, %v6535_v59  ;;  %6010 = vmatmul.mubr.f32.vlgmr.msra.gmra.mrb[10].mxu0 %v19653_v11  ;;  %6527 = vmatmul.mubr.f32.vlgmr.msra.gmra.mrb[10].mxu1 %v19653_v11 }
 0x2c4   :  { %17462 = vmatpush1.bf16.msra.mxu0 %v19302_v30  ;;  %17486 = vmatpush1.bf16.msra.mxu1 %v19318_v52 }
 0x2c5   :  { %v19731_v44 = vsub.f32 %v6535_v59, %v19724_v7  ;;  %6546 = vmatprep.subr.mxu0 %v19321_v27  ;;  %7063 = vmatprep.subr.mxu1 %v19324_v35 }
 0x2c6   :  { %6607 = vmatprep.mubr.f32.mxu0 %v20860_v38  ;;  %7124 = vmatprep.mubr.f32.mxu1 %v20860_v38 }
 0x2c7   :  { %v19738_v9 = vand.u32 4294901760, %v19731_v44 }
 0x2c8   :  { %6548 = vmatpush1.msra.mxu0 %v19331_v20  ;;  %7065 = vmatpush1.msra.mxu1 %v19339_v1 }
 0x2c9   :  { %v6611_v11 = vsub.f32 %v19731_v44, %v19738_v9  ;;  %17464 = vmatprep.subr.bf16.mxu0 %v20977_v26  ;;  %17488 = vmatprep.subr.bf16.mxu1 %v20978_v61 }
 0x2cb   :  { %v19746_v59 = vand.u32 4294901760, %v6611_v11  ;;  %v20979_v11 = vld [vmem:[#allocation5_spill] sm:$0xff] }
 0x2cd   :  { %6613 = vmatmul.mubr.f32.vlgmr.msra.gmra.mrb[10].mxu0 %v19746_v59  ;;  %7130 = vmatmul.mubr.f32.vlgmr.msra.gmra.mrb[10].mxu1 %v19746_v59 }
 0x2ce   :  { %17466 = vmatpush1.bf16.msra.mxu0 %v19356_v15  ;;  %17490 = vmatpush1.bf16.msra.mxu1 %v19359_v41 }
 0x2cf   :  { %6648 = vmatprep.subr.mxu0 %v19470_v6  ;;  %7165 = vmatprep.subr.mxu1 %v19472_v24 }
 0x2d0   :  { %6713 = vmatprep.mubr.f32.mxu0 %v20860_v38  ;;  %7230 = vmatprep.mubr.f32.mxu1 %v20860_v38 }
 0x2d2   :  { %6654 = vmatpush1.msra.mxu0 %v19478_v3  ;;  %7171 = vmatpush1.msra.mxu1 %v19480_v4 }
 0x2d3   :  { %17468 = vmatprep.subr.bf16.mxu0 %v19362_v62  ;;  %17492 = vmatprep.subr.bf16.mxu1 %v19364_v58  ;;  %v20994_v58 = vld [vmem:[#allocation28_spill] sm:$0xff] }
 0x2d5   :  { %6715 = vmatmul.mubr.f32.vlgmr.msra.gmra.mrb[10].mxu0 %v19724_v7  ;;  %7232 = vmatmul.mubr.f32.vlgmr.msra.gmra.mrb[10].mxu1 %v19724_v7 }
 0x2d6   :  { %17470 = vmatpush1.bf16.msra.mxu0 %v19366_v45  ;;  %17494 = vmatpush1.bf16.msra.mxu1 %v19368_v47  ;;  %v20992_v47 = vld [vmem:[#allocation26_spill] sm:$0xff]  ;;  %v20993_v45 = vld [vmem:[#allocation27_spill] sm:$0xff] }
 0x2d7   :  { %6735 = vmatprep.subr.mxu0 %v19423_v51  ;;  %7252 = vmatprep.subr.mxu1 %v19427_v39  ;;  %v20990_v39 = vld [vmem:[#allocation24_spill] sm:$0xff]  ;;  %v20991_v51 = vld [vmem:[#allocation25_spill] sm:$0xff] }
 0x2d8   :  { %6797 = vmatprep.mubr.f32.mxu0 %v20860_v38  ;;  %7314 = vmatprep.mubr.f32.mxu1 %v20860_v38 }
 0x2da   :  { %6738 = vmatpush1.msra.mxu0 %v19432_v8  ;;  %7255 = vmatpush1.msra.mxu1 %v19436_v31  ;;  %v20988_v31 = vld [vmem:[#allocation22_spill] sm:$0xff]  ;;  %v20989_v8 = vld [vmem:[#allocation23_spill] sm:$0xff] }
 0x2db   :  { %17472 = vmatprep.subr.bf16.mxu0 %v19289_v55  ;;  %17496 = vmatprep.subr.bf16.mxu1 %v19300_v5 }
 0x2dd   :  { %6800 = vmatmul.mubr.f32.vlgmr.msra.gmra.mrb[10].mxu0 %v19731_v44  ;;  %7317 = vmatmul.mubr.f32.vlgmr.msra.gmra.mrb[10].mxu1 %v19731_v44 }
 0x2de   :  { %17474 = vmatpush1.bf16.msra.mxu0 %v19302_v30  ;;  %17498 = vmatpush1.bf16.msra.mxu1 %v19318_v52 }
 0x2df   :  { %6815 = vmatprep.subr.mxu0 %v19321_v27  ;;  %7332 = vmatprep.subr.mxu1 %v19324_v35 }
 0x2e0   :  { %6876 = vmatprep.mubr.f32.mxu0 %v20860_v38  ;;  %7393 = vmatprep.mubr.f32.mxu1 %v20860_v38 }
 0x2e2   :  { %6817 = vmatpush1.msra.mxu0 %v19331_v20  ;;  %7334 = vmatpush1.msra.mxu1 %v19339_v1 }
 0x2e3   :  { %17476 = vmatprep.subr.bf16.mxu0 %v19370_v50  ;;  %17500 = vmatprep.subr.bf16.mxu1 %v19372_v60  ;;  %v20986_v60 = vld [vmem:[#allocation10_spill] sm:$0xff]  ;;  %v20987_v50 = vld [vmem:[#allocation21_spill] sm:$0xff] }
 0x2e5   :  { %6880 = vmatmul.mubr.f32.vlgmr.msra.gmra.mrb[10].mxu0 %v19738_v9  ;;  %7397 = vmatmul.mubr.f32.vlgmr.msra.gmra.mrb[10].mxu1 %v19738_v9 }
 0x2e6   :  { %17478 = vmatpush1.bf16.msra.mxu0 %v19374_v13  ;;  %17502 = vmatpush1.bf16.msra.mxu1 %v19376_v23  ;;  %v20984_v23 = vld [vmem:[#allocation7_spill] sm:$0xff]  ;;  %v20985_v13 = vld [vmem:[#allocation9_spill] sm:$0xff] }
 0x2e7   :  { %6905 = vmatprep.subr.mxu0 %v19441_v2  ;;  %7422 = vmatprep.subr.mxu1 %v19444_v10  ;;  %v20982_v10 = vld [vmem:[#allocation16_spill] sm:$0xff]  ;;  %v20983_v2 = vld [vmem:[#allocation6_spill] sm:$0xff] }
 0x2e8   :  { %6968 = vmatprep.mubr.f32.mxu0 %v20860_v38  ;;  %7485 = vmatprep.mubr.f32.mxu1 %v20860_v38 }
 0x2ea   :  { %6909 = vmatpush1.msra.mxu0 %v19450_v0  ;;  %7426 = vmatpush1.msra.mxu1 %v19453_v33  ;;  %v20980_v33 = vld [vmem:[#allocation8_spill] sm:$0xff]  ;;  %v20981_v0 = vld [vmem:[#allocation15_spill] sm:$0xff] }
 0x2eb   :  { %17480 = vmatprep.subr.bf16.mxu0 %v19289_v55  ;;  %17504 = vmatprep.subr.bf16.mxu1 %v19300_v5 }
 0x2ed   :  { %6970 = vmatmul.mubr.f32.vlgmr.msra.gmra.mrb[10].mxu0 %v19724_v7  ;;  %7487 = vmatmul.mubr.f32.vlgmr.msra.gmra.mrb[10].mxu1 %v19724_v7 }
 0x2ee   :  { %17482 = vmatpush1.bf16.msra.mxu0 %v19302_v30  ;;  %17506 = vmatpush1.bf16.msra.mxu1 %v19318_v52 }
 0x2ef   :  { %6985 = vmatprep.subr.mxu0 %v19321_v27  ;;  %7502 = vmatprep.subr.mxu1 %v19324_v35 }
 0x2f0   :  { %7046 = vmatprep.mubr.f32.mxu0 %v20860_v38  ;;  %7563 = vmatprep.mubr.f32.mxu1 %v20860_v38 }
 0x2f2   :  { %6987 = vmatpush1.msra.mxu0 %v19331_v20  ;;  %7504 = vmatpush1.msra.mxu1 %v19339_v1 }
 0x2f3   :  { %17508 = vmatprep.subr.bf16.mxu0 %v20979_v11  ;;  %17532 = vmatprep.subr.bf16.mxu1 %v20980_v33 }
 0x2f5   :  { %7048 = vmatmul.mubr.f32.vlgmr.msra.gmra.mrb[10].mxu0 %v19724_v7  ;;  %7565 = vmatmul.mubr.f32.vlgmr.msra.gmra.mrb[10].mxu1 %v19724_v7 }
 0x2f6   :  { %17510 = vmatpush1.bf16.msra.mxu0 %v20981_v0  ;;  %17534 = vmatpush1.bf16.msra.mxu1 %v20982_v10 }
 0x2f7   :  { %7602 = vmatprep.subr.mxu0 %v20983_v2  ;;  %8119 = vmatprep.subr.mxu1 %v20984_v23 }
 0x2f8   :  { %7663 = vmatprep.mubr.f32.mxu0 %v20860_v38  ;;  %8180 = vmatprep.mubr.f32.mxu1 %v20860_v38 }
 0x2fa   :  { %7604 = vmatpush1.msra.mxu0 %v20985_v13  ;;  %8121 = vmatpush1.msra.mxu1 %v20986_v60 }
 0x2fb   :  { %7669 = vmatmul.mubr.f32.vlgmr.msra.gmra.mrb[12].mxu0 %v19746_v59  ;;  %8186 = vmatmul.mubr.f32.vlgmr.msra.gmra.mrb[12].mxu1 %v19746_v59  ;;  %v20995_v59 = vld [vmem:[#allocation29_spill] sm:$0xff] }
 0x2fc   :  { %17512 = vmatprep.subr.bf16.mxu0 %v20987_v50  ;;  %17536 = vmatprep.subr.bf16.mxu1 %v20988_v31  ;;  %v20996_v50 = vld [vmem:[#allocation30_spill] sm:$0xff] }
 0x2fd   :  { %17514 = vmatpush1.bf16.msra.mxu0 %v20989_v8  ;;  %17538 = vmatpush1.bf16.msra.mxu1 %v20990_v39  ;;  %v20997_v39 = vld [vmem:[#allocation31_spill] sm:$0xff]  ;;  %v21000_v8 = vld [vmem:[#allocation12_spill] sm:$0xff]  ;;  %v21014_v31 = vld [vmem:[#allocation38_spill] sm:$0xff] }
 0x2fe   :  { %7704 = vmatprep.subr.mxu0 %v20991_v51  ;;  %8221 = vmatprep.subr.mxu1 %v20992_v47  ;;  %v20998_v51 = vld [vmem:[#allocation32_spill] sm:$0xff]  ;;  %v20999_v47 = vld [vmem:[#allocation11_spill] sm:$0xff] }
 0x2ff   :  { %7769 = vmatprep.mubr.f32.mxu0 %v20860_v38  ;;  %8286 = vmatprep.mubr.f32.mxu1 %v20860_v38 }
 0x301   :  { %7710 = vmatpush1.msra.mxu0 %v20993_v45  ;;  %8227 = vmatpush1.msra.mxu1 %v20994_v58  ;;  %v21001_v58 = vld [vmem:[#allocation13_spill] sm:$0xff] }
 0x302   :  { %17516 = vmatprep.subr.bf16.mxu0 %v20995_v59  ;;  %17540 = vmatprep.subr.bf16.mxu1 %v20996_v50  ;;  %v21002_v59 = vld [vmem:[#allocation14_spill] sm:$0xff] }
 0x303   :  { %7771 = vmatmul.mubr.f32.vlgmr.msra.gmra.mrb[12].mxu0 %v19724_v7  ;;  %8288 = vmatmul.mubr.f32.vlgmr.msra.gmra.mrb[12].mxu1 %v19724_v7 }
 0x304   :  { %17518 = vmatpush1.bf16.msra.mxu0 %v20997_v39  ;;  %17542 = vmatpush1.bf16.msra.mxu1 %v20998_v51  ;;  %v21008_v51 = vld [vmem:[#allocation18_spill] sm:$0xff]  ;;  %v21009_v39 = vld [vmem:[#allocation19_spill] sm:$0xff] }
 0x305   :  { %7791 = vmatprep.subr.mxu0 %v20999_v47  ;;  %8308 = vmatprep.subr.mxu1 %v21000_v8  ;;  %v21006_v8 = vld [vmem:[#allocation36_spill] sm:$0xff]  ;;  %v21007_v47 = vld [vmem:[#allocation17_spill] sm:$0xff] }
 0x306   :  { %7853 = vmatprep.mubr.f32.mxu0 %v20860_v38  ;;  %8370 = vmatprep.mubr.f32.mxu1 %v20860_v38 }
 0x308   :  { %7794 = vmatpush1.msra.mxu0 %v21001_v58  ;;  %8311 = vmatpush1.msra.mxu1 %v21002_v59  ;;  %v21003_v59 = vld [vmem:[#allocation33_spill] sm:$0xff]  ;;  %v21004_v58 = vld [vmem:[#allocation34_spill] sm:$0xff] }
 0x309   :  { %17520 = vmatprep.subr.bf16.mxu0 %v20979_v11  ;;  %17544 = vmatprep.subr.bf16.mxu1 %v20980_v33 }
 0x30b   :  { %7856 = vmatmul.mubr.f32.vlgmr.msra.gmra.mrb[12].mxu0 %v19731_v44  ;;  %8373 = vmatmul.mubr.f32.vlgmr.msra.gmra.mrb[12].mxu1 %v19731_v44  ;;  %v21005_v44 = vld [vmem:[#allocation35_spill] sm:$0xff] }
 0x30c   :  { %17522 = vmatpush1.bf16.msra.mxu0 %v20981_v0  ;;  %17546 = vmatpush1.bf16.msra.mxu1 %v20982_v10 }
 0x30d   :  { %7871 = vmatprep.subr.mxu0 %v20983_v2  ;;  %8388 = vmatprep.subr.mxu1 %v20984_v23 }
 0x30e   :  { %7932 = vmatprep.mubr.f32.mxu0 %v20860_v38  ;;  %8449 = vmatprep.mubr.f32.mxu1 %v20860_v38 }
 0x310   :  { %7873 = vmatpush1.msra.mxu0 %v20985_v13  ;;  %8390 = vmatpush1.msra.mxu1 %v20986_v60 }
 0x311   :  { %17524 = vmatprep.subr.bf16.mxu0 %v21003_v59  ;;  %17548 = vmatprep.subr.bf16.mxu1 %v21004_v58  ;;  %v21010_v59 = vld [vmem:[#allocation20_spill] sm:$0xff] }
 0x313   :  { %7936 = vmatmul.mubr.f32.vlgmr.msra.gmra.mrb[12].mxu0 %v19738_v9  ;;  %8453 = vmatmul.mubr.f32.vlgmr.msra.gmra.mrb[12].mxu1 %v19738_v9  ;;  %v21011_v9 = vld [vmem:[#allocation46_spill] sm:$0xff] }
 0x314   :  { %17526 = vmatpush1.bf16.msra.mxu0 %v21005_v44  ;;  %17550 = vmatpush1.bf16.msra.mxu1 %v21006_v8 }
 0x315   :  { %7961 = vmatprep.subr.mxu0 %v21007_v47  ;;  %8478 = vmatprep.subr.mxu1 %v21008_v51  ;;  %v21013_v51 = vld [vmem:[#allocation37_spill] sm:$0xff] }
 0x316   :  { %8024 = vmatprep.mubr.f32.mxu0 %v20860_v38  ;;  %8541 = vmatprep.mubr.f32.mxu1 %v20860_v38 }
 0x318   :  { %7965 = vmatpush1.msra.mxu0 %v21009_v39  ;;  %8482 = vmatpush1.msra.mxu1 %v21010_v59  ;;  %v21012_v59 = vld [vmem:[#allocation49_spill] sm:$0xff] }
 0x319   :  { %17528 = vmatprep.subr.bf16.mxu0 %v20979_v11  ;;  %17552 = vmatprep.subr.bf16.mxu1 %v20980_v33 }
 0x31b   :  { %8026 = vmatmul.mubr.f32.vlgmr.msra.gmra.mrb[12].mxu0 %v19724_v7  ;;  %8543 = vmatmul.mubr.f32.vlgmr.msra.gmra.mrb[12].mxu1 %v19724_v7 }
 0x31c   :  { %17530 = vmatpush1.bf16.msra.mxu0 %v20981_v0  ;;  %17554 = vmatpush1.bf16.msra.mxu1 %v20982_v10 }
 0x31d   :  { %8041 = vmatprep.subr.mxu0 %v20983_v2  ;;  %8558 = vmatprep.subr.mxu1 %v20984_v23 }
 0x31e   :  { %8102 = vmatprep.mubr.f32.mxu0 %v20860_v38  ;;  %8619 = vmatprep.mubr.f32.mxu1 %v20860_v38 }
 0x320   :  { %8043 = vmatpush1.msra.mxu0 %v20985_v13  ;;  %8560 = vmatpush1.msra.mxu1 %v20986_v60  ;;  %v21015_v13 = vld [vmem:[#allocation39_spill] sm:$0xff] }
 0x321   :  { %17556 = vmatprep.subr.bf16.mxu0 %v20937_v19  ;;  %17580 = vmatprep.subr.bf16.mxu1 %v20938_v32 }
 0x323   :  { %8104 = vmatmul.mubr.f32.vlgmr.msra.gmra.mrb[12].mxu0 %v19724_v7  ;;  %8621 = vmatmul.mubr.f32.vlgmr.msra.gmra.mrb[12].mxu1 %v19724_v7 }
 0x324   :  { %17558 = vmatpush1.bf16.msra.mxu0 %v20939_v53  ;;  %17582 = vmatpush1.bf16.msra.mxu1 %v20940_v18 }
 0x325   :  { %8698 = vmatprep.subr.mxu0 %v20941_v17  ;;  %9215 = vmatprep.subr.mxu1 %v20942_v21 }
 0x326   :  { %8759 = vmatprep.mubr.f32.mxu0 %v20860_v38  ;;  %9276 = vmatprep.mubr.f32.mxu1 %v20860_v38 }
 0x328   :  { %8700 = vmatpush1.msra.mxu0 %v20943_v14  ;;  %9217 = vmatpush1.msra.mxu1 %v20944_v40 }
 0x329   :  { %17560 = vmatprep.subr.bf16.mxu0 %v21011_v9  ;;  %17584 = vmatprep.subr.bf16.mxu1 %v21012_v59 }
 0x3c8   :  { %v7049_v7 = vpop.f32.mrb[10].mxu0  ;;  %v7566_v39 = vpop.f32.mrb[10].mxu1 }
 0x3c9   :  { %v7571_v47 = vadd.f32 %v7049_v7, %v21013_v51  ;;  %v7051_v8 = vpop.f32.mrb[11].mxu0  ;;  %v7568_v44 = vpop.f32.mrb[11].mxu1  ;;  %v7573_v60 = vadd.f32 %v7566_v39, %v21014_v31 }
 0x3ca   :  { %v7572_v58 = vadd.f32 %v7051_v8, %v19631_v46  ;;  %v7574_v23 = vadd.f32 %v7568_v44, %v21015_v13  ;;  %v21016_v8 = vld [vmem:[#allocation40_spill] sm:$0xff] }
 0x3cb   :  { %v7575_v50 = vmul.f32 0.5, %v7571_v47 }
 0x3cc   :  { %v7579_v45 = vmul.f32 0.5, %v7572_v58  ;;  %v7584_v9 = vmul.f32 0.5, %v7574_v23 }
 0x3cd   :  { %18341 = vtanh.f32 %v7575_v50 }
 0x3ce   :  { %18343 = vtanh.f32 %v7579_v45 }
 0x3cf   :  { %18345 = vtanh.f32 %v7573_v60 }
 0x3d0   :  { %18347 = vtanh.f32 %v7584_v9 }
 0x3d7   :  { %v18342_v2 = vpop.eup %18341 }
 0x3d8   :  { %v18344_v59 = vpop.eup %18343  ;;  %v7577_v10 = vmul.f32 0.5, %v18342_v2 }
 0x3d9   :  { %v7581_v0 = vmul.f32 0.5, %v18344_v59  ;;  %v18346_v51 = vpop.eup %18345 }
 0x3da   :  { %v7578_v7 = vadd.f32 0.5, %v7577_v10  ;;  %v18348_v45 = vpop.eup %18347 }
 0x3db   :  { %v7582_v33 = vadd.f32 0.5, %v7581_v0  ;;  %v7586_v50 = vmul.f32 0.5, %v18348_v45 }
 0x3dc   :  { %v7589_v11 = vmul.f32 %v18346_v51, %v7578_v7 }
 0x3dd   :  { %v7588_v47 = vmul.f32 %v7582_v33, %v21016_v8  ;;  %v7587_v60 = vadd.f32 0.5, %v7586_v50  ;;  %v21018_v50 = vld [vmem:[#allocation84_spill] sm:$0xff] }
 0x3df   :  { %v19897_v58 = vadd.f32 %v7589_v11, %v7588_v47 }
 0x3e1   :  { %21017 = vst [vmem:[#allocation41_spill] sm:$0xff] %v19897_v58  ;;  %18349 = vtanh.f32 %v19897_v58 }
 0x3eb   :  { %v18350_v39 = vpop.eup %18349 }
 0x3ec   :  { %v7592_v23 = vmul.f32 %v18350_v39, %v7587_v60 }
 0x3ee   :  { %v8687_v44 = vsel %vm1208_vm2, %v7592_v23, 0  ;;  %17129 = vst.msk [vmem:[#allocation2 + $0x4] sm:$0x7] %vm17126_vm4, %v7592_v23 }
 0x3ef   :  { %v19902_v2 = vand.u32 4294901760, %v8687_v44 }
 0x3f1   :  { %v19905_v10 = vsub.f32 %v8687_v44, %v19902_v2  ;;  %v21019_v44 = vld [vmem:[#allocation86_spill] sm:$0xff] }
 0x3f3   :  { %v19908_v51 = vand.u32 4294901760, %v19905_v10 }
 0x3f5   :  { %v8763_v0 = vsub.f32 %v19905_v10, %v19908_v51 }
 0x3f6   :  { %v8105_v33 = vpop.f32.mrb[12].mxu0  ;;  %v8622_v11 = vpop.f32.mrb[12].mxu1 }
 0x3f7   :  { %v8631_v59 = vrot.slane %v8105_v33, 2  ;;  %v8107_v9 = vpop.f32.mrb[13].mxu0  ;;  %v8624_v7 = vpop.f32.mrb[13].mxu1  ;;  %v8764_v8 = vand.u32 4294901760, %v8763_v0  ;;  %v8633_v39 = vrot.slane %v8622_v11, 2 }
 0x3f8   :  { %v8632_v47 = vrot.slane %v8107_v9, 2  ;;  %v21024_v9 = vld [vmem:[#allocation87_spill] sm:$0xff] }
 0x3f9   :  { %v8639_v45 = vadd.f32 %v19403_v16, %v8631_v59  ;;  %v8643_v60 = vadd.f32 %v21018_v50, %v8631_v59  ;;  %8765 = vmatmul.mubr.f32.vlgmr.msra.gmra.mrb[14].mxu0 %v8764_v8  ;;  %9282 = vmatmul.mubr.f32.vlgmr.msra.gmra.mrb[14].mxu1 %v8764_v8  ;;  %v8641_v16 = vadd.f32 %v19409_v54, %v8633_v39  ;;  %v8634_v59 = vrot.slane %v8624_v7, 2  ;;  %v21025_v8 = vld [vmem:[#allocation64_spill] sm:$0xff] }
 0x3fa   :  { %v8640_v23 = vadd.f32 %v19405_v37, %v8632_v47  ;;  %v8644_v58 = vadd.f32 %v21019_v44, %v8632_v47  ;;  %17562 = vmatpush1.bf16.msra.mxu0 %v20955_v63  ;;  %17586 = vmatpush1.bf16.msra.mxu1 %v20956_v25  ;;  %v21020_v37 = vld [vmem:[#allocation85_spill] sm:$0xff] }
 0x3fb   :  { %v8647_v13 = vmul.f32 0.5, %v8639_v45  ;;  %v8648_v31 = vmul.f32 0.5, %v8643_v60  ;;  %8800 = vmatprep.subr.mxu0 %v20957_v22  ;;  %9317 = vmatprep.subr.mxu1 %v20958_v43  ;;  %v8645_v11 = vadd.f32 %v21020_v37, %v8633_v39  ;;  %v8646_v7 = vadd.f32 %v21024_v9, %v8634_v59  ;;  %v21026_v47 = vld [vmem:[#allocation45_spill] sm:$0xff]  ;;  %v21027_v45 = vld [vmem:[#allocation47_spill] sm:$0xff] }
 0x3fc   :  { %v8655_v33 = vmul.f32 0.5, %v8640_v23  ;;  %v8656_v0 = vmul.f32 0.5, %v8644_v58  ;;  %8865 = vmatprep.mubr.f32.mxu0 %v20860_v38  ;;  %9382 = vmatprep.mubr.f32.mxu1 %v20860_v38  ;;  %v21021_v58 = vld [vmem:[#allocation62_spill] sm:$0xff]  ;;  %v21028_v39 = vld [vmem:[#allocation51_spill] sm:$0xff] }
 0x3fd   :  { %18351 = vtanh.f32 %v8647_v13  ;;  %v21022_v13 = vld [vmem:[#allocation88_spill] sm:$0xff] }
 0x3fe   :  { %18353 = vtanh.f32 %v8648_v31  ;;  %8806 = vmatpush1.msra.mxu0 %v20959_v36  ;;  %9323 = vmatpush1.msra.mxu1 %v20960_v12  ;;  %v8642_v54 = vadd.f32 %v21022_v13, %v8634_v59  ;;  %v21023_v31 = vld [vmem:[#allocation63_spill] sm:$0xff] }
 0x3ff   :  { %18355 = vtanh.f32 %v8655_v33  ;;  %17564 = vmatprep.subr.bf16.mxu0 %v20961_v34  ;;  %17588 = vmatprep.subr.bf16.mxu1 %v21021_v58  ;;  %v8666_v33 = vmul.f32 0.5, %v8646_v7 }
 0x400   :  { %18357 = vtanh.f32 %v8656_v0  ;;  %v8665_v60 = vmul.f32 0.5, %v8642_v54  ;;  %v21029_v0 = vld [vmem:[#allocation52_spill] sm:$0xff] }
 0x401   :  { %18359 = vtanh.f32 %v8641_v16  ;;  %8867 = vmatmul.mubr.f32.vlgmr.msra.gmra.mrb[14].mxu0 %v19902_v2  ;;  %9384 = vmatmul.mubr.f32.vlgmr.msra.gmra.mrb[14].mxu1 %v19902_v2 }
 0x402   :  { %18361 = vtanh.f32 %v8645_v11  ;;  %17566 = vmatpush1.bf16.msra.mxu0 %v21023_v31  ;;  %17590 = vmatpush1.bf16.msra.mxu1 %v21025_v8 }
 0x403   :  { %8887 = vmatprep.subr.mxu0 %v21026_v47  ;;  %9404 = vmatprep.subr.mxu1 %v21027_v45  ;;  %18363 = vtanh.f32 %v8665_v60 }
 0x404   :  { %8949 = vmatprep.mubr.f32.mxu0 %v20860_v38  ;;  %9466 = vmatprep.mubr.f32.mxu1 %v20860_v38  ;;  %18365 = vtanh.f32 %v8666_v33 }
 0x406   :  { %8890 = vmatpush1.msra.mxu0 %v21028_v39  ;;  %9407 = vmatpush1.msra.mxu1 %v21029_v0  ;;  %v8674_v39 = vrot.slane %v19694_v56, 5 }
 0x407   :  { %v18352_v23 = vpop.eup %18351  ;;  %17568 = vmatprep.subr.bf16.mxu0 %v20937_v19  ;;  %17592 = vmatprep.subr.bf16.mxu1 %v20938_v32 }
 0x408   :  { %v18354_v16 = vpop.eup %18353  ;;  %v8651_v11 = vmul.f32 0.5, %v18352_v23 }
 0x409   :  { %v18356_v59 = vpop.eup %18355  ;;  %v8652_v13 = vmul.f32 0.5, %v18354_v16  ;;  %8952 = vmatmul.mubr.f32.vlgmr.msra.gmra.mrb[14].mxu0 %v19905_v10  ;;  %9469 = vmatmul.mubr.f32.vlgmr.msra.gmra.mrb[14].mxu1 %v19905_v10 }
 0x40a   :  { %v18358_v45 = vpop.eup %18357  ;;  %v8653_v47 = vadd.f32 0.5, %v8651_v11  ;;  %v8659_v8 = vmul.f32 0.5, %v18356_v59  ;;  %17570 = vmatpush1.bf16.msra.mxu0 %v20939_v53  ;;  %17594 = vmatpush1.bf16.msra.mxu1 %v20940_v18 }
 0x40b   :  { %v18360_v54 = vpop.eup %18359  ;;  %v8654_v7 = vadd.f32 0.5, %v8652_v13  ;;  %v8660_v0 = vmul.f32 0.5, %v18358_v45  ;;  %8967 = vmatprep.subr.mxu0 %v20941_v17  ;;  %9484 = vmatprep.subr.mxu1 %v20942_v21  ;;  %v21031_v13 = vld [vmem:[#allocation55_spill] sm:$0xff] }
 0x40c   :  { %v18362_v23 = vpop.eup %18361  ;;  %v8661_v16 = vadd.f32 0.5, %v8659_v8  ;;  %v8678_v31 = vmul.f32 %v18360_v54, %v8653_v47  ;;  %9028 = vmatprep.mubr.f32.mxu0 %v20860_v38  ;;  %9545 = vmatprep.mubr.f32.mxu1 %v20860_v38 }
 0x40d   :  { %v8662_v10 = vadd.f32 0.5, %v8660_v0  ;;  %v8679_v60 = vmul.f32 %v18362_v23, %v8654_v7 }
 0x40e   :  { %v8676_v11 = vmul.f32 %v8674_v39, %v8661_v16  ;;  %8969 = vmatpush1.msra.mxu0 %v20943_v14  ;;  %9486 = vmatpush1.msra.mxu1 %v20944_v40 }
 0x40f   :  { %v8677_v45 = vmul.f32 %v8674_v39, %v8662_v10  ;;  %17572 = vmatprep.subr.bf16.mxu0 %v20969_v48  ;;  %17596 = vmatprep.subr.bf16.mxu1 %v20970_v57  ;;  %v18364_v39 = vpop.eup %18363 }
 0x410   :  { %v8680_v8 = vadd.f32 %v8678_v31, %v8676_v11  ;;  %v18366_v31 = vpop.eup %18365  ;;  %v8669_v59 = vmul.f32 0.5, %v18364_v39 }
 0x411   :  { %v8681_v56 = vadd.f32 %v8679_v60, %v8677_v45  ;;  %9032 = vmatmul.mubr.f32.vlgmr.msra.gmra.mrb[14].mxu0 %v19908_v51  ;;  %9549 = vmatmul.mubr.f32.vlgmr.msra.gmra.mrb[14].mxu1 %v19908_v51  ;;  %v21030_v51 = vld [vmem:[#allocation54_spill] sm:$0xff]  ;;  %v8670_v54 = vmul.f32 0.5, %v18366_v31 }
 0x412   :  { %18367 = vtanh.f32 %v8680_v8  ;;  %v11852_v47 = vrot.slane %v8680_v8, 5  ;;  %17574 = vmatpush1.bf16.msra.mxu0 %v20971_v42  ;;  %17598 = vmatpush1.bf16.msra.mxu1 %v20972_v28  ;;  %v8671_v7 = vadd.f32 0.5, %v8669_v59 }
 0x413   :  { %18369 = vtanh.f32 %v8681_v56  ;;  %v11853_v33 = vrot.slane %v8681_v56, 5  ;;  %9057 = vmatprep.subr.mxu0 %v20973_v29  ;;  %9574 = vmatprep.subr.mxu1 %v20974_v49  ;;  %v8672_v16 = vadd.f32 0.5, %v8670_v54  ;;  %v21032_v54 = vld [vmem:[#allocation77_spill] sm:$0xff] }
 0x414   :  { %9120 = vmatprep.mubr.f32.mxu0 %v20860_v38  ;;  %9637 = vmatprep.mubr.f32.mxu1 %v20860_v38 }
 0x415   :  { %v19963_v0 = vsel %vm11851_vm5, %v11852_v47, %v11853_v33 }
 0x416   :  { %9061 = vmatpush1.msra.mxu0 %v21030_v51  ;;  %9578 = vmatpush1.msra.mxu1 %v21031_v13 }
 0x417   :  { %17576 = vmatprep.subr.bf16.mxu0 %v20937_v19  ;;  %17600 = vmatprep.subr.bf16.mxu1 %v20938_v32 }
 0x419   :  { %9122 = vmatmul.mubr.f32.vlgmr.msra.gmra.mrb[14].mxu0 %v19902_v2  ;;  %9639 = vmatmul.mubr.f32.vlgmr.msra.gmra.mrb[14].mxu1 %v19902_v2 }
 0x41a   :  { %17578 = vmatpush1.bf16.msra.mxu0 %v20939_v53  ;;  %17602 = vmatpush1.bf16.msra.mxu1 %v20940_v18 }
 0x41b   :  { %9137 = vmatprep.subr.mxu0 %v20941_v17  ;;  %9654 = vmatprep.subr.mxu1 %v20942_v21 }
 0x41c   :  { %v18368_v23 = vpop.eup %18367  ;;  %9198 = vmatprep.mubr.f32.mxu0 %v20860_v38  ;;  %9715 = vmatprep.mubr.f32.mxu1 %v20860_v38 }
 0x41d   :  { %v18370_v10 = vpop.eup %18369  ;;  %v8684_v60 = vmul.f32 %v18368_v23, %v8671_v7  ;;  %v21033_v7 = vld [vmem:[#allocation78_spill] sm:$0xff]  ;;  %v21034_v23 = vld [vmem:[#allocation79_spill] sm:$0xff] }
 0x41e   :  { %v8685_v11 = vmul.f32 %v18370_v10, %v8672_v16  ;;  %9139 = vmatpush1.msra.mxu0 %v20943_v14  ;;  %9656 = vmatpush1.msra.mxu1 %v20944_v40  ;;  %v21035_v16 = vld [vmem:[#allocation89_spill] sm:$0xff]  ;;  %v21036_v10 = vld [vmem:[#allocation90_spill] sm:$0xff] }
 0x41f   :  { %v9725_v45 = vrot.slane %v8684_v60, 6  ;;  %17604 = vmatprep.subr.bf16.mxu0 %v19289_v55  ;;  %17628 = vmatprep.subr.bf16.mxu1 %v19300_v5  ;;  %v21037_v60 = vld [vmem:[#allocation91_spill] sm:$0xff] }
 0x420   :  { %v9726_v8 = vrot.slane %v8685_v11, 6  ;;  %v21038_v11 = vld [vmem:[#allocation92_spill] sm:$0xff] }
 0x421   :  { %9200 = vmatmul.mubr.f32.vlgmr.msra.gmra.mrb[14].mxu0 %v19902_v2  ;;  %9717 = vmatmul.mubr.f32.vlgmr.msra.gmra.mrb[14].mxu1 %v19902_v2 }
 0x422   :  { %v9727_v56 = vsel %vm75_vm0, %v9725_v45, %v9726_v8  ;;  %17606 = vmatpush1.bf16.msra.mxu0 %v19302_v30  ;;  %17630 = vmatpush1.bf16.msra.mxu1 %v19318_v52  ;;  %v21039_v45 = vld [vmem:[#allocation80_spill] sm:$0xff]  ;;  %v21040_v8 = vld [vmem:[#allocation81_spill] sm:$0xff] }
 0x423   :  { %v9728_v47 = vsel %vm1208_vm2, %v9727_v56, 0  ;;  %9739 = vmatprep.subr.mxu0 %v19321_v27  ;;  %10256 = vmatprep.subr.mxu1 %v19324_v35  ;;  %v21041_v56 = vld [vmem:[#allocation82_spill] sm:$0xff] }
 0x424   :  { %v19988_v33 = vand.u32 4294901760, %v9728_v47  ;;  %9800 = vmatprep.mubr.f32.mxu0 %v20860_v38  ;;  %10317 = vmatprep.mubr.f32.mxu1 %v20860_v38 }
 0x426   :  { %v19994_v39 = vsub.f32 %v9728_v47, %v19988_v33  ;;  %9741 = vmatpush1.msra.mxu0 %v19331_v20  ;;  %10258 = vmatpush1.msra.mxu1 %v19339_v1  ;;  %v21042_v47 = vld [vmem:[#allocation83_spill] sm:$0xff] }
 0x427   :  { %17608 = vmatprep.subr.bf16.mxu0 %v20977_v26  ;;  %17632 = vmatprep.subr.bf16.mxu1 %v20978_v61 }
 0x428   :  { %v20000_v2 = vand.u32 4294901760, %v19994_v39 }
 0x42a   :  { %v9804_v31 = vsub.f32 %v19994_v39, %v20000_v2 }
 0x42c   :  { %v20005_v59 = vand.u32 4294901760, %v9804_v31  ;;  %v21043_v31 = vld [vmem:[#allocation93_spill] sm:$0xff] }
 0x42e   :  { %9806 = vmatmul.mubr.f32.vlgmr.msra.gmra.mrb[14].mxu0 %v20005_v59  ;;  %10323 = vmatmul.mubr.f32.vlgmr.msra.gmra.mrb[14].mxu1 %v20005_v59 }
 0x42f   :  { %17610 = vmatpush1.bf16.msra.mxu0 %v19356_v15  ;;  %17634 = vmatpush1.bf16.msra.mxu1 %v19359_v41 }
 0x430   :  { %9841 = vmatprep.subr.mxu0 %v19470_v6  ;;  %10358 = vmatprep.subr.mxu1 %v19472_v24  ;;  %v21062_v24 = vld [vmem:[#allocation28_spill] sm:$0xff] }
 0x431   :  { %9906 = vmatprep.mubr.f32.mxu0 %v20860_v38  ;;  %10423 = vmatprep.mubr.f32.mxu1 %v20860_v38 }
 0x433   :  { %9847 = vmatpush1.msra.mxu0 %v19478_v3  ;;  %10364 = vmatpush1.msra.mxu1 %v19480_v4  ;;  %v21060_v4 = vld [vmem:[#allocation26_spill] sm:$0xff]  ;;  %v21061_v3 = vld [vmem:[#allocation27_spill] sm:$0xff] }
 0x434   :  { %17612 = vmatprep.subr.bf16.mxu0 %v19362_v62  ;;  %17636 = vmatprep.subr.bf16.mxu1 %v21032_v54  ;;  %v21058_v54 = vld [vmem:[#allocation24_spill] sm:$0xff]  ;;  %v21059_v62 = vld [vmem:[#allocation25_spill] sm:$0xff] }
 0x436   :  { %9908 = vmatmul.mubr.f32.vlgmr.msra.gmra.mrb[14].mxu0 %v19988_v33  ;;  %10425 = vmatmul.mubr.f32.vlgmr.msra.gmra.mrb[14].mxu1 %v19988_v33 }
 0x437   :  { %17614 = vmatpush1.bf16.msra.mxu0 %v21033_v7  ;;  %17638 = vmatpush1.bf16.msra.mxu1 %v21034_v23  ;;  %v21056_v23 = vld [vmem:[#allocation22_spill] sm:$0xff]  ;;  %v21057_v7 = vld [vmem:[#allocation23_spill] sm:$0xff] }
 0x438   :  { %9928 = vmatprep.subr.mxu0 %v21035_v16  ;;  %10445 = vmatprep.subr.mxu1 %v21036_v10  ;;  %v21054_v10 = vld [vmem:[#allocation10_spill] sm:$0xff]  ;;  %v21055_v16 = vld [vmem:[#allocation21_spill] sm:$0xff] }
 0x439   :  { %9990 = vmatprep.mubr.f32.mxu0 %v20860_v38  ;;  %10507 = vmatprep.mubr.f32.mxu1 %v20860_v38 }
 0x43b   :  { %9931 = vmatpush1.msra.mxu0 %v21037_v60  ;;  %10448 = vmatpush1.msra.mxu1 %v21038_v11  ;;  %v21044_v11 = vld [vmem:[#allocation94_spill] sm:$0xff]  ;;  %v21045_v60 = vld [vmem:[#allocation95_spill] sm:$0xff] }
 0x43c   :  { %17616 = vmatprep.subr.bf16.mxu0 %v19289_v55  ;;  %17640 = vmatprep.subr.bf16.mxu1 %v19300_v5 }
 0x43e   :  { %9993 = vmatmul.mubr.f32.vlgmr.msra.gmra.mrb[14].mxu0 %v19994_v39  ;;  %10510 = vmatmul.mubr.f32.vlgmr.msra.gmra.mrb[14].mxu1 %v19994_v39 }
 0x43f   :  { %17618 = vmatpush1.bf16.msra.mxu0 %v19302_v30  ;;  %17642 = vmatpush1.bf16.msra.mxu1 %v19318_v52 }
 0x440   :  { %10008 = vmatprep.subr.mxu0 %v19321_v27  ;;  %10525 = vmatprep.subr.mxu1 %v19324_v35 }
 0x441   :  { %10069 = vmatprep.mubr.f32.mxu0 %v20860_v38  ;;  %10586 = vmatprep.mubr.f32.mxu1 %v20860_v38 }
 0x443   :  { %10010 = vmatpush1.msra.mxu0 %v19331_v20  ;;  %10527 = vmatpush1.msra.mxu1 %v19339_v1 }
 0x444   :  { %17620 = vmatprep.subr.bf16.mxu0 %v21039_v45  ;;  %17644 = vmatprep.subr.bf16.mxu1 %v21040_v8  ;;  %v21046_v45 = vld [vmem:[#allocation96_spill] sm:$0xff]  ;;  %v21053_v8 = vld [vmem:[#allocation9_spill] sm:$0xff] }
 0x446   :  { %10073 = vmatmul.mubr.f32.vlgmr.msra.gmra.mrb[14].mxu0 %v20000_v2  ;;  %10590 = vmatmul.mubr.f32.vlgmr.msra.gmra.mrb[14].mxu1 %v20000_v2 }
 0x447   :  { %17622 = vmatpush1.bf16.msra.mxu0 %v21041_v56  ;;  %17646 = vmatpush1.bf16.msra.mxu1 %v21042_v47  ;;  %v21051_v47 = vld [vmem:[#allocation6_spill] sm:$0xff]  ;;  %v21052_v56 = vld [vmem:[#allocation7_spill] sm:$0xff] }
 0x448   :  { %10098 = vmatprep.subr.mxu0 %v21043_v31  ;;  %10615 = vmatprep.subr.mxu1 %v21044_v11  ;;  %v21049_v11 = vld [vmem:[#allocation15_spill] sm:$0xff]  ;;  %v21050_v31 = vld [vmem:[#allocation16_spill] sm:$0xff] }
 0x449   :  { %10161 = vmatprep.mubr.f32.mxu0 %v20860_v38  ;;  %10678 = vmatprep.mubr.f32.mxu1 %v20860_v38 }
 0x44b   :  { %10102 = vmatpush1.msra.mxu0 %v21045_v60  ;;  %10619 = vmatpush1.msra.mxu1 %v21046_v45  ;;  %v21047_v45 = vld [vmem:[#allocation5_spill] sm:$0xff]  ;;  %v21048_v60 = vld [vmem:[#allocation8_spill] sm:$0xff] }
 0x44c   :  { %17624 = vmatprep.subr.bf16.mxu0 %v19289_v55  ;;  %17648 = vmatprep.subr.bf16.mxu1 %v19300_v5 }
 0x44e   :  { %10163 = vmatmul.mubr.f32.vlgmr.msra.gmra.mrb[14].mxu0 %v19988_v33  ;;  %10680 = vmatmul.mubr.f32.vlgmr.msra.gmra.mrb[14].mxu1 %v19988_v33 }
 0x44f   :  { %17626 = vmatpush1.bf16.msra.mxu0 %v19302_v30  ;;  %17650 = vmatpush1.bf16.msra.mxu1 %v19318_v52 }
 0x450   :  { %10178 = vmatprep.subr.mxu0 %v19321_v27  ;;  %10695 = vmatprep.subr.mxu1 %v19324_v35 }
 0x451   :  { %10239 = vmatprep.mubr.f32.mxu0 %v20860_v38  ;;  %10756 = vmatprep.mubr.f32.mxu1 %v20860_v38 }
 0x453   :  { %10180 = vmatpush1.msra.mxu0 %v19331_v20  ;;  %10697 = vmatpush1.msra.mxu1 %v19339_v1 }
 0x454   :  { %17652 = vmatprep.subr.bf16.mxu0 %v21047_v45  ;;  %17676 = vmatprep.subr.bf16.mxu1 %v21048_v60 }
 0x456   :  { %10241 = vmatmul.mubr.f32.vlgmr.msra.gmra.mrb[14].mxu0 %v19988_v33  ;;  %10758 = vmatmul.mubr.f32.vlgmr.msra.gmra.mrb[14].mxu1 %v19988_v33 }
 0x457   :  { %17654 = vmatpush1.bf16.msra.mxu0 %v21049_v11  ;;  %17678 = vmatpush1.bf16.msra.mxu1 %v21050_v31 }
 0x458   :  { %10795 = vmatprep.subr.mxu0 %v21051_v47  ;;  %11312 = vmatprep.subr.mxu1 %v21052_v56 }
 0x459   :  { %10856 = vmatprep.mubr.f32.mxu0 %v20860_v38  ;;  %11373 = vmatprep.mubr.f32.mxu1 %v20860_v38 }
 0x45b   :  { %10797 = vmatpush1.msra.mxu0 %v21053_v8  ;;  %11314 = vmatpush1.msra.mxu1 %v21054_v10 }
 0x45c   :  { %10862 = vmatmul.mubr.f32.vlgmr.msra.gmra.mrb[16].mxu0 %v20005_v59  ;;  %11379 = vmatmul.mubr.f32.vlgmr.msra.gmra.mrb[16].mxu1 %v20005_v59  ;;  %v21063_v59 = vld [vmem:[#allocation29_spill] sm:$0xff] }
 0x45d   :  { %17656 = vmatprep.subr.bf16.mxu0 %v21055_v16  ;;  %17680 = vmatprep.subr.bf16.mxu1 %v21056_v23  ;;  %v21064_v16 = vld [vmem:[#allocation30_spill] sm:$0xff] }
 0x45e   :  { %17658 = vmatpush1.bf16.msra.mxu0 %v21057_v7  ;;  %17682 = vmatpush1.bf16.msra.mxu1 %v21058_v54  ;;  %v21065_v54 = vld [vmem:[#allocation31_spill] sm:$0xff]  ;;  %v21068_v7 = vld [vmem:[#allocation12_spill] sm:$0xff]  ;;  %v21082_v23 = vld [vmem:[#allocation38_spill] sm:$0xff] }
 0x45f   :  { %10897 = vmatprep.subr.mxu0 %v21059_v62  ;;  %11414 = vmatprep.subr.mxu1 %v21060_v4  ;;  %v21066_v62 = vld [vmem:[#allocation32_spill] sm:$0xff]  ;;  %v21067_v4 = vld [vmem:[#allocation11_spill] sm:$0xff] }
 0x460   :  { %10962 = vmatprep.mubr.f32.mxu0 %v20860_v38  ;;  %11479 = vmatprep.mubr.f32.mxu1 %v20860_v38 }
 0x462   :  { %10903 = vmatpush1.msra.mxu0 %v21061_v3  ;;  %11420 = vmatpush1.msra.mxu1 %v21062_v24  ;;  %v21069_v24 = vld [vmem:[#allocation13_spill] sm:$0xff] }
 0x463   :  { %17660 = vmatprep.subr.bf16.mxu0 %v21063_v59  ;;  %17684 = vmatprep.subr.bf16.mxu1 %v21064_v16  ;;  %v21070_v59 = vld [vmem:[#allocation14_spill] sm:$0xff] }
 0x464   :  { %10964 = vmatmul.mubr.f32.vlgmr.msra.gmra.mrb[16].mxu0 %v19988_v33  ;;  %11481 = vmatmul.mubr.f32.vlgmr.msra.gmra.mrb[16].mxu1 %v19988_v33 }
 0x465   :  { %17662 = vmatpush1.bf16.msra.mxu0 %v21065_v54  ;;  %17686 = vmatpush1.bf16.msra.mxu1 %v21066_v62  ;;  %v21076_v62 = vld [vmem:[#allocation18_spill] sm:$0xff]  ;;  %v21077_v54 = vld [vmem:[#allocation19_spill] sm:$0xff] }
 0x466   :  { %10984 = vmatprep.subr.mxu0 %v21067_v4  ;;  %11501 = vmatprep.subr.mxu1 %v21068_v7  ;;  %v21074_v7 = vld [vmem:[#allocation36_spill] sm:$0xff]  ;;  %v21075_v4 = vld [vmem:[#allocation17_spill] sm:$0xff] }
 0x467   :  { %11046 = vmatprep.mubr.f32.mxu0 %v20860_v38  ;;  %11563 = vmatprep.mubr.f32.mxu1 %v20860_v38 }
 0x469   :  { %10987 = vmatpush1.msra.mxu0 %v21069_v24  ;;  %11504 = vmatpush1.msra.mxu1 %v21070_v59  ;;  %v21071_v59 = vld [vmem:[#allocation33_spill] sm:$0xff]  ;;  %v21072_v24 = vld [vmem:[#allocation34_spill] sm:$0xff] }
 0x46a   :  { %17664 = vmatprep.subr.bf16.mxu0 %v21047_v45  ;;  %17688 = vmatprep.subr.bf16.mxu1 %v21048_v60 }
 0x46c   :  { %11049 = vmatmul.mubr.f32.vlgmr.msra.gmra.mrb[16].mxu0 %v19994_v39  ;;  %11566 = vmatmul.mubr.f32.vlgmr.msra.gmra.mrb[16].mxu1 %v19994_v39  ;;  %v21073_v39 = vld [vmem:[#allocation35_spill] sm:$0xff] }
 0x46d   :  { %17666 = vmatpush1.bf16.msra.mxu0 %v21049_v11  ;;  %17690 = vmatpush1.bf16.msra.mxu1 %v21050_v31 }
 0x46e   :  { %11064 = vmatprep.subr.mxu0 %v21051_v47  ;;  %11581 = vmatprep.subr.mxu1 %v21052_v56 }
 0x46f   :  { %11125 = vmatprep.mubr.f32.mxu0 %v20860_v38  ;;  %11642 = vmatprep.mubr.f32.mxu1 %v20860_v38 }
 0x471   :  { %11066 = vmatpush1.msra.mxu0 %v21053_v8  ;;  %11583 = vmatpush1.msra.mxu1 %v21054_v10 }
 0x472   :  { %17668 = vmatprep.subr.bf16.mxu0 %v21071_v59  ;;  %17692 = vmatprep.subr.bf16.mxu1 %v21072_v24  ;;  %v21078_v59 = vld [vmem:[#allocation20_spill] sm:$0xff] }
 0x474   :  { %11129 = vmatmul.mubr.f32.vlgmr.msra.gmra.mrb[16].mxu0 %v20000_v2  ;;  %11646 = vmatmul.mubr.f32.vlgmr.msra.gmra.mrb[16].mxu1 %v20000_v2  ;;  %v21079_v2 = vld [vmem:[#allocation46_spill] sm:$0xff] }
 0x475   :  { %17670 = vmatpush1.bf16.msra.mxu0 %v21073_v39  ;;  %17694 = vmatpush1.bf16.msra.mxu1 %v21074_v7 }
 0x476   :  { %11154 = vmatprep.subr.mxu0 %v21075_v4  ;;  %11671 = vmatprep.subr.mxu1 %v21076_v62  ;;  %v21081_v62 = vld [vmem:[#allocation37_spill] sm:$0xff] }
 0x477   :  { %11217 = vmatprep.mubr.f32.mxu0 %v20860_v38  ;;  %11734 = vmatprep.mubr.f32.mxu1 %v20860_v38 }
 0x479   :  { %11158 = vmatpush1.msra.mxu0 %v21077_v54  ;;  %11675 = vmatpush1.msra.mxu1 %v21078_v59  ;;  %v21080_v59 = vld [vmem:[#allocation49_spill] sm:$0xff] }
 0x47a   :  { %17672 = vmatprep.subr.bf16.mxu0 %v21047_v45  ;;  %17696 = vmatprep.subr.bf16.mxu1 %v21048_v60 }
 0x47c   :  { %11219 = vmatmul.mubr.f32.vlgmr.msra.gmra.mrb[16].mxu0 %v19988_v33  ;;  %11736 = vmatmul.mubr.f32.vlgmr.msra.gmra.mrb[16].mxu1 %v19988_v33 }
 0x47d   :  { %17674 = vmatpush1.bf16.msra.mxu0 %v21049_v11  ;;  %17698 = vmatpush1.bf16.msra.mxu1 %v21050_v31 }
 0x47e   :  { %11234 = vmatprep.subr.mxu0 %v21051_v47  ;;  %11751 = vmatprep.subr.mxu1 %v21052_v56 }
 0x47f   :  { %11295 = vmatprep.mubr.f32.mxu0 %v20860_v38  ;;  %11812 = vmatprep.mubr.f32.mxu1 %v20860_v38 }
 0x481   :  { %11236 = vmatpush1.msra.mxu0 %v21053_v8  ;;  %11753 = vmatpush1.msra.mxu1 %v21054_v10  ;;  %v21083_v8 = vld [vmem:[#allocation39_spill] sm:$0xff] }
 0x482   :  { %17700 = vmatprep.subr.bf16.mxu0 %v20937_v19  ;;  %17724 = vmatprep.subr.bf16.mxu1 %v20938_v32 }
 0x484   :  { %11297 = vmatmul.mubr.f32.vlgmr.msra.gmra.mrb[16].mxu0 %v19988_v33  ;;  %11814 = vmatmul.mubr.f32.vlgmr.msra.gmra.mrb[16].mxu1 %v19988_v33 }
 0x485   :  { %17702 = vmatpush1.bf16.msra.mxu0 %v20939_v53  ;;  %17726 = vmatpush1.bf16.msra.mxu1 %v20940_v18 }
 0x486   :  { %11873 = vmatprep.subr.mxu0 %v20941_v17  ;;  %12390 = vmatprep.subr.mxu1 %v20942_v21 }
 0x487   :  { %11934 = vmatprep.mubr.f32.mxu0 %v20860_v38  ;;  %12451 = vmatprep.mubr.f32.mxu1 %v20860_v38 }
 0x489   :  { %11875 = vmatpush1.msra.mxu0 %v20943_v14  ;;  %12392 = vmatpush1.msra.mxu1 %v20944_v40 }
 0x48a   :  { %17704 = vmatprep.subr.bf16.mxu0 %v21079_v2  ;;  %17728 = vmatprep.subr.bf16.mxu1 %v21080_v59 }
 0x529   :  { %v10242_v33 = vpop.f32.mrb[14].mxu0  ;;  %v10759_v54 = vpop.f32.mrb[14].mxu1 }
 0x52a   :  { %v10764_v4 = vadd.f32 %v10242_v33, %v21081_v62  ;;  %v10244_v7 = vpop.f32.mrb[15].mxu0  ;;  %v10761_v39 = vpop.f32.mrb[15].mxu1  ;;  %v10766_v10 = vadd.f32 %v10759_v54, %v21082_v23 }
 0x52b   :  { %v10765_v24 = vadd.f32 %v10244_v7, %v19631_v46  ;;  %v10767_v56 = vadd.f32 %v10761_v39, %v21083_v8  ;;  %v21084_v7 = vld [vmem:[#allocation41_spill] sm:$0xff] }
 0x52c   :  { %v10768_v16 = vmul.f32 0.5, %v10764_v4 }
 0x52d   :  { %v10772_v3 = vmul.f32 0.5, %v10765_v24  ;;  %v10777_v2 = vmul.f32 0.5, %v10767_v56 }
 0x52e   :  { %18371 = vtanh.f32 %v10768_v16 }
 0x52f   :  { %18373 = vtanh.f32 %v10772_v3 }
 0x530   :  { %18375 = vtanh.f32 %v10766_v10 }
 0x531   :  { %18377 = vtanh.f32 %v10777_v2 }
 0x538   :  { %v18372_v47 = vpop.eup %18371 }
 0x539   :  { %v18374_v59 = vpop.eup %18373  ;;  %v10770_v31 = vmul.f32 0.5, %v18372_v47 }
 0x53a   :  { %v10774_v11 = vmul.f32 0.5, %v18374_v59  ;;  %v18376_v62 = vpop.eup %18375 }
 0x53b   :  { %v10771_v33 = vadd.f32 0.5, %v10770_v31  ;;  %v18378_v3 = vpop.eup %18377 }
 0x53c   :  { %v10775_v60 = vadd.f32 0.5, %v10774_v11  ;;  %v10779_v54 = vmul.f32 0.5, %v18378_v3 }
 0x53d   :  { %v10782_v45 = vmul.f32 %v18376_v62, %v10771_v33 }
 0x53e   :  { %v10781_v4 = vmul.f32 %v10775_v60, %v21084_v7  ;;  %v10780_v16 = vadd.f32 0.5, %v10779_v54 }
 0x540   :  { %v20156_v24 = vadd.f32 %v10782_v45, %v10781_v4 }
 0x542   :  { %18379 = vtanh.f32 %v20156_v24 }
 0x54c   :  { %v18380_v10 = vpop.eup %18379 }
 0x54d   :  { %v10785_v56 = vmul.f32 %v18380_v10, %v10780_v16 }
 0x54f   :  { %v11862_v39 = vsel %vm1208_vm2, %v10785_v56, 0  ;;  %17131 = vst.msk [vmem:[#allocation2 + $0x8] sm:$0x7] %vm17126_vm4, %v10785_v56 }
 0x550   :  { %v20161_v47 = vand.u32 4294901760, %v11862_v39 }
 0x552   :  { %v11936_v11 = vsub.f32 %v11862_v39, %v20161_v47 }
 0x554   :  { %v20164_v62 = vand.u32 4294901760, %v11936_v11 }
 0x556   :  { %v11938_v60 = vsub.f32 %v11936_v11, %v20164_v62 }
 0x557   :  { %v11298_v45 = vpop.f32.mrb[16].mxu0  ;;  %v11815_v31 = vpop.f32.mrb[16].mxu1 }
 0x558   :  { %v11824_v59 = vrot.slane %v11298_v45, 7  ;;  %v11300_v2 = vpop.f32.mrb[17].mxu0  ;;  %v11817_v33 = vpop.f32.mrb[17].mxu1  ;;  %v11939_v7 = vand.u32 4294901760, %v11938_v60  ;;  %v11826_v54 = vrot.slane %v11815_v31, 7  ;;  %v21085_v31 = vld [vmem:[#allocation63_spill] sm:$0xff] }
 0x559   :  { %v11825_v4 = vrot.slane %v11300_v2, 7  ;;  %v11827_v60 = vrot.slane %v11817_v33, 7  ;;  %v21087_v2 = vld [vmem:[#allocation45_spill] sm:$0xff]  ;;  %v21088_v33 = vld [vmem:[#allocation47_spill] sm:$0xff] }
 0x55a   :  { %v11832_v3 = vadd.f32 %v21018_v50, %v11824_v59  ;;  %11940 = vmatmul.mubr.f32.vlgmr.msra.gmra.mrb[18].mxu0 %v11939_v7  ;;  %12457 = vmatmul.mubr.f32.vlgmr.msra.gmra.mrb[18].mxu1 %v11939_v7  ;;  %v11834_v39 = vadd.f32 %v21020_v37, %v11826_v54  ;;  %v21086_v59 = vld [vmem:[#allocation64_spill] sm:$0xff] }
 0x55b   :  { %v11833_v16 = vadd.f32 %v21019_v44, %v11825_v4  ;;  %17706 = vmatpush1.bf16.msra.mxu0 %v20955_v63  ;;  %17730 = vmatpush1.bf16.msra.mxu1 %v20956_v25  ;;  %v11835_v45 = vadd.f32 %v21024_v9, %v11827_v60  ;;  %v21089_v4 = vld [vmem:[#allocation51_spill] sm:$0xff] }
 0x55c   :  { %v11836_v10 = vmul.f32 0.5, %v11832_v3  ;;  %11975 = vmatprep.subr.mxu0 %v20957_v22  ;;  %12492 = vmatprep.subr.mxu1 %v20958_v43  ;;  %v21090_v3 = vld [vmem:[#allocation52_spill] sm:$0xff] }
 0x55d   :  { %v11840_v56 = vmul.f32 0.5, %v11833_v16  ;;  %12040 = vmatprep.mubr.f32.mxu0 %v20860_v38  ;;  %12557 = vmatprep.mubr.f32.mxu1 %v20860_v38  ;;  %v11845_v7 = vmul.f32 0.5, %v11835_v45 }
 0x55e   :  { %18381 = vtanh.f32 %v11836_v10 }
 0x55f   :  { %18383 = vtanh.f32 %v11840_v56  ;;  %11981 = vmatpush1.msra.mxu0 %v20959_v36  ;;  %12498 = vmatpush1.msra.mxu1 %v20960_v12 }
 0x560   :  { %17708 = vmatprep.subr.bf16.mxu0 %v20961_v34  ;;  %17732 = vmatprep.subr.bf16.mxu1 %v21021_v58  ;;  %18385 = vtanh.f32 %v11834_v39 }
 0x561   :  { %18387 = vtanh.f32 %v11845_v7 }
 0x562   :  { %12042 = vmatmul.mubr.f32.vlgmr.msra.gmra.mrb[18].mxu0 %v20161_v47  ;;  %12559 = vmatmul.mubr.f32.vlgmr.msra.gmra.mrb[18].mxu1 %v20161_v47 }
 0x563   :  { %17710 = vmatpush1.bf16.msra.mxu0 %v21085_v31  ;;  %17734 = vmatpush1.bf16.msra.mxu1 %v21086_v59 }
 0x564   :  { %12062 = vmatprep.subr.mxu0 %v21087_v2  ;;  %12579 = vmatprep.subr.mxu1 %v21088_v33 }
 0x565   :  { %12124 = vmatprep.mubr.f32.mxu0 %v20860_v38  ;;  %12641 = vmatprep.mubr.f32.mxu1 %v20860_v38 }
 0x567   :  { %12065 = vmatpush1.msra.mxu0 %v21089_v4  ;;  %12582 = vmatpush1.msra.mxu1 %v21090_v3 }
 0x568   :  { %v18382_v54 = vpop.eup %18381  ;;  %17712 = vmatprep.subr.bf16.mxu0 %v20937_v19  ;;  %17736 = vmatprep.subr.bf16.mxu1 %v20938_v32 }
 0x569   :  { %v18384_v16 = vpop.eup %18383  ;;  %v11838_v10 = vmul.f32 0.5, %v18382_v54 }
 0x56a   :  { %v11842_v56 = vmul.f32 0.5, %v18384_v16  ;;  %12127 = vmatmul.mubr.f32.vlgmr.msra.gmra.mrb[18].mxu0 %v11936_v11  ;;  %12644 = vmatmul.mubr.f32.vlgmr.msra.gmra.mrb[18].mxu1 %v11936_v11  ;;  %v18386_v60 = vpop.eup %18385 }
 0x56b   :  { %v11839_v39 = vadd.f32 0.5, %v11838_v10  ;;  %17714 = vmatpush1.bf16.msra.mxu0 %v20939_v53  ;;  %17738 = vmatpush1.bf16.msra.mxu1 %v20940_v18 }
 0x56c   :  { %v11843_v45 = vadd.f32 0.5, %v11842_v56  ;;  %12142 = vmatprep.subr.mxu0 %v20941_v17  ;;  %12659 = vmatprep.subr.mxu1 %v20942_v21 }
 0x56d   :  { %v11857_v3 = vmul.f32 %v18386_v60, %v11839_v39  ;;  %12203 = vmatprep.mubr.f32.mxu0 %v20860_v38  ;;  %12720 = vmatprep.mubr.f32.mxu1 %v20860_v38 }
 0x56e   :  { %v11856_v7 = vmul.f32 %v19963_v0, %v11843_v45  ;;  %v18388_v0 = vpop.eup %18387 }
 0x56f   :  { %12144 = vmatpush1.msra.mxu0 %v20943_v14  ;;  %12661 = vmatpush1.msra.mxu1 %v20944_v40 }
 0x570   :  { %v20202_v11 = vadd.f32 %v11857_v3, %v11856_v7  ;;  %17716 = vmatprep.subr.bf16.mxu0 %v20969_v48  ;;  %17740 = vmatprep.subr.bf16.mxu1 %v20970_v57  ;;  %v11847_v3 = vmul.f32 0.5, %v18388_v0  ;;  %v21091_v0 = vld [vmem:[#allocation98_spill] sm:$0xff] }
 0x572   :  { %18389 = vtanh.f32 %v20202_v11  ;;  %12207 = vmatmul.mubr.f32.vlgmr.msra.gmra.mrb[18].mxu0 %v20164_v62  ;;  %12724 = vmatmul.mubr.f32.vlgmr.msra.gmra.mrb[18].mxu1 %v20164_v62  ;;  %v11848_v62 = vadd.f32 0.5, %v11847_v3  ;;  %v21092_v3 = vld [vmem:[#allocation99_spill] sm:$0xff] }
 0x573   :  { %17718 = vmatpush1.bf16.msra.mxu0 %v20971_v42  ;;  %17742 = vmatpush1.bf16.msra.mxu1 %v20972_v28 }
 0x574   :  { %12232 = vmatprep.subr.mxu0 %v20973_v29  ;;  %12749 = vmatprep.subr.mxu1 %v20974_v49 }
 0x575   :  { %12295 = vmatprep.mubr.f32.mxu0 %v20860_v38  ;;  %12812 = vmatprep.mubr.f32.mxu1 %v20860_v38 }
 0x577   :  { %12236 = vmatpush1.msra.mxu0 %v21030_v51  ;;  %12753 = vmatpush1.msra.mxu1 %v21031_v13 }
 0x578   :  { %17720 = vmatprep.subr.bf16.mxu0 %v20937_v19  ;;  %17744 = vmatprep.subr.bf16.mxu1 %v20938_v32 }
 0x57a   :  { %12297 = vmatmul.mubr.f32.vlgmr.msra.gmra.mrb[18].mxu0 %v20161_v47  ;;  %12814 = vmatmul.mubr.f32.vlgmr.msra.gmra.mrb[18].mxu1 %v20161_v47 }
 0x57b   :  { %17722 = vmatpush1.bf16.msra.mxu0 %v20939_v53  ;;  %17746 = vmatpush1.bf16.msra.mxu1 %v20940_v18 }
 0x57c   :  { %v18390_v54 = vpop.eup %18389  ;;  %12312 = vmatprep.subr.mxu0 %v20941_v17  ;;  %12829 = vmatprep.subr.mxu1 %v20942_v21 }
 0x57d   :  { %v11860_v16 = vmul.f32 %v18390_v54, %v11848_v62  ;;  %12373 = vmatprep.mubr.f32.mxu0 %v20860_v38  ;;  %12890 = vmatprep.mubr.f32.mxu1 %v20860_v38  ;;  %v21093_v62 = vld [vmem:[#allocation100_spill] sm:$0xff] }
 0x57e   :  { %v21094_v54 = vld [vmem:[#allocation76_spill] sm:$0xff] }
 0x57f   :  { %v12899_v10 = vrot.slane %v11860_v16, 1  ;;  %12314 = vmatpush1.msra.mxu0 %v20943_v14  ;;  %12831 = vmatpush1.msra.mxu1 %v20944_v40  ;;  %v21095_v16 = vld [vmem:[#allocation77_spill] sm:$0xff] }
 0x580   :  { %17748 = vmatprep.subr.bf16.mxu0 %v19289_v55  ;;  %17772 = vmatprep.subr.bf16.mxu1 %v19300_v5 }
 0x581   :  { %v12900_v56 = vsel %vm1208_vm2, %v12899_v10, 0  ;;  %v21096_v10 = vld [vmem:[#allocation78_spill] sm:$0xff] }
 0x582   :  { %v20232_v39 = vand.u32 4294901760, %v12900_v56  ;;  %12375 = vmatmul.mubr.f32.vlgmr.msra.gmra.mrb[18].mxu0 %v20161_v47  ;;  %12892 = vmatmul.mubr.f32.vlgmr.msra.gmra.mrb[18].mxu1 %v20161_v47 }
 0x583   :  { %17750 = vmatpush1.bf16.msra.mxu0 %v19302_v30  ;;  %17774 = vmatpush1.bf16.msra.mxu1 %v19318_v52 }
 0x584   :  { %v20239_v60 = vsub.f32 %v12900_v56, %v20232_v39  ;;  %12911 = vmatprep.subr.mxu0 %v19321_v27  ;;  %13428 = vmatprep.subr.mxu1 %v19324_v35  ;;  %v21097_v56 = vld [vmem:[#allocation79_spill] sm:$0xff] }
 0x585   :  { %12972 = vmatprep.mubr.f32.mxu0 %v20860_v38  ;;  %13489 = vmatprep.mubr.f32.mxu1 %v20860_v38 }
 0x586   :  { %v20246_v45 = vand.u32 4294901760, %v20239_v60 }
 0x587   :  { %12913 = vmatpush1.msra.mxu0 %v19331_v20  ;;  %13430 = vmatpush1.msra.mxu1 %v19339_v1 }
 0x588   :  { %v12976_v47 = vsub.f32 %v20239_v60, %v20246_v45  ;;  %17752 = vmatprep.subr.bf16.mxu0 %v20977_v26  ;;  %17776 = vmatprep.subr.bf16.mxu1 %v20978_v61  ;;  %v21121_v61 = vld [vmem:[#allocation24_spill] sm:$0xff]  ;;  %v21122_v26 = vld [vmem:[#allocation25_spill] sm:$0xff] }
 0x58a   :  { %v20254_v7 = vand.u32 4294901760, %v12976_v47  ;;  %v21098_v47 = vld [vmem:[#allocation89_spill] sm:$0xff] }
 0x58c   :  { %12978 = vmatmul.mubr.f32.vlgmr.msra.gmra.mrb[18].mxu0 %v20254_v7  ;;  %13495 = vmatmul.mubr.f32.vlgmr.msra.gmra.mrb[18].mxu1 %v20254_v7 }
 0x58d   :  { %17754 = vmatpush1.bf16.msra.mxu0 %v19356_v15  ;;  %17778 = vmatpush1.bf16.msra.mxu1 %v19359_v41  ;;  %v21119_v41 = vld [vmem:[#allocation22_spill] sm:$0xff]  ;;  %v21120_v15 = vld [vmem:[#allocation23_spill] sm:$0xff] }
 0x58e   :  { %13013 = vmatprep.subr.mxu0 %v19470_v6  ;;  %13530 = vmatprep.subr.mxu1 %v21091_v0  ;;  %v21099_v0 = vld [vmem:[#allocation90_spill] sm:$0xff]  ;;  %v21118_v6 = vld [vmem:[#allocation21_spill] sm:$0xff] }
 0x58f   :  { %13078 = vmatprep.mubr.f32.mxu0 %v20860_v38  ;;  %13595 = vmatprep.mubr.f32.mxu1 %v20860_v38 }
 0x591   :  { %13019 = vmatpush1.msra.mxu0 %v21092_v3  ;;  %13536 = vmatpush1.msra.mxu1 %v21093_v62  ;;  %v21100_v62 = vld [vmem:[#allocation91_spill] sm:$0xff]  ;;  %v21117_v3 = vld [vmem:[#allocation10_spill] sm:$0xff] }
 0x592   :  { %17756 = vmatprep.subr.bf16.mxu0 %v21094_v54  ;;  %17780 = vmatprep.subr.bf16.mxu1 %v21095_v16  ;;  %v21101_v54 = vld [vmem:[#allocation92_spill] sm:$0xff]  ;;  %v21108_v16 = vld [vmem:[#allocation95_spill] sm:$0xff] }
 0x594   :  { %13080 = vmatmul.mubr.f32.vlgmr.msra.gmra.mrb[18].mxu0 %v20232_v39  ;;  %13597 = vmatmul.mubr.f32.vlgmr.msra.gmra.mrb[18].mxu1 %v20232_v39 }
 0x595   :  { %17758 = vmatpush1.bf16.msra.mxu0 %v21096_v10  ;;  %17782 = vmatpush1.bf16.msra.mxu1 %v21097_v56  ;;  %v21106_v56 = vld [vmem:[#allocation93_spill] sm:$0xff]  ;;  %v21107_v10 = vld [vmem:[#allocation94_spill] sm:$0xff] }
 0x596   :  { %13100 = vmatprep.subr.mxu0 %v21098_v47  ;;  %13617 = vmatprep.subr.mxu1 %v21099_v0  ;;  %v21104_v0 = vld [vmem:[#allocation82_spill] sm:$0xff]  ;;  %v21105_v47 = vld [vmem:[#allocation83_spill] sm:$0xff] }
 0x597   :  { %13162 = vmatprep.mubr.f32.mxu0 %v20860_v38  ;;  %13679 = vmatprep.mubr.f32.mxu1 %v20860_v38 }
 0x599   :  { %13103 = vmatpush1.msra.mxu0 %v21100_v62  ;;  %13620 = vmatpush1.msra.mxu1 %v21101_v54  ;;  %v21102_v54 = vld [vmem:[#allocation80_spill] sm:$0xff]  ;;  %v21103_v62 = vld [vmem:[#allocation81_spill] sm:$0xff] }
 0x59a   :  { %17760 = vmatprep.subr.bf16.mxu0 %v19289_v55  ;;  %17784 = vmatprep.subr.bf16.mxu1 %v19300_v5 }
 0x59c   :  { %13165 = vmatmul.mubr.f32.vlgmr.msra.gmra.mrb[18].mxu0 %v20239_v60  ;;  %13682 = vmatmul.mubr.f32.vlgmr.msra.gmra.mrb[18].mxu1 %v20239_v60 }
 0x59d   :  { %17762 = vmatpush1.bf16.msra.mxu0 %v19302_v30  ;;  %17786 = vmatpush1.bf16.msra.mxu1 %v19318_v52 }
 0x59e   :  { %13180 = vmatprep.subr.mxu0 %v19321_v27  ;;  %13697 = vmatprep.subr.mxu1 %v19324_v35 }
 0x59f   :  { %13241 = vmatprep.mubr.f32.mxu0 %v20860_v38  ;;  %13758 = vmatprep.mubr.f32.mxu1 %v20860_v38 }
 0x5a1   :  { %13182 = vmatpush1.msra.mxu0 %v19331_v20  ;;  %13699 = vmatpush1.msra.mxu1 %v19339_v1 }
 0x5a2   :  { %17764 = vmatprep.subr.bf16.mxu0 %v21102_v54  ;;  %17788 = vmatprep.subr.bf16.mxu1 %v21103_v62  ;;  %v21109_v54 = vld [vmem:[#allocation96_spill] sm:$0xff]  ;;  %v21116_v62 = vld [vmem:[#allocation9_spill] sm:$0xff] }
 0x5a4   :  { %13245 = vmatmul.mubr.f32.vlgmr.msra.gmra.mrb[18].mxu0 %v20246_v45  ;;  %13762 = vmatmul.mubr.f32.vlgmr.msra.gmra.mrb[18].mxu1 %v20246_v45 }
 0x5a5   :  { %17766 = vmatpush1.bf16.msra.mxu0 %v21104_v0  ;;  %17790 = vmatpush1.bf16.msra.mxu1 %v21105_v47  ;;  %v21114_v47 = vld [vmem:[#allocation6_spill] sm:$0xff]  ;;  %v21115_v0 = vld [vmem:[#allocation7_spill] sm:$0xff] }
 0x5a6   :  { %13270 = vmatprep.subr.mxu0 %v21106_v56  ;;  %13787 = vmatprep.subr.mxu1 %v21107_v10  ;;  %v21112_v10 = vld [vmem:[#allocation15_spill] sm:$0xff]  ;;  %v21113_v56 = vld [vmem:[#allocation16_spill] sm:$0xff] }
 0x5a7   :  { %13333 = vmatprep.mubr.f32.mxu0 %v20860_v38  ;;  %13850 = vmatprep.mubr.f32.mxu1 %v20860_v38 }
 0x5a9   :  { %13274 = vmatpush1.msra.mxu0 %v21108_v16  ;;  %13791 = vmatpush1.msra.mxu1 %v21109_v54  ;;  %v21110_v54 = vld [vmem:[#allocation5_spill] sm:$0xff]  ;;  %v21111_v16 = vld [vmem:[#allocation8_spill] sm:$0xff] }
 0x5aa   :  { %17768 = vmatprep.subr.bf16.mxu0 %v19289_v55  ;;  %17792 = vmatprep.subr.bf16.mxu1 %v19300_v5 }
 0x5ac   :  { %13335 = vmatmul.mubr.f32.vlgmr.msra.gmra.mrb[18].mxu0 %v20232_v39  ;;  %13852 = vmatmul.mubr.f32.vlgmr.msra.gmra.mrb[18].mxu1 %v20232_v39 }
 0x5ad   :  { %17770 = vmatpush1.bf16.msra.mxu0 %v19302_v30  ;;  %17794 = vmatpush1.bf16.msra.mxu1 %v19318_v52 }
 0x5ae   :  { %13350 = vmatprep.subr.mxu0 %v19321_v27  ;;  %13867 = vmatprep.subr.mxu1 %v19324_v35  ;;  %v21125_v35 = vld [vmem:[#allocation28_spill] sm:$0xff] }
 0x5af   :  { %13411 = vmatprep.mubr.f32.mxu0 %v20860_v38  ;;  %13928 = vmatprep.mubr.f32.mxu1 %v20860_v38 }
 0x5b1   :  { %13352 = vmatpush1.msra.mxu0 %v19331_v20  ;;  %13869 = vmatpush1.msra.mxu1 %v19339_v1  ;;  %v21123_v1 = vld [vmem:[#allocation26_spill] sm:$0xff]  ;;  %v21124_v20 = vld [vmem:[#allocation27_spill] sm:$0xff] }
 0x5b2   :  { %17796 = vmatprep.subr.bf16.mxu0 %v21110_v54  ;;  %17820 = vmatprep.subr.bf16.mxu1 %v21111_v16 }
 0x5b4   :  { %13413 = vmatmul.mubr.f32.vlgmr.msra.gmra.mrb[18].mxu0 %v20232_v39  ;;  %13930 = vmatmul.mubr.f32.vlgmr.msra.gmra.mrb[18].mxu1 %v20232_v39 }
 0x5b5   :  { %17798 = vmatpush1.bf16.msra.mxu0 %v21112_v10  ;;  %17822 = vmatpush1.bf16.msra.mxu1 %v21113_v56 }
 0x5b6   :  { %13967 = vmatprep.subr.mxu0 %v21114_v47  ;;  %14484 = vmatprep.subr.mxu1 %v21115_v0 }
 0x5b7   :  { %14028 = vmatprep.mubr.f32.mxu0 %v20860_v38  ;;  %14545 = vmatprep.mubr.f32.mxu1 %v20860_v38 }
 0x5b9   :  { %13969 = vmatpush1.msra.mxu0 %v21116_v62  ;;  %14486 = vmatpush1.msra.mxu1 %v21117_v3 }
 0x5ba   :  { %14034 = vmatmul.mubr.f32.vlgmr.msra.gmra.mrb[20].mxu0 %v20254_v7  ;;  %14551 = vmatmul.mubr.f32.vlgmr.msra.gmra.mrb[20].mxu1 %v20254_v7  ;;  %v21126_v7 = vld [vmem:[#allocation29_spill] sm:$0xff] }
 0x5bb   :  { %17800 = vmatprep.subr.bf16.mxu0 %v21118_v6  ;;  %17824 = vmatprep.subr.bf16.mxu1 %v21119_v41  ;;  %v21127_v6 = vld [vmem:[#allocation30_spill] sm:$0xff]  ;;  %v21129_v41 = vld [vmem:[#allocation32_spill] sm:$0xff] }
 0x5bc   :  { %17802 = vmatpush1.bf16.msra.mxu0 %v21120_v15  ;;  %17826 = vmatpush1.bf16.msra.mxu1 %v21121_v61  ;;  %v21128_v15 = vld [vmem:[#allocation31_spill] sm:$0xff]  ;;  %v21134_v61 = vld [vmem:[#allocation33_spill] sm:$0xff] }
 0x5bd   :  { %14069 = vmatprep.subr.mxu0 %v21122_v26  ;;  %14586 = vmatprep.subr.mxu1 %v21123_v1  ;;  %v21130_v1 = vld [vmem:[#allocation11_spill] sm:$0xff]  ;;  %v21131_v26 = vld [vmem:[#allocation12_spill] sm:$0xff] }
 0x5be   :  { %14134 = vmatprep.mubr.f32.mxu0 %v20860_v38  ;;  %14651 = vmatprep.mubr.f32.mxu1 %v20860_v38 }
 0x5c0   :  { %14075 = vmatpush1.msra.mxu0 %v21124_v20  ;;  %14592 = vmatpush1.msra.mxu1 %v21125_v35  ;;  %v21132_v20 = vld [vmem:[#allocation13_spill] sm:$0xff]  ;;  %v21133_v35 = vld [vmem:[#allocation14_spill] sm:$0xff] }
 0x5c1   :  { %17804 = vmatprep.subr.bf16.mxu0 %v21126_v7  ;;  %17828 = vmatprep.subr.bf16.mxu1 %v21127_v6  ;;  %v21135_v7 = vld [vmem:[#allocation34_spill] sm:$0xff]  ;;  %v21137_v6 = vld [vmem:[#allocation36_spill] sm:$0xff] }
 0x5c2   :  { %14136 = vmatmul.mubr.f32.vlgmr.msra.gmra.mrb[20].mxu0 %v20232_v39  ;;  %14653 = vmatmul.mubr.f32.vlgmr.msra.gmra.mrb[20].mxu1 %v20232_v39 }
 0x5c3   :  { %17806 = vmatpush1.bf16.msra.mxu0 %v21128_v15  ;;  %17830 = vmatpush1.bf16.msra.mxu1 %v21129_v41  ;;  %v21138_v15 = vld [vmem:[#allocation17_spill] sm:$0xff]  ;;  %v21139_v41 = vld [vmem:[#allocation18_spill] sm:$0xff] }
 0x5c4   :  { %14156 = vmatprep.subr.mxu0 %v21130_v1  ;;  %14673 = vmatprep.subr.mxu1 %v21131_v26  ;;  %v21140_v1 = vld [vmem:[#allocation19_spill] sm:$0xff]  ;;  %v21141_v26 = vld [vmem:[#allocation20_spill] sm:$0xff] }
 0x5c5   :  { %14218 = vmatprep.mubr.f32.mxu0 %v20860_v38  ;;  %14735 = vmatprep.mubr.f32.mxu1 %v20860_v38 }
 0x5c7   :  { %14159 = vmatpush1.msra.mxu0 %v21132_v20  ;;  %14676 = vmatpush1.msra.mxu1 %v21133_v35 }
 0x5c8   :  { %17808 = vmatprep.subr.bf16.mxu0 %v21110_v54  ;;  %17832 = vmatprep.subr.bf16.mxu1 %v21111_v16 }
 0x5ca   :  { %14221 = vmatmul.mubr.f32.vlgmr.msra.gmra.mrb[20].mxu0 %v20239_v60  ;;  %14738 = vmatmul.mubr.f32.vlgmr.msra.gmra.mrb[20].mxu1 %v20239_v60  ;;  %v21136_v60 = vld [vmem:[#allocation35_spill] sm:$0xff] }
 0x5cb   :  { %17810 = vmatpush1.bf16.msra.mxu0 %v21112_v10  ;;  %17834 = vmatpush1.bf16.msra.mxu1 %v21113_v56 }
 0x5cc   :  { %14236 = vmatprep.subr.mxu0 %v21114_v47  ;;  %14753 = vmatprep.subr.mxu1 %v21115_v0 }
 0x5cd   :  { %14297 = vmatprep.mubr.f32.mxu0 %v20860_v38  ;;  %14814 = vmatprep.mubr.f32.mxu1 %v20860_v38 }
 0x5cf   :  { %14238 = vmatpush1.msra.mxu0 %v21116_v62  ;;  %14755 = vmatpush1.msra.mxu1 %v21117_v3 }
 0x5d0   :  { %17812 = vmatprep.subr.bf16.mxu0 %v21134_v61  ;;  %17836 = vmatprep.subr.bf16.mxu1 %v21135_v7 }
 0x5d2   :  { %14301 = vmatmul.mubr.f32.vlgmr.msra.gmra.mrb[20].mxu0 %v20246_v45  ;;  %14818 = vmatmul.mubr.f32.vlgmr.msra.gmra.mrb[20].mxu1 %v20246_v45  ;;  %v21142_v45 = vld [vmem:[#allocation46_spill] sm:$0xff] }
 0x5d3   :  { %17814 = vmatpush1.bf16.msra.mxu0 %v21136_v60  ;;  %17838 = vmatpush1.bf16.msra.mxu1 %v21137_v6 }
 0x5d4   :  { %14326 = vmatprep.subr.mxu0 %v21138_v15  ;;  %14843 = vmatprep.subr.mxu1 %v21139_v41 }
 0x5d5   :  { %14389 = vmatprep.mubr.f32.mxu0 %v20860_v38  ;;  %14906 = vmatprep.mubr.f32.mxu1 %v20860_v38 }
 0x5d7   :  { %14330 = vmatpush1.msra.mxu0 %v21140_v1  ;;  %14847 = vmatpush1.msra.mxu1 %v21141_v26 }
 0x5d8   :  { %17816 = vmatprep.subr.bf16.mxu0 %v21110_v54  ;;  %17840 = vmatprep.subr.bf16.mxu1 %v21111_v16 }
 0x5da   :  { %14391 = vmatmul.mubr.f32.vlgmr.msra.gmra.mrb[20].mxu0 %v20232_v39  ;;  %14908 = vmatmul.mubr.f32.vlgmr.msra.gmra.mrb[20].mxu1 %v20232_v39 }
 0x5db   :  { %17818 = vmatpush1.bf16.msra.mxu0 %v21112_v10  ;;  %17842 = vmatpush1.bf16.msra.mxu1 %v21113_v56 }
 0x5dc   :  { %14406 = vmatprep.subr.mxu0 %v21114_v47  ;;  %14923 = vmatprep.subr.mxu1 %v21115_v0  ;;  %v21143_v0 = vld [vmem:[#allocation49_spill] sm:$0xff] }
 0x5dd   :  { %14467 = vmatprep.mubr.f32.mxu0 %v20860_v38  ;;  %14984 = vmatprep.mubr.f32.mxu1 %v20860_v38 }
 0x5df   :  { %14408 = vmatpush1.msra.mxu0 %v21116_v62  ;;  %14925 = vmatpush1.msra.mxu1 %v21117_v3  ;;  %v21144_v62 = vld [vmem:[#allocation37_spill] sm:$0xff] }
 0x5e0   :  { %17844 = vmatprep.subr.bf16.mxu0 %v20937_v19  ;;  %17868 = vmatprep.subr.bf16.mxu1 %v20938_v32 }
 0x5e2   :  { %14469 = vmatmul.mubr.f32.vlgmr.msra.gmra.mrb[20].mxu0 %v20232_v39  ;;  %14986 = vmatmul.mubr.f32.vlgmr.msra.gmra.mrb[20].mxu1 %v20232_v39 }
 0x5e3   :  { %17846 = vmatpush1.bf16.msra.mxu0 %v20939_v53  ;;  %17870 = vmatpush1.bf16.msra.mxu1 %v20940_v18 }
 0x5e4   :  { %15041 = vmatprep.subr.mxu0 %v20941_v17  ;;  %15558 = vmatprep.subr.mxu1 %v20942_v21 }
 0x5e5   :  { %15102 = vmatprep.mubr.f32.mxu0 %v20860_v38  ;;  %15619 = vmatprep.mubr.f32.mxu1 %v20860_v38 }
 0x5e7   :  { %15043 = vmatpush1.msra.mxu0 %v20943_v14  ;;  %15560 = vmatpush1.msra.mxu1 %v20944_v40 }
 0x5e8   :  { %17848 = vmatprep.subr.bf16.mxu0 %v21142_v45  ;;  %17872 = vmatprep.subr.bf16.mxu1 %v21143_v0 }
 0x687   :  { %v13414_v39 = vpop.f32.mrb[18].mxu0  ;;  %v13931_v3 = vpop.f32.mrb[18].mxu1 }
 0x688   :  { %v13936_v54 = vadd.f32 %v13414_v39, %v21144_v62  ;;  %v13416_v16 = vpop.f32.mrb[19].mxu0  ;;  %v13933_v10 = vpop.f32.mrb[19].mxu1  ;;  %v13938_v35 = vadd.f32 %v13931_v3, %v21082_v23 }
 0x689   :  { %v13937_v56 = vadd.f32 %v13416_v16, %v19631_v46  ;;  %v13939_v61 = vadd.f32 %v13933_v10, %v21083_v8 }
 0x68a   :  { %v13940_v47 = vmul.f32 0.5, %v13936_v54 }
 0x68b   :  { %v13944_v20 = vmul.f32 0.5, %v13937_v56  ;;  %v13949_v7 = vmul.f32 0.5, %v13939_v61 }
 0x68c   :  { %18391 = vtanh.f32 %v13940_v47 }
 0x68d   :  { %18393 = vtanh.f32 %v13944_v20 }
 0x68e   :  { %18395 = vtanh.f32 %v13938_v35 }
 0x68f   :  { %18397 = vtanh.f32 %v13949_v7 }
 0x696   :  { %v18392_v60 = vpop.eup %18391 }
 0x697   :  { %v18394_v6 = vpop.eup %18393  ;;  %v13942_v15 = vmul.f32 0.5, %v18392_v60 }
 0x698   :  { %v13946_v41 = vmul.f32 0.5, %v18394_v6  ;;  %v18396_v26 = vpop.eup %18395 }
 0x699   :  { %v13943_v1 = vadd.f32 0.5, %v13942_v15  ;;  %v18398_v3 = vpop.eup %18397 }
 0x69a   :  { %v13947_v45 = vadd.f32 0.5, %v13946_v41  ;;  %v13951_v16 = vmul.f32 0.5, %v18398_v3 }
 0x69b   :  { %v13954_v0 = vmul.f32 %v18396_v26, %v13943_v1 }
 0x69c   :  { %v13953_v39 = vmul.f32 %v13947_v45, %v20156_v24  ;;  %v13952_v56 = vadd.f32 0.5, %v13951_v16 }
 0x69e   :  { %v20405_v54 = vadd.f32 %v13954_v0, %v13953_v39 }
 0x6a0   :  { %18399 = vtanh.f32 %v20405_v54 }
 0x6aa   :  { %v18400_v10 = vpop.eup %18399 }
 0x6ab   :  { %v13957_v47 = vmul.f32 %v18400_v10, %v13952_v56 }
 0x6ad   :  { %v15030_v20 = vsel %vm1208_vm2, %v13957_v47, 0  ;;  %17133 = vst.msk [vmem:[#allocation2 + $0xc] sm:$0x7] %vm17126_vm4, %v13957_v47  ;;  %v21153_v47 = vld [vmem:[#allocation97_spill] sm:$0xff] }
 0x6ae   :  { %v20410_v35 = vand.u32 4294901760, %v15030_v20 }
 0x6b0   :  { %v15104_v61 = vsub.f32 %v15030_v20, %v20410_v35  ;;  %v21154_v20 = vld [vmem:[#allocation98_spill] sm:$0xff] }
 0x6b2   :  { %v20413_v7 = vand.u32 4294901760, %v15104_v61 }
 0x6b4   :  { %v15106_v24 = vsub.f32 %v15104_v61, %v20413_v7 }
 0x6b5   :  { %v14470_v60 = vpop.f32.mrb[20].mxu0  ;;  %v14987_v6 = vpop.f32.mrb[20].mxu1 }
 0x6b6   :  { %v14996_v15 = vrot.slane %v14470_v60, 4  ;;  %v14472_v41 = vpop.f32.mrb[21].mxu0  ;;  %v14989_v1 = vpop.f32.mrb[21].mxu1  ;;  %v15107_v26 = vand.u32 4294901760, %v15106_v24  ;;  %v14998_v39 = vrot.slane %v14987_v6, 4  ;;  %v21158_v24 = vld [vmem:[#allocation77_spill] sm:$0xff] }
 0x6b7   :  { %v14997_v45 = vrot.slane %v14472_v41, 4  ;;  %v14999_v10 = vrot.slane %v14989_v1, 4  ;;  %v21159_v60 = vld [vmem:[#allocation78_spill] sm:$0xff]  ;;  %v21160_v6 = vld [vmem:[#allocation79_spill] sm:$0xff] }
 0x6b8   :  { %v15004_v0 = vadd.f32 %v21018_v50, %v14996_v15  ;;  %15108 = vmatmul.mubr.f32.vlgmr.msra.gmra.mrb[22].mxu0 %v15107_v26  ;;  %15625 = vmatmul.mubr.f32.vlgmr.msra.gmra.mrb[22].mxu1 %v15107_v26  ;;  %v15006_v50 = vadd.f32 %v21020_v37, %v14998_v39  ;;  %v21161_v15 = vld [vmem:[#allocation89_spill] sm:$0xff]  ;;  %v21162_v41 = vld [vmem:[#allocation90_spill] sm:$0xff]  ;;  %v21163_v1 = vld [vmem:[#allocation91_spill] sm:$0xff] }
 0x6b9   :  { %v15005_v3 = vadd.f32 %v21019_v44, %v14997_v45  ;;  %17850 = vmatpush1.bf16.msra.mxu0 %v20955_v63  ;;  %17874 = vmatpush1.bf16.msra.mxu1 %v20956_v25  ;;  %v21145_v63 = vld [vmem:[#allocation52_spill] sm:$0xff]  ;;  %v21167_v39 = vld [vmem:[#allocation82_spill] sm:$0xff] }
 0x6ba   :  { %v15008_v16 = vmul.f32 0.5, %v15004_v0  ;;  %15143 = vmatprep.subr.mxu0 %v20957_v22  ;;  %15660 = vmatprep.subr.mxu1 %v20958_v43  ;;  %v15007_v22 = vadd.f32 %v21024_v9, %v14999_v10  ;;  %v15022_v9 = vrot.slane %v20202_v11, 5  ;;  %v21152_v11 = vld [vmem:[#allocation75_spill] sm:$0xff]  ;;  %v21164_v26 = vld [vmem:[#allocation92_spill] sm:$0xff]  ;;  %v21166_v0 = vld [vmem:[#allocation81_spill] sm:$0xff] }
 0x6bb   :  { %v15012_v56 = vmul.f32 0.5, %v15005_v3  ;;  %15208 = vmatprep.mubr.f32.mxu0 %v20860_v38  ;;  %15725 = vmatprep.mubr.f32.mxu1 %v20860_v38  ;;  %v21165_v45 = vld [vmem:[#allocation80_spill] sm:$0xff]  ;;  %v21168_v3 = vld [vmem:[#allocation83_spill] sm:$0xff] }
 0x6bc   :  { %18401 = vtanh.f32 %v15008_v16  ;;  %v15017_v43 = vmul.f32 0.5, %v15007_v22  ;;  %v21169_v16 = vld [vmem:[#allocation93_spill] sm:$0xff]  ;;  %v21172_v10 = vld [vmem:[#allocation96_spill] sm:$0xff] }
 0x6bd   :  { %18403 = vtanh.f32 %v15012_v56  ;;  %15149 = vmatpush1.msra.mxu0 %v20959_v36  ;;  %15666 = vmatpush1.msra.mxu1 %v20960_v12  ;;  %v21170_v56 = vld [vmem:[#allocation94_spill] sm:$0xff] }
 0x6be   :  { %17852 = vmatprep.subr.bf16.mxu0 %v20961_v34  ;;  %17876 = vmatprep.subr.bf16.mxu1 %v21021_v58  ;;  %18405 = vtanh.f32 %v15006_v50  ;;  %v21171_v50 = vld [vmem:[#allocation95_spill] sm:$0xff] }
 0x6bf   :  { %18407 = vtanh.f32 %v15017_v43 }
 0x6c0   :  { %15210 = vmatmul.mubr.f32.vlgmr.msra.gmra.mrb[22].mxu0 %v20410_v35  ;;  %15727 = vmatmul.mubr.f32.vlgmr.msra.gmra.mrb[22].mxu1 %v20410_v35 }
 0x6c1   :  { %17854 = vmatpush1.bf16.msra.mxu0 %v21085_v31  ;;  %17878 = vmatpush1.bf16.msra.mxu1 %v21086_v59 }
 0x6c2   :  { %15230 = vmatprep.subr.mxu0 %v21087_v2  ;;  %15747 = vmatprep.subr.mxu1 %v21088_v33 }
 0x6c3   :  { %15292 = vmatprep.mubr.f32.mxu0 %v20860_v38  ;;  %15809 = vmatprep.mubr.f32.mxu1 %v20860_v38 }
 0x6c5   :  { %15233 = vmatpush1.msra.mxu0 %v21089_v4  ;;  %15750 = vmatpush1.msra.mxu1 %v21145_v63  ;;  %v21151_v4 = vld [vmem:[#allocation74_spill] sm:$0xff] }
 0x6c6   :  { %v18402_v25 = vpop.eup %18401  ;;  %17856 = vmatprep.subr.bf16.mxu0 %v20937_v19  ;;  %17880 = vmatprep.subr.bf16.mxu1 %v20938_v32 }
 0x6c7   :  { %v18404_v36 = vpop.eup %18403  ;;  %v15010_v12 = vmul.f32 0.5, %v18402_v25 }
 0x6c8   :  { %v15014_v34 = vmul.f32 0.5, %v18404_v36  ;;  %15295 = vmatmul.mubr.f32.vlgmr.msra.gmra.mrb[22].mxu0 %v15104_v61  ;;  %15812 = vmatmul.mubr.f32.vlgmr.msra.gmra.mrb[22].mxu1 %v15104_v61  ;;  %v18406_v37 = vpop.eup %18405  ;;  %v21156_v61 = vld [vmem:[#allocation100_spill] sm:$0xff] }
 0x6c9   :  { %v15011_v44 = vadd.f32 0.5, %v15010_v12  ;;  %17858 = vmatpush1.bf16.msra.mxu0 %v20939_v53  ;;  %17882 = vmatpush1.bf16.msra.mxu1 %v20940_v18  ;;  %v18408_v33 = vpop.eup %18407 }
 0x6ca   :  { %v15015_v58 = vadd.f32 0.5, %v15014_v34  ;;  %15310 = vmatprep.subr.mxu0 %v20941_v17  ;;  %15827 = vmatprep.subr.mxu1 %v20942_v21 }
 0x6cb   :  { %v15025_v31 = vmul.f32 %v18406_v37, %v15011_v44  ;;  %15371 = vmatprep.mubr.f32.mxu0 %v20860_v38  ;;  %15888 = vmatprep.mubr.f32.mxu1 %v20860_v38 }
 0x6cc   :  { %v15024_v59 = vmul.f32 %v15022_v9, %v15015_v58 }
 0x6cd   :  { %15312 = vmatpush1.msra.mxu0 %v20943_v14  ;;  %15829 = vmatpush1.msra.mxu1 %v20944_v40 }
 0x6ce   :  { %v15026_v2 = vadd.f32 %v15025_v31, %v15024_v59  ;;  %17860 = vmatprep.subr.bf16.mxu0 %v20969_v48  ;;  %17884 = vmatprep.subr.bf16.mxu1 %v20970_v57  ;;  %v15019_v48 = vmul.f32 0.5, %v18408_v33 }
 0x6d0   :  { %18409 = vtanh.f32 %v15026_v2  ;;  %17138 = vst.msk [vmem:[%s20592_s11 - $0x4] sm:$0x70] %vm17136_vm6, %v15026_v2  ;;  %15375 = vmatmul.mubr.f32.vlgmr.msra.gmra.mrb[22].mxu0 %v20413_v7  ;;  %15892 = vmatmul.mubr.f32.vlgmr.msra.gmra.mrb[22].mxu1 %v20413_v7  ;;  %v15020_v57 = vadd.f32 0.5, %v15019_v48  ;;  %v21157_v7 = vld [vmem:[#allocation76_spill] sm:$0xff] }
 0x6d1   :  { %17862 = vmatpush1.bf16.msra.mxu0 %v20971_v42  ;;  %17886 = vmatpush1.bf16.msra.mxu1 %v20972_v28 }
 0x6d2   :  { %15400 = vmatprep.subr.mxu0 %v20973_v29  ;;  %15917 = vmatprep.subr.mxu1 %v20974_v49  ;;  %v21149_v49 = vld [vmem:[#allocation72_spill] sm:$0xff] }
 0x6d3   :  { %15463 = vmatprep.mubr.f32.mxu0 %v20860_v38  ;;  %15980 = vmatprep.mubr.f32.mxu1 %v20860_v38 }
 0x6d5   :  { %15404 = vmatpush1.msra.mxu0 %v21030_v51  ;;  %15921 = vmatpush1.msra.mxu1 %v21031_v13  ;;  %v21150_v51 = vld [vmem:[#allocation73_spill] sm:$0xff] }
 0x6d6   :  { %17864 = vmatprep.subr.bf16.mxu0 %v20937_v19  ;;  %17888 = vmatprep.subr.bf16.mxu1 %v20938_v32  ;;  %v21148_v19 = vld [vmem:[#allocation71_spill] sm:$0xff] }
 0x6d8   :  { %15465 = vmatmul.mubr.f32.vlgmr.msra.gmra.mrb[22].mxu0 %v20410_v35  ;;  %15982 = vmatmul.mubr.f32.vlgmr.msra.gmra.mrb[22].mxu1 %v20410_v35 }
 0x6d9   :  { %17866 = vmatpush1.bf16.msra.mxu0 %v20939_v53  ;;  %17890 = vmatpush1.bf16.msra.mxu1 %v20940_v18 }
 0x6da   :  { %v18410_v42 = vpop.eup %18409  ;;  %15480 = vmatprep.subr.mxu0 %v20941_v17  ;;  %15997 = vmatprep.subr.mxu1 %v20942_v21  ;;  %v21146_v21 = vld [vmem:[#allocation69_spill] sm:$0xff] }
 0x6db   :  { %v15028_v28 = vmul.f32 %v18410_v42, %v15020_v57  ;;  %15541 = vmatprep.mubr.f32.mxu0 %v20860_v38  ;;  %16058 = vmatprep.mubr.f32.mxu1 %v20860_v38 }
 0x6dd   :  { %v16067_v32 = vrot.slane %v15028_v28, 4  ;;  %17137 = vst.msk [vmem:[%s20591_s10 - $0x4] sm:$0x70] %vm17136_vm6, %v15028_v28  ;;  %15482 = vmatpush1.msra.mxu0 %v20943_v14  ;;  %15999 = vmatpush1.msra.mxu1 %v20944_v40  ;;  %v21147_v14 = vld [vmem:[#allocation70_spill] sm:$0xff] }
 0x6de   :  { %17892 = vmatprep.subr.bf16.mxu0 %v19289_v55  ;;  %17916 = vmatprep.subr.bf16.mxu1 %v19300_v5 }
 0x6df   :  { %v16068_v53 = vsel %vm1208_vm2, %v16067_v32, 0 }
 0x6e0   :  { %v20486_v18 = vand.u32 4294901760, %v16068_v53  ;;  %15543 = vmatmul.mubr.f32.vlgmr.msra.gmra.mrb[22].mxu0 %v20410_v35  ;;  %16060 = vmatmul.mubr.f32.vlgmr.msra.gmra.mrb[22].mxu1 %v20410_v35  ;;  %v21155_v35 = vld [vmem:[#allocation99_spill] sm:$0xff] }
 0x6e1   :  { %17894 = vmatpush1.bf16.msra.mxu0 %v19302_v30  ;;  %17918 = vmatpush1.bf16.msra.mxu1 %v19318_v52 }
 0x6e2   :  { %v16142_v17 = vsub.f32 %v16068_v53, %v20486_v18  ;;  %16079 = vmatprep.subr.mxu0 %v19321_v27  ;;  %16596 = vmatprep.subr.mxu1 %v21146_v21 }
 0x6e3   :  { %16140 = vmatprep.mubr.f32.mxu0 %v20860_v38  ;;  %16657 = vmatprep.mubr.f32.mxu1 %v20860_v38 }
 0x6e4   :  { %v16143_v40 = vand.u32 4294901760, %v16142_v17 }
 0x6e5   :  { %16081 = vmatpush1.msra.mxu0 %v21147_v14  ;;  %16598 = vmatpush1.msra.mxu1 %v21148_v19 }
 0x6e6   :  { %v16144_v29 = vsub.f32 %v16142_v17, %v16143_v40  ;;  %17896 = vmatprep.subr.bf16.mxu0 %v21149_v49  ;;  %17920 = vmatprep.subr.bf16.mxu1 %v21150_v51 }
 0x6e8   :  { %v16145_v13 = vand.u32 4294901760, %v16144_v29 }
 0x6ea   :  { %16146 = vmatmul.mubr.f32.vlgmr.msra.gmra.mrb[22].mxu0 %v16145_v13  ;;  %16663 = vmatmul.mubr.f32.vlgmr.msra.gmra.mrb[22].mxu1 %v16145_v13 }
 0x6eb   :  { %17898 = vmatpush1.bf16.msra.mxu0 %v21151_v4  ;;  %17922 = vmatpush1.bf16.msra.mxu1 %v21152_v11 }
 0x6ec   :  { %16181 = vmatprep.subr.mxu0 %v21153_v47  ;;  %16698 = vmatprep.subr.mxu1 %v21154_v20 }
 0x6ed   :  { %16246 = vmatprep.mubr.f32.mxu0 %v20860_v38  ;;  %16763 = vmatprep.mubr.f32.mxu1 %v20860_v38 }
 0x6ef   :  { %16187 = vmatpush1.msra.mxu0 %v21155_v35  ;;  %16704 = vmatpush1.msra.mxu1 %v21156_v61 }
 0x6f0   :  { %17900 = vmatprep.subr.bf16.mxu0 %v21157_v7  ;;  %17924 = vmatprep.subr.bf16.mxu1 %v21158_v24 }
 0x6f2   :  { %16248 = vmatmul.mubr.f32.vlgmr.msra.gmra.mrb[22].mxu0 %v20486_v18  ;;  %16765 = vmatmul.mubr.f32.vlgmr.msra.gmra.mrb[22].mxu1 %v20486_v18 }
 0x6f3   :  { %17902 = vmatpush1.bf16.msra.mxu0 %v21159_v60  ;;  %17926 = vmatpush1.bf16.msra.mxu1 %v21160_v6 }
 0x6f4   :  { %16268 = vmatprep.subr.mxu0 %v21161_v15  ;;  %16785 = vmatprep.subr.mxu1 %v21162_v41 }
 0x6f5   :  { %16330 = vmatprep.mubr.f32.mxu0 %v20860_v38  ;;  %16847 = vmatprep.mubr.f32.mxu1 %v20860_v38 }
 0x6f7   :  { %16271 = vmatpush1.msra.mxu0 %v21163_v1  ;;  %16788 = vmatpush1.msra.mxu1 %v21164_v26 }
 0x6f8   :  { %17904 = vmatprep.subr.bf16.mxu0 %v19289_v55  ;;  %17928 = vmatprep.subr.bf16.mxu1 %v19300_v5 }
 0x6fa   :  { %16333 = vmatmul.mubr.f32.vlgmr.msra.gmra.mrb[22].mxu0 %v16142_v17  ;;  %16850 = vmatmul.mubr.f32.vlgmr.msra.gmra.mrb[22].mxu1 %v16142_v17 }
 0x6fb   :  { %17906 = vmatpush1.bf16.msra.mxu0 %v19302_v30  ;;  %17930 = vmatpush1.bf16.msra.mxu1 %v19318_v52 }
 0x6fc   :  { %16348 = vmatprep.subr.mxu0 %v19321_v27  ;;  %16865 = vmatprep.subr.mxu1 %v21146_v21 }
 0x6fd   :  { %16409 = vmatprep.mubr.f32.mxu0 %v20860_v38  ;;  %16926 = vmatprep.mubr.f32.mxu1 %v20860_v38 }
 0x6ff   :  { %16350 = vmatpush1.msra.mxu0 %v21147_v14  ;;  %16867 = vmatpush1.msra.mxu1 %v21148_v19 }
 0x700   :  { %17908 = vmatprep.subr.bf16.mxu0 %v21165_v45  ;;  %17932 = vmatprep.subr.bf16.mxu1 %v21166_v0 }
 0x702   :  { %16413 = vmatmul.mubr.f32.vlgmr.msra.gmra.mrb[22].mxu0 %v16143_v40  ;;  %16930 = vmatmul.mubr.f32.vlgmr.msra.gmra.mrb[22].mxu1 %v16143_v40 }
 0x703   :  { %17910 = vmatpush1.bf16.msra.mxu0 %v21167_v39  ;;  %17934 = vmatpush1.bf16.msra.mxu1 %v21168_v3 }
 0x704   :  { %16438 = vmatprep.subr.mxu0 %v21169_v16  ;;  %16955 = vmatprep.subr.mxu1 %v21170_v56 }
 0x705   :  { %16501 = vmatprep.mubr.f32.mxu0 %v20860_v38  ;;  %17018 = vmatprep.mubr.f32.mxu1 %v20860_v38 }
 0x707   :  { %16442 = vmatpush1.msra.mxu0 %v21171_v50  ;;  %16959 = vmatpush1.msra.mxu1 %v21172_v10 }
 0x708   :  { %17912 = vmatprep.subr.bf16.mxu0 %v19289_v55  ;;  %17936 = vmatprep.subr.bf16.mxu1 %v19300_v5 }
 0x70a   :  { %16503 = vmatmul.mubr.f32.vlgmr.msra.gmra.mrb[22].mxu0 %v20486_v18  ;;  %17020 = vmatmul.mubr.f32.vlgmr.msra.gmra.mrb[22].mxu1 %v20486_v18 }
 0x70b   :  { %17914 = vmatpush1.bf16.msra.mxu0 %v19302_v30  ;;  %17938 = vmatpush1.bf16.msra.mxu1 %v19318_v52 }
 0x70c   :  { %16518 = vmatprep.subr.mxu0 %v19321_v27  ;;  %17035 = vmatprep.subr.mxu1 %v21146_v21 }
 0x70d   :  { %16579 = vmatprep.mubr.f32.mxu0 %v20860_v38  ;;  %17096 = vmatprep.mubr.f32.mxu1 %v20860_v38 }
 0x70f   :  { %16520 = vmatpush1.msra.mxu0 %v21147_v14  ;;  %17037 = vmatpush1.msra.mxu1 %v21148_v19 }
 0x712   :  { %16581 = vmatmul.mubr.f32.vlgmr.msra.gmra.mrb[22].mxu0 %v20486_v18  ;;  %17098 = vmatmul.mubr.f32.vlgmr.msra.gmra.mrb[22].mxu1 %v20486_v18 }
 0x7e5   :  { %v16582_v5 = vpop.f32.mrb[22].mxu0  ;;  %v17099_v30 = vpop.f32.mrb[22].mxu1 }
 0x7e6   :  { %v17104_v55 = vadd.f32 %v16582_v5, %v21144_v62  ;;  %v16584_v52 = vpop.f32.mrb[23].mxu0  ;;  %v17101_v27 = vpop.f32.mrb[23].mxu1  ;;  %v17106_v38 = vadd.f32 %v17099_v30, %v21082_v23 }
 0x7e7   :  { %v17105_v22 = vadd.f32 %v16584_v52, %v19631_v46  ;;  %v17107_v25 = vadd.f32 %v17101_v27, %v21083_v8 }
 0x7e8   :  { %v17108_v43 = vmul.f32 0.5, %v17104_v55 }
 0x7e9   :  { %v17112_v63 = vmul.f32 0.5, %v17105_v22  ;;  %v17117_v36 = vmul.f32 0.5, %v17107_v25 }
 0x7ea   :  { %18411 = vtanh.f32 %v17108_v43 }
 0x7eb   :  { %18413 = vtanh.f32 %v17112_v63 }
 0x7ec   :  { %18415 = vtanh.f32 %v17106_v38 }
 0x7ed   :  { %18417 = vtanh.f32 %v17117_v36 }
 0x7f4   :  { %v18412_v12 = vpop.eup %18411 }
 0x7f5   :  { %v18414_v34 = vpop.eup %18413  ;;  %v17110_v44 = vmul.f32 0.5, %v18412_v12 }
 0x7f6   :  { %v17114_v37 = vmul.f32 0.5, %v18414_v34  ;;  %v18416_v58 = vpop.eup %18415 }
 0x7f7   :  { %v17111_v62 = vadd.f32 0.5, %v17110_v44  ;;  %v18418_v23 = vpop.eup %18417 }
 0x7f8   :  { %v17115_v9 = vadd.f32 0.5, %v17114_v37  ;;  %v17119_v8 = vmul.f32 0.5, %v18418_v23 }
 0x7f9   :  { %v17122_v31 = vmul.f32 %v18416_v58, %v17111_v62 }
 0x7fa   :  { %v17121_v46 = vmul.f32 %v17115_v9, %v20405_v54  ;;  %v17120_v2 = vadd.f32 0.5, %v17119_v8 }
 0x7fc   :  { %v17123_v59 = vadd.f32 %v17122_v31, %v17121_v46 }
 0x7fe   :  { %18419 = vtanh.f32 %v17123_v59  ;;  %17170 = vst.msk [vmem:[%s20592_s11 + $0x4] sm:$0x7] %vm17126_vm4, %v17123_v59 }
 0x808   :  { %v18420_v33 = vpop.eup %18419 }
 0x809   :  { %v17125_v48 = vmul.f32 %v18420_v33, %v17120_v2 }
 0x80b   :  { %17135 = vst.msk [vmem:[#allocation2 + $0x10] sm:$0x7] %vm17126_vm4, %v17125_v48  ;;  %17169 = vst.msk [vmem:[%s20591_s10 + $0x4] sm:$0x7] %vm17126_vm4, %v17125_v48 }
 0x80c   :  { %18432 = shalt.err (!%p18429_p4)
}
 0x80d   :  { %s18433_s17 = scalar_lea.hbm %s20590_s9, 320 }
 0x80e   :  { %p18434_p5 = scmp.ne.s32.totalorder %s20590_s9, %s18433_s17  ;;  %p18437_p6 = scmp.lt.u32.totalorder %s18433_s17, %s20590_s9 }
 0x810   :  { %p18439_p7 = pnand %p18437_p6, %p18434_p5 }
 0x812   :  { %18442 = shalt.err (!%p18439_p7)
}
 0x813   :  { %s18447_s10 = smov 64   ;;  %s18448_s4 = smov 4  }
 0x814   :  { %17154 = dma.vmem_to_hbm [thread:$0]  %s17149_s14, 320, %s20590_s9, [#allocation3], %s18447_s10, %s18447_s10, %s18448_s4  }
 0x815   :  { %18443 = dma.done.wait [#allocation3], 320  }
 0x816   :  { %18444 = vsyncadd [#allocation3], 4294966976 }
 0x817   :  { %17166 = vsyncpa [#allocation3], 1 }

</bundles_post_ra>
